<compile_context>
chip_gen: v7x
topology: tpu7x:2x2x1
jax: 0.10.0
libtpu: 0.0.40
codegen_flags: <defaults>
</compile_context>

<pallas_src>
import functools

import jax
import jax.numpy as jnp
from jax import lax
from jax.experimental import pallas as pl
from jax.experimental.pallas import tpu as pltpu


_MASK_NEG = -1e30  # finite "-inf": avoids NaN rows if a kv row is fully masked


# ----------------------------------------------------------------------------
# Shared math helpers (used by both the kernel and the pure-JAX reference)
# ----------------------------------------------------------------------------
def _gelu_tanh(x):
    # TODO(synk): PyTorch nn.GELU() default is the exact erf GELU; the tanh
    # approximation is used here (guaranteed Mosaic lowering, ~1e-3 max error).
    c = 0.7978845608028654  # sqrt(2/pi)
    return 0.5 * x * (1.0 + jnp.tanh(c * (x + 0.044715 * x * x * x)))


def _ln_lastdim(x, eps=1e-5):
    # LayerNorm over the last (channel) axis, biased variance — matches
    # blocks.LayerNorm which normalizes over dim=1 of (B, C, T).
    mu = jnp.mean(x, axis=-1, keepdims=True)
    r = x - mu
    var = jnp.mean(r * r, axis=-1, keepdims=True)
    return r * lax.rsqrt(var + eps)


# ----------------------------------------------------------------------------
# Fused decoder kernel (one grid step == one batch element)
# ----------------------------------------------------------------------------
def _decoder_kernel(
    qlen_ref, kvlen_ref,                                  # scalar prefetch (SMEM)
    xq_ref, xkv_ref,                                      # (1, Tq, C), (1, Tkv, Ckv)
    lnq_w_ref, lnq_b_ref, lnkv_w_ref, lnkv_b_ref,
    convw_ref, qn_w_ref, qn_b_ref,
    wq_ref, bq_ref, wk_ref, bk_ref, wv_ref, bv_ref,
    wo_ref, bo_ref,
    lnf_w_ref, lnf_b_ref,
    wfc_ref, bfc_ref, wp2_ref, bp2_ref,
    qout_ref, attn_ref,                                   # outputs
    *, n_heads, matmul_dtype):
    f32 = jnp.float32
    b = pl.program_id(0)
    Tq, C = xq_ref.shape[1], xq_ref.shape[2]
    Tkv = xkv_ref.shape[1]
    dh = C // n_heads
    scale = float(dh) ** -0.25
    mm = lambda a: a.astype(matmul_dtype)                 # MXU operand dtype

    # Build masks in-kernel from valid lengths (no (B, T, 1) HBM mask stream).
    qlen = qlen_ref[b]
    kvlen = kvlen_ref[b]
    row_q = lax.broadcasted_iota(jnp.int32, (Tq, 1), 0)
    qmask = (row_q < qlen).astype(f32)                    # (Tq, 1) float 0/1
    col_kv = lax.broadcasted_iota(jnp.int32, (1, Tkv), 1)
    kvmask = col_kv < kvlen                               # (1, Tkv) bool

    xq = xq_ref[0].astype(f32) * qmask                    # q = q * q_mask
    xkv = xkv_ref[0].astype(f32)

    # LN(xq) computed ONCE: reused by ln_xattn_q (affine) and adaln (no affine).
    xq_ln = _ln_lastdim(xq)                               # (Tq, C)

    # ---- ln_xattn_q -> depthwise conv (k=3, pad=1, no bias) * mask -> q_norm ---
    q_ln = xq_ln * lnq_w_ref[...] + lnq_b_ref[...]        # (Tq, C)
    w_taps = convw_ref[...]                               # (3, C)
    zrow = jnp.zeros((1, C), f32)
    # NOTE: pltpu.roll(+/-1, axis=0) + iota edge masks would avoid these two
    # (Tq,C) copies; kept as zero-row concat + static slices for robustness at
    # small, sublane-unaligned T.
    q_prev = jnp.concatenate([zrow, q_ln[:-1, :]], axis=0)          # x[t-1]
    q_next = jnp.concatenate([q_ln[1:, :], zrow], axis=0)           # x[t+1]
    q_conv = (q_prev * w_taps[0:1, :]
              + q_ln * w_taps[1:2, :]
              + q_next * w_taps[2:3, :]) * qmask
    q_in = _ln_lastdim(q_conv) * qn_w_ref[...] + qn_b_ref[...]      # (Tq, C)

    # ---- ln_xattn_kv ----------------------------------------------------------
    kv_ln = _ln_lastdim(xkv) * lnkv_w_ref[...] + lnkv_b_ref[...]    # (Tkv, Ckv)

    # ---- Q / K / V projections: bf16 operands, f32 accumulation ---------------
    q_bf = mm(q_in)
    kv_bf = mm(kv_ln)
    qp = jnp.dot(q_bf, wq_ref[...], preferred_element_type=f32) + bq_ref[...]
    kp = jnp.dot(kv_bf, wk_ref[...], preferred_element_type=f32) + bk_ref[...]
    vp = jnp.dot(kv_bf, wv_ref[...], preferred_element_type=f32) + bv_ref[...]

    # ---- per-head global cross-attention --------------------------------------
    # Per-head contexts are collected on the lane axis so the output projection
    # below is a single full-contraction (Tq, C) @ (C, 2C) MXU matmul.
    ctx_heads = []
    for h in range(n_heads):
        sl = slice(h * dh, (h + 1) * dh)
        qh = mm(qp[:, sl] * scale)                                  # (Tq, dh)
        kh = mm(kp[:, sl] * scale)                                  # (Tkv, dh)
        s = jnp.einsum("qd,kd->qk", qh, kh,
                       preferred_element_type=f32)                  # (Tq, Tkv)
        s = jnp.where(kvmask, s, _MASK_NEG)
        m = jnp.max(s, axis=-1, keepdims=True)
        e = jnp.exp(s - m)
        denom = jnp.sum(e, axis=-1, keepdims=True)
        p = e * pl.reciprocal(denom, approx=True)                   # EUP divide
        attn_ref[0, h] = (p * qmask).astype(attn_ref.dtype)         # cross_attn
        ctx_heads.append(jnp.dot(mm(p), mm(vp[:, sl]),
                                 preferred_element_type=f32))       # (Tq, dh)
    ctx = jnp.concatenate(ctx_heads, axis=-1)                       # (Tq, C)

    # ---- output projection (one matmul) -> modulation -------------------------
    out2 = jnp.dot(mm(ctx), wo_ref[...],
                   preferred_element_type=f32) + bo_ref[...]        # (Tq, 2C)
    w_mod = out2[:, :C]
    b_mod = out2[:, C:]

    # ---- decoder epilogue: adaln modulation + FFN residual --------------------
    q_mod = xq_ln * w_mod + b_mod                                   # adaln (reuse)
    y = _ln_lastdim(q_mod) * lnf_w_ref[...] + lnf_b_ref[...]        # ln_ffn
    h1 = jnp.dot(mm(y), wfc_ref[...], preferred_element_type=f32) + bfc_ref[...]
    h2 = jnp.dot(mm(_gelu_tanh(h1)), wp2_ref[...],
                 preferred_element_type=f32) + bp2_ref[...]
    qout_ref[0] = (q_mod + h2 * qmask).astype(qout_ref.dtype)


# ----------------------------------------------------------------------------
# Feature probe: is BlockSpec(pipeline_mode=pl.Buffered(1)) supported?
# (single-buffered resident weights; degrade gracefully if unsupported)
# ----------------------------------------------------------------------------
def _probe_kernel(x_ref, o_ref):
    o_ref[...] = x_ref[...]


@functools.lru_cache(maxsize=None)
def _buffered_supported():
    try:
        fn = pl.pallas_call(
            _probe_kernel,
            out_shape=jax.ShapeDtypeStruct((8, 128), jnp.float32),
            grid=(1,),
            in_specs=[pl.BlockSpec((8, 128), lambda i: (0, 0),
                                   pipeline_mode=pl.Buffered(1))],
            out_specs=pl.BlockSpec((8, 128), lambda i: (0, 0)),
        )
        jax.block_until_ready(fn(jnp.zeros((8, 128), jnp.float32)))
        return True
    except Exception:
        return False


def _spec(shape, index_map, single_buffer=False):
    if single_buffer and _buffered_supported():
        return pl.BlockSpec(shape, index_map, pipeline_mode=pl.Buffered(1))
    return pl.BlockSpec(shape, index_map)


# ----------------------------------------------------------------------------
# Wrapper: layout conversion (once, at the module boundary) + pallas_call
# ----------------------------------------------------------------------------
def transformer_decoder_forward(q, q_mask, kv, kv_mask, params, n_heads=4,
                                matmul_dtype=jnp.bfloat16,
                                attn_dtype=jnp.float32):
    """q: (B, C, Tq) f32, kv: (B, Ckv, Tkv) f32, masks: (B, 1, T) bool or None."""
    B, C, Tq = q.shape
    Ckv, Tkv = kv.shape[1], kv.shape[2]
    H = n_heads
    hidden = params["wfc"].shape[1]
    assert C % H == 0

    if q_mask is None:
        q_mask = jnp.ones((B, 1, Tq), dtype=bool)
    if kv_mask is None:
        kv_mask = jnp.ones((B, 1, Tkv), dtype=bool)

    # Valid lengths -> scalar prefetch (masks rebuilt in-kernel with iota).
    # TODO(synk): assumes prefix (valid-length) masks, as produced by the
    # ActionFormer pipeline; arbitrary boolean masks need an explicit operand.
    q_len = jnp.sum(q_mask.astype(jnp.int32), axis=(1, 2))      # (B,)
    kv_len = jnp.sum(kv_mask.astype(jnp.int32), axis=(1, 2))    # (B,)

    # Channel-last once at the boundary.
    xq = jnp.transpose(q, (0, 2, 1))                            # (B, Tq, C)
    xkv = jnp.transpose(kv, (0, 2, 1))                          # (B, Tkv, Ckv)

    r2 = lambda v: v.reshape(1, -1)                             # 1D params -> (1, D)
    # matmul weights shipped in the MXU operand dtype (halves weight HBM/VMEM);
    # in deployment these would be stored pre-cast.
    w_mm = lambda w: w.astype(matmul_dtype)

    def _rep(shape):   # resident weight/bias: constant index_map, single buffer
        return _spec(shape, lambda b, *_: (0, 0), single_buffer=True)

    grid_spec = pltpu.PrefetchScalarGridSpec(
        num_scalar_prefetch=2,
        grid=(B,),
        in_specs=[
            pl.BlockSpec((1, Tq, C), lambda b, *_: (b, 0, 0)),      # xq
            pl.BlockSpec((1, Tkv, Ckv), lambda b, *_: (b, 0, 0)),   # xkv
            _rep((1, C)), _rep((1, C)),                             # ln_xattn_q w,b
            _rep((1, Ckv)), _rep((1, Ckv)),                         # ln_xattn_kv w,b
            _rep((3, C)),                                           # depthwise taps
            _rep((1, C)), _rep((1, C)),                             # q_norm w,b
            _rep((C, C)), _rep((1, C)),                             # Wq, bq
            _rep((Ckv, C)), _rep((1, C)),                           # Wk, bk
            _rep((Ckv, C)), _rep((1, C)),                           # Wv, bv
            _rep((C, 2 * C)), _rep((1, 2 * C)),                     # Wo, bo
            _rep((1, C)), _rep((1, C)),                             # ln_ffn w,b
            _rep((C, hidden)), _rep((1, hidden)),                   # Wfc, bfc
            _rep((hidden, C)), _rep((1, C)),                        # Wp, bp
        ],
        out_specs=[
            pl.BlockSpec((1, Tq, C), lambda b, *_: (b, 0, 0)),
            _spec((1, H, Tq, Tkv), lambda b, *_: (b, 0, 0, 0),
                  single_buffer=True),                              # attn output
        ],
    )

    q_out_tc, cross_attn = pl.pallas_call(
        functools.partial(_decoder_kernel, n_heads=H, matmul_dtype=matmul_dtype),
        out_shape=(jax.ShapeDtypeStruct((B, Tq, C), q.dtype),
                   jax.ShapeDtypeStruct((B, H, Tq, Tkv), attn_dtype)),
        grid_spec=grid_spec,
        compiler_params=pltpu.CompilerParams(
            dimension_semantics=("parallel",),
            # explicit scoped-VMEM budget (default 16/32/32 MiB is too small once
            # all weights are resident; keep headroom under v7x's 64 MiB physical)
            vmem_limit_bytes=64 * 1024 * 1024),
    )(q_len, kv_len,
      xq, xkv,
      r2(params["ln_q_w"]), r2(params["ln_q_b"]),
      r2(params["ln_kv_w"]), r2(params["ln_kv_b"]),
      params["conv_w"], r2(params["qn_w"]), r2(params["qn_b"]),
      w_mm(params["wq"]), r2(params["bq"]),
      w_mm(params["wk"]), r2(params["bk"]),
      w_mm(params["wv"]), r2(params["bv"]),
      w_mm(params["wo"]), r2(params["bo"]),
      r2(params["lnf_w"]), r2(params["lnf_b"]),
      w_mm(params["wfc"]), r2(params["bfc"]),
      w_mm(params["wp2"]), r2(params["bp2"]))

    q_out = jnp.transpose(q_out_tc, (0, 2, 1))                  # back to (B, C, T)
    return q_out, q_mask, cross_attn                            # out_mask == q_mask


# ----------------------------------------------------------------------------
# Parameter init (deterministic, PyTorch-Conv1d-like uniform; LN params jittered
# so the affine paths are actually exercised by the self-test)
# ----------------------------------------------------------------------------
def init_params(key, embd_dim, kv_dim, n_heads=4, expansion=4):
    C, Ckv = embd_dim, kv_dim
    hidden = C * expansion
    keys = iter(jax.random.split(key, 21))
    nxt = lambda: next(keys)

    def unif(shape, fan_in):
        bound = 1.0 / (fan_in ** 0.5)
        return jax.random.uniform(nxt(), shape, jnp.float32, -bound, bound)

    def ln_w(dim):
        return 1.0 + 0.1 * jax.random.normal(nxt(), (dim,), jnp.float32)

    def ln_b(dim):
        return 0.1 * jax.random.normal(nxt(), (dim,), jnp.float32)

    return {
        "ln_q_w": ln_w(C), "ln_q_b": ln_b(C),
        "ln_kv_w": ln_w(Ckv), "ln_kv_b": ln_b(Ckv),
        # depthwise conv taps: conv_w[k, c] == torch weight[c, 0, k]
        "conv_w": unif((3, C), 3),
        "qn_w": ln_w(C), "qn_b": ln_b(C),
        # 1x1 convs stored matmul-ready: w[ci, co] == torch weight[co, ci, 0]
        "wq": unif((C, C), C), "bq": unif((C,), C),
        "wk": unif((Ckv, C), Ckv), "bk": unif((C,), Ckv),
        "wv": unif((Ckv, C), Ckv), "bv": unif((C,), Ckv),
        "wo": unif((C, 2 * C), C), "bo": unif((2 * C,), C),
        "lnf_w": ln_w(C), "lnf_b": ln_b(C),
        "wfc": unif((C, hidden), C), "bfc": unif((hidden,), C),
        "wp2": unif((hidden, C), hidden), "bp2": unif((C,), hidden),
    }


# ----------------------------------------------------------------------------
# Pure-JAX reference (direct translation of the PyTorch forward, channel-first)
# ----------------------------------------------------------------------------
def _ln_ref(x, w=None, b=None, eps=1e-5):
    mu = jnp.mean(x, axis=1, keepdims=True)
    r = x - mu
    var = jnp.mean(r * r, axis=1, keepdims=True)
    out = r / jnp.sqrt(var + eps)
    if w is not None:
        out = out * w[None, :, None] + b[None, :, None]
    return out


def _pconv_ref(x, w, b):
    y = jnp.einsum("bct,co->bot", x, w, precision=lax.Precision.HIGHEST)
    return y + b[None, :, None]


def _dwconv_ref(x, w):
    T = x.shape[-1]
    xp = jnp.pad(x, ((0, 0), (0, 0), (1, 1)))
    return (xp[:, :, 0:T] * w[0][None, :, None]
            + xp[:, :, 1:T + 1] * w[1][None, :, None]
            + xp[:, :, 2:T + 2] * w[2][None, :, None])


def transformer_decoder_reference(q, q_mask, kv, kv_mask, params, n_heads):
    B, C, Tq = q.shape
    Tkv = kv.shape[-1]
    dh = C // n_heads
    scale = float(dh) ** -0.25
    hp = lax.Precision.HIGHEST

    qm = q_mask.astype(jnp.float32)                              # (B, 1, Tq)
    x = q * qm
    q_ln = _ln_ref(x, params["ln_q_w"], params["ln_q_b"])
    kv_ln = _ln_ref(kv, params["ln_kv_w"], params["ln_kv_b"])

    qc = _dwconv_ref(q_ln, params["conv_w"]) * qm                # MaskedConv1D
    qn = _ln_ref(qc, params["qn_w"], params["qn_b"])

    qp = _pconv_ref(qn, params["wq"], params["bq"])
    kp = _pconv_ref(kv_ln, params["wk"], params["bk"])
    vp = _pconv_ref(kv_ln, params["wv"], params["bv"])

    qh = qp.reshape(B, n_heads, dh, Tq).transpose(0, 1, 3, 2)
    kh = kp.reshape(B, n_heads, dh, Tkv)
    vh = vp.reshape(B, n_heads, dh, Tkv).transpose(0, 1, 3, 2)

    attn = jnp.einsum("bhqd,bhdk->bhqk", qh * scale, kh * scale, precision=hp)
    attn = jnp.where(kv_mask[:, :, None, :], attn, -jnp.inf)
    attn = jax.nn.softmax(attn, axis=-1)
    cross_attn = attn * qm[:, :, :, None]

    ctx = jnp.einsum("bhqk,bhkd->bhqd", attn, vh, precision=hp)
    ctx = ctx.transpose(0, 1, 3, 2).reshape(B, C, Tq)
    out2 = _pconv_ref(ctx, params["wo"], params["bo"])           # (B, 2C, T)
    w_mod, b_mod = out2[:, :C], out2[:, C:]

    q_mod = _ln_ref(x * qm) * w_mod + b_mod                      # adaln + mod
    y = _ln_ref(q_mod, params["lnf_w"], params["lnf_b"])
    h1 = _pconv_ref(y, params["wfc"], params["bfc"])
    h2 = _pconv_ref(_gelu_tanh(h1), params["wp2"], params["bp2"])
    q_out = q_mod + h2 * qm
    return q_out, q_mask, cross_attn


# ----------------------------------------------------------------------------
if __name__ == "__main__":
    B, C, Ckv = 2, 32, 48          # embd_dim=32, kv_dim=48
    Tq, Tkv = 16, 24
    H = 4                          # head dim = 8

    key = jax.random.PRNGKey(0)
    kq, kkv, kp = jax.random.split(key, 3)

    q = jax.random.normal(kq, (B, C, Tq), jnp.float32)
    kv = jax.random.normal(kkv, (B, Ckv, Tkv), jnp.float32)

    # prefix (valid-length) masks, as produced by the ActionFormer pipeline
    q_valid = jnp.array([16, 11], jnp.int32)
    kv_valid = jnp.array([24, 17], jnp.int32)
    q_mask = jnp.arange(Tq)[None, None, :] < q_valid[:, None, None]     # (B,1,Tq)
    kv_mask = jnp.arange(Tkv)[None, None, :] < kv_valid[:, None, None]  # (B,1,Tkv)

    params = init_params(kp, C, Ckv, n_heads=H, expansion=4)

    ref_q, ref_mask, ref_attn = transformer_decoder_reference(
        q, q_mask, kv, kv_mask, params, H)

    # --- f32-operand mode: tight structural check vs the f32 reference ---------
    fwd_f32 = jax.jit(functools.partial(
        transformer_decoder_forward, n_heads=H, matmul_dtype=jnp.float32))
    q32, m32, a32 = fwd_f32(q, q_mask, kv, kv_mask, params)
    q32 = jax.block_until_ready(q32)
    assert q32.shape == (B, C, Tq)
    assert a32.shape == (B, H, Tq, Tkv)
    assert m32.dtype == jnp.bool_ and jnp.array_equal(m32, q_mask)
    assert jnp.allclose(q32, ref_q, atol=1e-2, rtol=1e-2), (
        float(jnp.max(jnp.abs(q32 - ref_q))))
    assert jnp.allclose(a32, ref_attn, atol=1e-2, rtol=1e-2), (
        float(jnp.max(jnp.abs(a32 - ref_attn))))

    # --- bf16-operand mode (deployment default): tolerance covers bf16 MXU -----
    # operand rounding vs the f32 reference (structure already verified above).
    fwd_bf16 = jax.jit(functools.partial(
        transformer_decoder_forward, n_heads=H, matmul_dtype=jnp.bfloat16))
    qb, mb, ab = fwd_bf16(q, q_mask, kv, kv_mask, params)
    qb = jax.block_until_ready(qb)
    assert bool(jnp.all(jnp.isfinite(qb)))
    assert jnp.allclose(ab, ref_attn, atol=3e-2, rtol=3e-2), (
        float(jnp.max(jnp.abs(ab - ref_attn))))
    assert jnp.allclose(qb, ref_q, atol=1e-1, rtol=1e-1), (
        float(jnp.max(jnp.abs(qb - ref_q))))

    print("KERNEL_OK")
</pallas_src>

<mosaic_0001>
module attributes {stable_mosaic.version = 11 : i64} {
  func.func @_decoder_kernel(%arg0: i32, %arg1: memref<2xi32, #tpu.memory_space<smem>>, %arg2: memref<2xi32, #tpu.memory_space<smem>>, %arg3: memref<1x16x32xf32, #tpu.memory_space<vmem>>, %arg4: memref<1x24x48xf32, #tpu.memory_space<vmem>>, %arg5: memref<1x32xf32, #tpu.memory_space<vmem>>, %arg6: memref<1x32xf32, #tpu.memory_space<vmem>>, %arg7: memref<1x48xf32, #tpu.memory_space<vmem>>, %arg8: memref<1x48xf32, #tpu.memory_space<vmem>>, %arg9: memref<3x32xf32, #tpu.memory_space<vmem>>, %arg10: memref<1x32xf32, #tpu.memory_space<vmem>>, %arg11: memref<1x32xf32, #tpu.memory_space<vmem>>, %arg12: memref<32x32xf32, #tpu.memory_space<vmem>>, %arg13: memref<1x32xf32, #tpu.memory_space<vmem>>, %arg14: memref<48x32xf32, #tpu.memory_space<vmem>>, %arg15: memref<1x32xf32, #tpu.memory_space<vmem>>, %arg16: memref<48x32xf32, #tpu.memory_space<vmem>>, %arg17: memref<1x32xf32, #tpu.memory_space<vmem>>, %arg18: memref<32x64xf32, #tpu.memory_space<vmem>>, %arg19: memref<1x64xf32, #tpu.memory_space<vmem>>, %arg20: memref<1x32xf32, #tpu.memory_space<vmem>>, %arg21: memref<1x32xf32, #tpu.memory_space<vmem>>, %arg22: memref<32x128xf32, #tpu.memory_space<vmem>>, %arg23: memref<1x128xf32, #tpu.memory_space<vmem>>, %arg24: memref<128x32xf32, #tpu.memory_space<vmem>>, %arg25: memref<1x32xf32, #tpu.memory_space<vmem>>, %arg26: memref<1x16x32xf32, #tpu.memory_space<vmem>>, %arg27: memref<1x4x16x24xf32, #tpu.memory_space<vmem>>) attributes {dimension_semantics = [#tpu.dimension_semantics<parallel>], iteration_bounds = array<i64: 2>, scalar_prefetch = 2 : i64, scratch_operands = 0 : i64, tpu.core_type = #tpu.core_type<tc>, window_params = [{transform_indices = @transform_0, window_bounds = array<i64: 1, 16, 32>}, {transform_indices = @transform_1, window_bounds = array<i64: 1, 24, 48>}, {pipeline_mode = #tpu.pipeline_mode<synchronous>, transform_indices = @transform_2, window_bounds = array<i64: 1, 32>}, {pipeline_mode = #tpu.pipeline_mode<synchronous>, transform_indices = @transform_3, window_bounds = array<i64: 1, 32>}, {pipeline_mode = #tpu.pipeline_mode<synchronous>, transform_indices = @transform_4, window_bounds = array<i64: 1, 48>}, {pipeline_mode = #tpu.pipeline_mode<synchronous>, transform_indices = @transform_5, window_bounds = array<i64: 1, 48>}, {pipeline_mode = #tpu.pipeline_mode<synchronous>, transform_indices = @transform_6, window_bounds = array<i64: 3, 32>}, {pipeline_mode = #tpu.pipeline_mode<synchronous>, transform_indices = @transform_7, window_bounds = array<i64: 1, 32>}, {pipeline_mode = #tpu.pipeline_mode<synchronous>, transform_indices = @transform_8, window_bounds = array<i64: 1, 32>}, {pipeline_mode = #tpu.pipeline_mode<synchronous>, transform_indices = @transform_9, window_bounds = array<i64: 32, 32>}, {pipeline_mode = #tpu.pipeline_mode<synchronous>, transform_indices = @transform_10, window_bounds = array<i64: 1, 32>}, {pipeline_mode = #tpu.pipeline_mode<synchronous>, transform_indices = @transform_11, window_bounds = array<i64: 48, 32>}, {pipeline_mode = #tpu.pipeline_mode<synchronous>, transform_indices = @transform_12, window_bounds = array<i64: 1, 32>}, {pipeline_mode = #tpu.pipeline_mode<synchronous>, transform_indices = @transform_13, window_bounds = array<i64: 48, 32>}, {pipeline_mode = #tpu.pipeline_mode<synchronous>, transform_indices = @transform_14, window_bounds = array<i64: 1, 32>}, {pipeline_mode = #tpu.pipeline_mode<synchronous>, transform_indices = @transform_15, window_bounds = array<i64: 32, 64>}, {pipeline_mode = #tpu.pipeline_mode<synchronous>, transform_indices = @transform_16, window_bounds = array<i64: 1, 64>}, {pipeline_mode = #tpu.pipeline_mode<synchronous>, transform_indices = @transform_17, window_bounds = array<i64: 1, 32>}, {pipeline_mode = #tpu.pipeline_mode<synchronous>, transform_indices = @transform_18, window_bounds = array<i64: 1, 32>}, {pipeline_mode = #tpu.pipeline_mode<synchronous>, transform_indices = @transform_19, window_bounds = array<i64: 32, 128>}, {pipeline_mode = #tpu.pipeline_mode<synchronous>, transform_indices = @transform_20, window_bounds = array<i64: 1, 128>}, {pipeline_mode = #tpu.pipeline_mode<synchronous>, transform_indices = @transform_21, window_bounds = array<i64: 128, 32>}, {pipeline_mode = #tpu.pipeline_mode<synchronous>, transform_indices = @transform_22, window_bounds = array<i64: 1, 32>}, {transform_indices = @transform_23, window_bounds = array<i64: 1, 16, 32>}, {pipeline_mode = #tpu.pipeline_mode<synchronous>, transform_indices = @transform_24, window_bounds = array<i64: 1, 4, 16, 24>}]} {
    %0 = arith.index_cast %arg0 : i32 to index
    %1 = memref.load %arg1[%0] : memref<2xi32, #tpu.memory_space<smem>>
    %2 = arith.index_cast %arg0 : i32 to index
    %3 = memref.load %arg2[%2] : memref<2xi32, #tpu.memory_space<smem>>
    %4 = tpu.iota {dimensions = array<i32: 0>} : vector<16x1xi32>
    %5 = vector.broadcast %1 : i32 to vector<16x1xi32>
    %6 = arith.cmpi slt, %4, %5 : vector<16x1xi32>
    %7 = arith.extui %6 : vector<16x1xi1> to vector<16x1xi32>
    %8 = arith.sitofp %7 : vector<16x1xi32> to vector<16x1xf32>
    %9 = tpu.iota {dimensions = array<i32: 1>} : vector<1x24xi32>
    %10 = vector.broadcast %3 : i32 to vector<1x24xi32>
    %11 = arith.cmpi slt, %9, %10 : vector<1x24xi32>
    %c0 = arith.constant 0 : index
    %c0_0 = arith.constant 0 : index
    %c0_1 = arith.constant 0 : index
    %12 = vector.load %arg3[%c0, %c0_0, %c0_1] : memref<1x16x32xf32, #tpu.memory_space<vmem>>, vector<1x16x32xf32>
    %13 = vector.shape_cast %12 : vector<1x16x32xf32> to vector<16x32xf32>
    %14 = vector.broadcast %8 : vector<16x1xf32> to vector<16x32xf32>
    %15 = arith.mulf %13, %14 : vector<16x32xf32>
    %c0_2 = arith.constant 0 : index
    %c0_3 = arith.constant 0 : index
    %c0_4 = arith.constant 0 : index
    %16 = vector.load %arg4[%c0_2, %c0_3, %c0_4] : memref<1x24x48xf32, #tpu.memory_space<vmem>>, vector<1x24x48xf32>
    %17 = vector.shape_cast %16 : vector<1x24x48xf32> to vector<24x48xf32>
    %cst = arith.constant dense<0.000000e+00> : vector<16xf32>
    %18 = vector.multi_reduction <add>, %15, %cst [1] : vector<16x32xf32> to vector<16xf32>
    %19 = vector.shape_cast %18 : vector<16xf32> to vector<16x1xf32>
    %cst_5 = arith.constant 3.200000e+01 : f32
    %20 = vector.broadcast %cst_5 : f32 to vector<16x1xf32>
    %21 = arith.divf %19, %20 : vector<16x1xf32>
    %22 = vector.broadcast %21 : vector<16x1xf32> to vector<16x32xf32>
    %23 = arith.subf %15, %22 : vector<16x32xf32>
    %24 = arith.mulf %23, %23 : vector<16x32xf32>
    %cst_6 = arith.constant dense<0.000000e+00> : vector<16xf32>
    %25 = vector.multi_reduction <add>, %24, %cst_6 [1] : vector<16x32xf32> to vector<16xf32>
    %26 = vector.shape_cast %25 : vector<16xf32> to vector<16x1xf32>
    %cst_7 = arith.constant 3.200000e+01 : f32
    %27 = vector.broadcast %cst_7 : f32 to vector<16x1xf32>
    %28 = arith.divf %26, %27 : vector<16x1xf32>
    %cst_8 = arith.constant 9.99999974E-6 : f32
    %29 = vector.broadcast %cst_8 : f32 to vector<16x1xf32>
    %30 = arith.addf %28, %29 : vector<16x1xf32>
    %31 = math.rsqrt %30 : vector<16x1xf32>
    %32 = vector.broadcast %31 : vector<16x1xf32> to vector<16x32xf32>
    %33 = arith.mulf %23, %32 : vector<16x32xf32>
    %c0_9 = arith.constant 0 : index
    %c0_10 = arith.constant 0 : index
    %34 = vector.load %arg5[%c0_9, %c0_10] : memref<1x32xf32, #tpu.memory_space<vmem>>, vector<1x32xf32>
    %35 = vector.broadcast %34 : vector<1x32xf32> to vector<16x32xf32>
    %36 = arith.mulf %33, %35 : vector<16x32xf32>
    %c0_11 = arith.constant 0 : index
    %c0_12 = arith.constant 0 : index
    %37 = vector.load %arg6[%c0_11, %c0_12] : memref<1x32xf32, #tpu.memory_space<vmem>>, vector<1x32xf32>
    %38 = vector.broadcast %37 : vector<1x32xf32> to vector<16x32xf32>
    %39 = arith.addf %36, %38 : vector<16x32xf32>
    %c0_13 = arith.constant 0 : index
    %c0_14 = arith.constant 0 : index
    %40 = vector.load %arg9[%c0_13, %c0_14] : memref<3x32xf32, #tpu.memory_space<vmem>>, vector<3x32xf32>
    %cst_15 = arith.constant 0.000000e+00 : f32
    %41 = vector.broadcast %cst_15 : f32 to vector<1x32xf32>
    %42 = vector.extract_strided_slice %39 {offsets = [0, 0], sizes = [15, 32], strides = [1, 1]} : vector<16x32xf32> to vector<15x32xf32>
    %43 = tpu.concatenate %41, %42 in 0 : vector<1x32xf32>, vector<15x32xf32> -> vector<16x32xf32>
    %44 = vector.extract_strided_slice %39 {offsets = [1, 0], sizes = [15, 32], strides = [1, 1]} : vector<16x32xf32> to vector<15x32xf32>
    %45 = tpu.concatenate %44, %41 in 0 : vector<15x32xf32>, vector<1x32xf32> -> vector<16x32xf32>
    %46 = vector.extract_strided_slice %40 {offsets = [0, 0], sizes = [1, 32], strides = [1, 1]} : vector<3x32xf32> to vector<1x32xf32>
    %47 = vector.broadcast %46 : vector<1x32xf32> to vector<16x32xf32>
    %48 = arith.mulf %43, %47 : vector<16x32xf32>
    %49 = vector.extract_strided_slice %40 {offsets = [1, 0], sizes = [1, 32], strides = [1, 1]} : vector<3x32xf32> to vector<1x32xf32>
    %50 = vector.broadcast %49 : vector<1x32xf32> to vector<16x32xf32>
    %51 = arith.mulf %39, %50 : vector<16x32xf32>
    %52 = arith.addf %48, %51 : vector<16x32xf32>
    %53 = vector.extract_strided_slice %40 {offsets = [2, 0], sizes = [1, 32], strides = [1, 1]} : vector<3x32xf32> to vector<1x32xf32>
    %54 = vector.broadcast %53 : vector<1x32xf32> to vector<16x32xf32>
    %55 = arith.mulf %45, %54 : vector<16x32xf32>
    %56 = arith.addf %52, %55 : vector<16x32xf32>
    %57 = vector.broadcast %8 : vector<16x1xf32> to vector<16x32xf32>
    %58 = arith.mulf %56, %57 : vector<16x32xf32>
    %cst_16 = arith.constant dense<0.000000e+00> : vector<16xf32>
    %59 = vector.multi_reduction <add>, %58, %cst_16 [1] : vector<16x32xf32> to vector<16xf32>
    %60 = vector.shape_cast %59 : vector<16xf32> to vector<16x1xf32>
    %cst_17 = arith.constant 3.200000e+01 : f32
    %61 = vector.broadcast %cst_17 : f32 to vector<16x1xf32>
    %62 = arith.divf %60, %61 : vector<16x1xf32>
    %63 = vector.broadcast %62 : vector<16x1xf32> to vector<16x32xf32>
    %64 = arith.subf %58, %63 : vector<16x32xf32>
    %65 = arith.mulf %64, %64 : vector<16x32xf32>
    %cst_18 = arith.constant dense<0.000000e+00> : vector<16xf32>
    %66 = vector.multi_reduction <add>, %65, %cst_18 [1] : vector<16x32xf32> to vector<16xf32>
    %67 = vector.shape_cast %66 : vector<16xf32> to vector<16x1xf32>
    %cst_19 = arith.constant 3.200000e+01 : f32
    %68 = vector.broadcast %cst_19 : f32 to vector<16x1xf32>
    %69 = arith.divf %67, %68 : vector<16x1xf32>
    %cst_20 = arith.constant 9.99999974E-6 : f32
    %70 = vector.broadcast %cst_20 : f32 to vector<16x1xf32>
    %71 = arith.addf %69, %70 : vector<16x1xf32>
    %72 = math.rsqrt %71 : vector<16x1xf32>
    %73 = vector.broadcast %72 : vector<16x1xf32> to vector<16x32xf32>
    %74 = arith.mulf %64, %73 : vector<16x32xf32>
    %c0_21 = arith.constant 0 : index
    %c0_22 = arith.constant 0 : index
    %75 = vector.load %arg10[%c0_21, %c0_22] : memref<1x32xf32, #tpu.memory_space<vmem>>, vector<1x32xf32>
    %76 = vector.broadcast %75 : vector<1x32xf32> to vector<16x32xf32>
    %77 = arith.mulf %74, %76 : vector<16x32xf32>
    %c0_23 = arith.constant 0 : index
    %c0_24 = arith.constant 0 : index
    %78 = vector.load %arg11[%c0_23, %c0_24] : memref<1x32xf32, #tpu.memory_space<vmem>>, vector<1x32xf32>
    %79 = vector.broadcast %78 : vector<1x32xf32> to vector<16x32xf32>
    %80 = arith.addf %77, %79 : vector<16x32xf32>
    %cst_25 = arith.constant dense<0.000000e+00> : vector<24xf32>
    %81 = vector.multi_reduction <add>, %17, %cst_25 [1] : vector<24x48xf32> to vector<24xf32>
    %82 = vector.shape_cast %81 : vector<24xf32> to vector<24x1xf32>
    %cst_26 = arith.constant 4.800000e+01 : f32
    %83 = vector.broadcast %cst_26 : f32 to vector<24x1xf32>
    %84 = arith.divf %82, %83 : vector<24x1xf32>
    %85 = vector.broadcast %84 : vector<24x1xf32> to vector<24x48xf32>
    %86 = arith.subf %17, %85 : vector<24x48xf32>
    %87 = arith.mulf %86, %86 : vector<24x48xf32>
    %cst_27 = arith.constant dense<0.000000e+00> : vector<24xf32>
    %88 = vector.multi_reduction <add>, %87, %cst_27 [1] : vector<24x48xf32> to vector<24xf32>
    %89 = vector.shape_cast %88 : vector<24xf32> to vector<24x1xf32>
    %cst_28 = arith.constant 4.800000e+01 : f32
    %90 = vector.broadcast %cst_28 : f32 to vector<24x1xf32>
    %91 = arith.divf %89, %90 : vector<24x1xf32>
    %cst_29 = arith.constant 9.99999974E-6 : f32
    %92 = vector.broadcast %cst_29 : f32 to vector<24x1xf32>
    %93 = arith.addf %91, %92 : vector<24x1xf32>
    %94 = math.rsqrt %93 : vector<24x1xf32>
    %95 = vector.broadcast %94 : vector<24x1xf32> to vector<24x48xf32>
    %96 = arith.mulf %86, %95 : vector<24x48xf32>
    %c0_30 = arith.constant 0 : index
    %c0_31 = arith.constant 0 : index
    %97 = vector.load %arg7[%c0_30, %c0_31] : memref<1x48xf32, #tpu.memory_space<vmem>>, vector<1x48xf32>
    %98 = vector.broadcast %97 : vector<1x48xf32> to vector<24x48xf32>
    %99 = arith.mulf %96, %98 : vector<24x48xf32>
    %c0_32 = arith.constant 0 : index
    %c0_33 = arith.constant 0 : index
    %100 = vector.load %arg8[%c0_32, %c0_33] : memref<1x48xf32, #tpu.memory_space<vmem>>, vector<1x48xf32>
    %101 = vector.broadcast %100 : vector<1x48xf32> to vector<24x48xf32>
    %102 = arith.addf %99, %101 : vector<24x48xf32>
    %c0_34 = arith.constant 0 : index
    %c0_35 = arith.constant 0 : index
    %103 = vector.load %arg12[%c0_34, %c0_35] : memref<32x32xf32, #tpu.memory_space<vmem>>, vector<32x32xf32>
    %cst_36 = arith.constant dense<0.000000e+00> : vector<16x32xf32>
    %104 = tpu.matmul %80, %103, %cst_36 {dimension_numbers = #tpu.dot_dimension_numbers<[1], [0], [0], [1], [0, 0, 1, 1], [], []>} : vector<16x32xf32>, vector<32x32xf32>, vector<16x32xf32> -> vector<16x32xf32>
    %c0_37 = arith.constant 0 : index
    %c0_38 = arith.constant 0 : index
    %105 = vector.load %arg13[%c0_37, %c0_38] : memref<1x32xf32, #tpu.memory_space<vmem>>, vector<1x32xf32>
    %106 = vector.broadcast %105 : vector<1x32xf32> to vector<16x32xf32>
    %107 = arith.addf %104, %106 : vector<16x32xf32>
    %c0_39 = arith.constant 0 : index
    %c0_40 = arith.constant 0 : index
    %108 = vector.load %arg14[%c0_39, %c0_40] : memref<48x32xf32, #tpu.memory_space<vmem>>, vector<48x32xf32>
    %cst_41 = arith.constant dense<0.000000e+00> : vector<24x32xf32>
    %109 = tpu.matmul %102, %108, %cst_41 {dimension_numbers = #tpu.dot_dimension_numbers<[1], [0], [0], [1], [0, 0, 1, 1], [], []>} : vector<24x48xf32>, vector<48x32xf32>, vector<24x32xf32> -> vector<24x32xf32>
    %c0_42 = arith.constant 0 : index
    %c0_43 = arith.constant 0 : index
    %110 = vector.load %arg15[%c0_42, %c0_43] : memref<1x32xf32, #tpu.memory_space<vmem>>, vector<1x32xf32>
    %111 = vector.broadcast %110 : vector<1x32xf32> to vector<24x32xf32>
    %112 = arith.addf %109, %111 : vector<24x32xf32>
    %c0_44 = arith.constant 0 : index
    %c0_45 = arith.constant 0 : index
    %113 = vector.load %arg16[%c0_44, %c0_45] : memref<48x32xf32, #tpu.memory_space<vmem>>, vector<48x32xf32>
    %cst_46 = arith.constant dense<0.000000e+00> : vector<24x32xf32>
    %114 = tpu.matmul %102, %113, %cst_46 {dimension_numbers = #tpu.dot_dimension_numbers<[1], [0], [0], [1], [0, 0, 1, 1], [], []>} : vector<24x48xf32>, vector<48x32xf32>, vector<24x32xf32> -> vector<24x32xf32>
    %c0_47 = arith.constant 0 : index
    %c0_48 = arith.constant 0 : index
    %115 = vector.load %arg17[%c0_47, %c0_48] : memref<1x32xf32, #tpu.memory_space<vmem>>, vector<1x32xf32>
    %116 = vector.broadcast %115 : vector<1x32xf32> to vector<24x32xf32>
    %117 = arith.addf %114, %116 : vector<24x32xf32>
    %118 = vector.extract_strided_slice %107 {offsets = [0, 0], sizes = [16, 8], strides = [1, 1]} : vector<16x32xf32> to vector<16x8xf32>
    %cst_49 = arith.constant 0.594603539 : f32
    %119 = vector.broadcast %cst_49 : f32 to vector<16x8xf32>
    %120 = arith.mulf %118, %119 : vector<16x8xf32>
    %121 = vector.extract_strided_slice %112 {offsets = [0, 0], sizes = [24, 8], strides = [1, 1]} : vector<24x32xf32> to vector<24x8xf32>
    %cst_50 = arith.constant 0.594603539 : f32
    %122 = vector.broadcast %cst_50 : f32 to vector<24x8xf32>
    %123 = arith.mulf %121, %122 : vector<24x8xf32>
    "tpu.trace_start"() <{level = 10 : i32, message = "qd,kd->qk"}> : () -> ()
    %cst_51 = arith.constant dense<0.000000e+00> : vector<16x24xf32>
    %124 = tpu.matmul %120, %123, %cst_51 {dimension_numbers = #tpu.dot_dimension_numbers<[1], [1], [0], [0], [0, 0, 1, 0], [], []>} : vector<16x8xf32>, vector<24x8xf32>, vector<16x24xf32> -> vector<16x24xf32>
    %cst_52 = arith.constant -1.000000e+30 : f32
    "tpu.trace_stop"() : () -> ()
    %125 = vector.shape_cast %11 : vector<1x24xi1> to vector<1x24xi1>
    %126 = vector.broadcast %125 : vector<1x24xi1> to vector<16x24xi1>
    %127 = vector.broadcast %cst_52 : f32 to vector<16x24xf32>
    %128 = arith.select %126, %124, %127 : vector<16x24xi1>, vector<16x24xf32>
    %cst_53 = arith.constant dense<0xFF800000> : vector<16xf32>
    %129 = vector.multi_reduction <maximumf>, %128, %cst_53 [1] : vector<16x24xf32> to vector<16xf32>
    %130 = vector.shape_cast %129 : vector<16xf32> to vector<16x1xf32>
    %131 = vector.broadcast %130 : vector<16x1xf32> to vector<16x24xf32>
    %132 = arith.subf %128, %131 : vector<16x24xf32>
    %133 = math.exp %132 : vector<16x24xf32>
    %cst_54 = arith.constant dense<0.000000e+00> : vector<16xf32>
    %134 = vector.multi_reduction <add>, %133, %cst_54 [1] : vector<16x24xf32> to vector<16xf32>
    %135 = vector.shape_cast %134 : vector<16xf32> to vector<16x1xf32>
    %136 = tpu.reciprocal %135 {approx = true} : vector<16x1xf32> -> vector<16x1xf32>
    %137 = vector.broadcast %136 : vector<16x1xf32> to vector<16x24xf32>
    %138 = arith.mulf %133, %137 : vector<16x24xf32>
    %139 = vector.broadcast %8 : vector<16x1xf32> to vector<16x24xf32>
    %140 = arith.mulf %138, %139 : vector<16x24xf32>
    %c0_55 = arith.constant 0 : index
    %c0_56 = arith.constant 0 : index
    %c0_57 = arith.constant 0 : index
    %c0_58 = arith.constant 0 : index
    %141 = vector.load %arg27[%c0_55, %c0_56, %c0_57, %c0_58] : memref<1x4x16x24xf32, #tpu.memory_space<vmem>>, vector<1x1x16x24xf32>
    %142 = vector.shape_cast %141 : vector<1x1x16x24xf32> to vector<16x24xf32>
    %143 = vector.shape_cast %140 : vector<16x24xf32> to vector<1x1x16x24xf32>
    tpu.vector_store %arg27[%c0_55, %c0_56, %c0_57, %c0_58], %143 {strides = array<i32>} : memref<1x4x16x24xf32, #tpu.memory_space<vmem>>, vector<1x1x16x24xf32>,
    %144 = vector.extract_strided_slice %117 {offsets = [0, 0], sizes = [24, 8], strides = [1, 1]} : vector<24x32xf32> to vector<24x8xf32>
    %cst_59 = arith.constant dense<0.000000e+00> : vector<16x8xf32>
    %145 = tpu.matmul %138, %144, %cst_59 {dimension_numbers = #tpu.dot_dimension_numbers<[1], [0], [0], [1], [0, 0, 1, 1], [], []>} : vector<16x24xf32>, vector<24x8xf32>, vector<16x8xf32> -> vector<16x8xf32>
    %146 = vector.extract_strided_slice %107 {offsets = [0, 8], sizes = [16, 8], strides = [1, 1]} : vector<16x32xf32> to vector<16x8xf32>
    %cst_60 = arith.constant 0.594603539 : f32
    %147 = vector.broadcast %cst_60 : f32 to vector<16x8xf32>
    %148 = arith.mulf %146, %147 : vector<16x8xf32>
    %149 = vector.extract_strided_slice %112 {offsets = [0, 8], sizes = [24, 8], strides = [1, 1]} : vector<24x32xf32> to vector<24x8xf32>
    %cst_61 = arith.constant 0.594603539 : f32
    %150 = vector.broadcast %cst_61 : f32 to vector<24x8xf32>
    %151 = arith.mulf %149, %150 : vector<24x8xf32>
    "tpu.trace_start"() <{level = 10 : i32, message = "qd,kd->qk"}> : () -> ()
    %cst_62 = arith.constant dense<0.000000e+00> : vector<16x24xf32>
    %152 = tpu.matmul %148, %151, %cst_62 {dimension_numbers = #tpu.dot_dimension_numbers<[1], [1], [0], [0], [0, 0, 1, 0], [], []>} : vector<16x8xf32>, vector<24x8xf32>, vector<16x24xf32> -> vector<16x24xf32>
    %cst_63 = arith.constant -1.000000e+30 : f32
    "tpu.trace_stop"() : () -> ()
    %153 = vector.shape_cast %11 : vector<1x24xi1> to vector<1x24xi1>
    %154 = vector.broadcast %153 : vector<1x24xi1> to vector<16x24xi1>
    %155 = vector.broadcast %cst_63 : f32 to vector<16x24xf32>
    %156 = arith.select %154, %152, %155 : vector<16x24xi1>, vector<16x24xf32>
    %cst_64 = arith.constant dense<0xFF800000> : vector<16xf32>
    %157 = vector.multi_reduction <maximumf>, %156, %cst_64 [1] : vector<16x24xf32> to vector<16xf32>
    %158 = vector.shape_cast %157 : vector<16xf32> to vector<16x1xf32>
    %159 = vector.broadcast %158 : vector<16x1xf32> to vector<16x24xf32>
    %160 = arith.subf %156, %159 : vector<16x24xf32>
    %161 = math.exp %160 : vector<16x24xf32>
    %cst_65 = arith.constant dense<0.000000e+00> : vector<16xf32>
    %162 = vector.multi_reduction <add>, %161, %cst_65 [1] : vector<16x24xf32> to vector<16xf32>
    %163 = vector.shape_cast %162 : vector<16xf32> to vector<16x1xf32>
    %164 = tpu.reciprocal %163 {approx = true} : vector<16x1xf32> -> vector<16x1xf32>
    %165 = vector.broadcast %164 : vector<16x1xf32> to vector<16x24xf32>
    %166 = arith.mulf %161, %165 : vector<16x24xf32>
    %167 = vector.broadcast %8 : vector<16x1xf32> to vector<16x24xf32>
    %168 = arith.mulf %166, %167 : vector<16x24xf32>
    %c0_66 = arith.constant 0 : index
    %c1 = arith.constant 1 : index
    %c0_67 = arith.constant 0 : index
    %c0_68 = arith.constant 0 : index
    %169 = vector.load %arg27[%c0_66, %c1, %c0_67, %c0_68] : memref<1x4x16x24xf32, #tpu.memory_space<vmem>>, vector<1x1x16x24xf32>
    %170 = vector.shape_cast %169 : vector<1x1x16x24xf32> to vector<16x24xf32>
    %171 = vector.shape_cast %168 : vector<16x24xf32> to vector<1x1x16x24xf32>
    tpu.vector_store %arg27[%c0_66, %c1, %c0_67, %c0_68], %171 {strides = array<i32>} : memref<1x4x16x24xf32, #tpu.memory_space<vmem>>, vector<1x1x16x24xf32>,
    %172 = vector.extract_strided_slice %117 {offsets = [0, 8], sizes = [24, 8], strides = [1, 1]} : vector<24x32xf32> to vector<24x8xf32>
    %cst_69 = arith.constant dense<0.000000e+00> : vector<16x8xf32>
    %173 = tpu.matmul %166, %172, %cst_69 {dimension_numbers = #tpu.dot_dimension_numbers<[1], [0], [0], [1], [0, 0, 1, 1], [], []>} : vector<16x24xf32>, vector<24x8xf32>, vector<16x8xf32> -> vector<16x8xf32>
    %174 = vector.extract_strided_slice %107 {offsets = [0, 16], sizes = [16, 8], strides = [1, 1]} : vector<16x32xf32> to vector<16x8xf32>
    %cst_70 = arith.constant 0.594603539 : f32
    %175 = vector.broadcast %cst_70 : f32 to vector<16x8xf32>
    %176 = arith.mulf %174, %175 : vector<16x8xf32>
    %177 = vector.extract_strided_slice %112 {offsets = [0, 16], sizes = [24, 8], strides = [1, 1]} : vector<24x32xf32> to vector<24x8xf32>
    %cst_71 = arith.constant 0.594603539 : f32
    %178 = vector.broadcast %cst_71 : f32 to vector<24x8xf32>
    %179 = arith.mulf %177, %178 : vector<24x8xf32>
    "tpu.trace_start"() <{level = 10 : i32, message = "qd,kd->qk"}> : () -> ()
    %cst_72 = arith.constant dense<0.000000e+00> : vector<16x24xf32>
    %180 = tpu.matmul %176, %179, %cst_72 {dimension_numbers = #tpu.dot_dimension_numbers<[1], [1], [0], [0], [0, 0, 1, 0], [], []>} : vector<16x8xf32>, vector<24x8xf32>, vector<16x24xf32> -> vector<16x24xf32>
    %cst_73 = arith.constant -1.000000e+30 : f32
    "tpu.trace_stop"() : () -> ()
    %181 = vector.shape_cast %11 : vector<1x24xi1> to vector<1x24xi1>
    %182 = vector.broadcast %181 : vector<1x24xi1> to vector<16x24xi1>
    %183 = vector.broadcast %cst_73 : f32 to vector<16x24xf32>
    %184 = arith.select %182, %180, %183 : vector<16x24xi1>, vector<16x24xf32>
    %cst_74 = arith.constant dense<0xFF800000> : vector<16xf32>
    %185 = vector.multi_reduction <maximumf>, %184, %cst_74 [1] : vector<16x24xf32> to vector<16xf32>
    %186 = vector.shape_cast %185 : vector<16xf32> to vector<16x1xf32>
    %187 = vector.broadcast %186 : vector<16x1xf32> to vector<16x24xf32>
    %188 = arith.subf %184, %187 : vector<16x24xf32>
    %189 = math.exp %188 : vector<16x24xf32>
    %cst_75 = arith.constant dense<0.000000e+00> : vector<16xf32>
    %190 = vector.multi_reduction <add>, %189, %cst_75 [1] : vector<16x24xf32> to vector<16xf32>
    %191 = vector.shape_cast %190 : vector<16xf32> to vector<16x1xf32>
    %192 = tpu.reciprocal %191 {approx = true} : vector<16x1xf32> -> vector<16x1xf32>
    %193 = vector.broadcast %192 : vector<16x1xf32> to vector<16x24xf32>
    %194 = arith.mulf %189, %193 : vector<16x24xf32>
    %195 = vector.broadcast %8 : vector<16x1xf32> to vector<16x24xf32>
    %196 = arith.mulf %194, %195 : vector<16x24xf32>
    %c0_76 = arith.constant 0 : index
    %c2 = arith.constant 2 : index
    %c0_77 = arith.constant 0 : index
    %c0_78 = arith.constant 0 : index
    %197 = vector.load %arg27[%c0_76, %c2, %c0_77, %c0_78] : memref<1x4x16x24xf32, #tpu.memory_space<vmem>>, vector<1x1x16x24xf32>
    %198 = vector.shape_cast %197 : vector<1x1x16x24xf32> to vector<16x24xf32>
    %199 = vector.shape_cast %196 : vector<16x24xf32> to vector<1x1x16x24xf32>
    tpu.vector_store %arg27[%c0_76, %c2, %c0_77, %c0_78], %199 {strides = array<i32>} : memref<1x4x16x24xf32, #tpu.memory_space<vmem>>, vector<1x1x16x24xf32>,
    %200 = vector.extract_strided_slice %117 {offsets = [0, 16], sizes = [24, 8], strides = [1, 1]} : vector<24x32xf32> to vector<24x8xf32>
    %cst_79 = arith.constant dense<0.000000e+00> : vector<16x8xf32>
    %201 = tpu.matmul %194, %200, %cst_79 {dimension_numbers = #tpu.dot_dimension_numbers<[1], [0], [0], [1], [0, 0, 1, 1], [], []>} : vector<16x24xf32>, vector<24x8xf32>, vector<16x8xf32> -> vector<16x8xf32>
    %202 = vector.extract_strided_slice %107 {offsets = [0, 24], sizes = [16, 8], strides = [1, 1]} : vector<16x32xf32> to vector<16x8xf32>
    %cst_80 = arith.constant 0.594603539 : f32
    %203 = vector.broadcast %cst_80 : f32 to vector<16x8xf32>
    %204 = arith.mulf %202, %203 : vector<16x8xf32>
    %205 = vector.extract_strided_slice %112 {offsets = [0, 24], sizes = [24, 8], strides = [1, 1]} : vector<24x32xf32> to vector<24x8xf32>
    %cst_81 = arith.constant 0.594603539 : f32
    %206 = vector.broadcast %cst_81 : f32 to vector<24x8xf32>
    %207 = arith.mulf %205, %206 : vector<24x8xf32>
    "tpu.trace_start"() <{level = 10 : i32, message = "qd,kd->qk"}> : () -> ()
    %cst_82 = arith.constant dense<0.000000e+00> : vector<16x24xf32>
    %208 = tpu.matmul %204, %207, %cst_82 {dimension_numbers = #tpu.dot_dimension_numbers<[1], [1], [0], [0], [0, 0, 1, 0], [], []>} : vector<16x8xf32>, vector<24x8xf32>, vector<16x24xf32> -> vector<16x24xf32>
    %cst_83 = arith.constant -1.000000e+30 : f32
    "tpu.trace_stop"() : () -> ()
    %209 = vector.shape_cast %11 : vector<1x24xi1> to vector<1x24xi1>
    %210 = vector.broadcast %209 : vector<1x24xi1> to vector<16x24xi1>
    %211 = vector.broadcast %cst_83 : f32 to vector<16x24xf32>
    %212 = arith.select %210, %208, %211 : vector<16x24xi1>, vector<16x24xf32>
    %cst_84 = arith.constant dense<0xFF800000> : vector<16xf32>
    %213 = vector.multi_reduction <maximumf>, %212, %cst_84 [1] : vector<16x24xf32> to vector<16xf32>
    %214 = vector.shape_cast %213 : vector<16xf32> to vector<16x1xf32>
    %215 = vector.broadcast %214 : vector<16x1xf32> to vector<16x24xf32>
    %216 = arith.subf %212, %215 : vector<16x24xf32>
    %217 = math.exp %216 : vector<16x24xf32>
    %cst_85 = arith.constant dense<0.000000e+00> : vector<16xf32>
    %218 = vector.multi_reduction <add>, %217, %cst_85 [1] : vector<16x24xf32> to vector<16xf32>
    %219 = vector.shape_cast %218 : vector<16xf32> to vector<16x1xf32>
    %220 = tpu.reciprocal %219 {approx = true} : vector<16x1xf32> -> vector<16x1xf32>
    %221 = vector.broadcast %220 : vector<16x1xf32> to vector<16x24xf32>
    %222 = arith.mulf %217, %221 : vector<16x24xf32>
    %223 = vector.broadcast %8 : vector<16x1xf32> to vector<16x24xf32>
    %224 = arith.mulf %222, %223 : vector<16x24xf32>
    %c0_86 = arith.constant 0 : index
    %c3 = arith.constant 3 : index
    %c0_87 = arith.constant 0 : index
    %c0_88 = arith.constant 0 : index
    %225 = vector.load %arg27[%c0_86, %c3, %c0_87, %c0_88] : memref<1x4x16x24xf32, #tpu.memory_space<vmem>>, vector<1x1x16x24xf32>
    %226 = vector.shape_cast %225 : vector<1x1x16x24xf32> to vector<16x24xf32>
    %227 = vector.shape_cast %224 : vector<16x24xf32> to vector<1x1x16x24xf32>
    tpu.vector_store %arg27[%c0_86, %c3, %c0_87, %c0_88], %227 {strides = array<i32>} : memref<1x4x16x24xf32, #tpu.memory_space<vmem>>, vector<1x1x16x24xf32>,
    %228 = vector.extract_strided_slice %117 {offsets = [0, 24], sizes = [24, 8], strides = [1, 1]} : vector<24x32xf32> to vector<24x8xf32>
    %cst_89 = arith.constant dense<0.000000e+00> : vector<16x8xf32>
    %229 = tpu.matmul %222, %228, %cst_89 {dimension_numbers = #tpu.dot_dimension_numbers<[1], [0], [0], [1], [0, 0, 1, 1], [], []>} : vector<16x24xf32>, vector<24x8xf32>, vector<16x8xf32> -> vector<16x8xf32>
    %230 = tpu.concatenate %145, %173, %201, %229 in 1 : vector<16x8xf32>, vector<16x8xf32>, vector<16x8xf32>, vector<16x8xf32> -> vector<16x32xf32>
    %c0_90 = arith.constant 0 : index
    %c0_91 = arith.constant 0 : index
    %231 = vector.load %arg18[%c0_90, %c0_91] : memref<32x64xf32, #tpu.memory_space<vmem>>, vector<32x64xf32>
    %cst_92 = arith.constant dense<0.000000e+00> : vector<16x64xf32>
    %232 = tpu.matmul %230, %231, %cst_92 {dimension_numbers = #tpu.dot_dimension_numbers<[1], [0], [0], [1], [0, 0, 1, 1], [], []>} : vector<16x32xf32>, vector<32x64xf32>, vector<16x64xf32> -> vector<16x64xf32>
    %c0_93 = arith.constant 0 : index
    %c0_94 = arith.constant 0 : index
    %233 = vector.load %arg19[%c0_93, %c0_94] : memref<1x64xf32, #tpu.memory_space<vmem>>, vector<1x64xf32>
    %234 = vector.broadcast %233 : vector<1x64xf32> to vector<16x64xf32>
    %235 = arith.addf %232, %234 : vector<16x64xf32>
    %236 = vector.extract_strided_slice %235 {offsets = [0, 0], sizes = [16, 32], strides = [1, 1]} : vector<16x64xf32> to vector<16x32xf32>
    %237 = vector.extract_strided_slice %235 {offsets = [0, 32], sizes = [16, 32], strides = [1, 1]} : vector<16x64xf32> to vector<16x32xf32>
    %238 = arith.mulf %33, %236 : vector<16x32xf32>
    %239 = arith.addf %238, %237 : vector<16x32xf32>
    %cst_95 = arith.constant dense<0.000000e+00> : vector<16xf32>
    %240 = vector.multi_reduction <add>, %239, %cst_95 [1] : vector<16x32xf32> to vector<16xf32>
    %241 = vector.shape_cast %240 : vector<16xf32> to vector<16x1xf32>
    %cst_96 = arith.constant 3.200000e+01 : f32
    %242 = vector.broadcast %cst_96 : f32 to vector<16x1xf32>
    %243 = arith.divf %241, %242 : vector<16x1xf32>
    %244 = vector.broadcast %243 : vector<16x1xf32> to vector<16x32xf32>
    %245 = arith.subf %239, %244 : vector<16x32xf32>
    %246 = arith.mulf %245, %245 : vector<16x32xf32>
    %cst_97 = arith.constant dense<0.000000e+00> : vector<16xf32>
    %247 = vector.multi_reduction <add>, %246, %cst_97 [1] : vector<16x32xf32> to vector<16xf32>
    %248 = vector.shape_cast %247 : vector<16xf32> to vector<16x1xf32>
    %cst_98 = arith.constant 3.200000e+01 : f32
    %249 = vector.broadcast %cst_98 : f32 to vector<16x1xf32>
    %250 = arith.divf %248, %249 : vector<16x1xf32>
    %cst_99 = arith.constant 9.99999974E-6 : f32
    %251 = vector.broadcast %cst_99 : f32 to vector<16x1xf32>
    %252 = arith.addf %250, %251 : vector<16x1xf32>
    %253 = math.rsqrt %252 : vector<16x1xf32>
    %254 = vector.broadcast %253 : vector<16x1xf32> to vector<16x32xf32>
    %255 = arith.mulf %245, %254 : vector<16x32xf32>
    %c0_100 = arith.constant 0 : index
    %c0_101 = arith.constant 0 : index
    %256 = vector.load %arg20[%c0_100, %c0_101] : memref<1x32xf32, #tpu.memory_space<vmem>>, vector<1x32xf32>
    %257 = vector.broadcast %256 : vector<1x32xf32> to vector<16x32xf32>
    %258 = arith.mulf %255, %257 : vector<16x32xf32>
    %c0_102 = arith.constant 0 : index
    %c0_103 = arith.constant 0 : index
    %259 = vector.load %arg21[%c0_102, %c0_103] : memref<1x32xf32, #tpu.memory_space<vmem>>, vector<1x32xf32>
    %260 = vector.broadcast %259 : vector<1x32xf32> to vector<16x32xf32>
    %261 = arith.addf %258, %260 : vector<16x32xf32>
    %c0_104 = arith.constant 0 : index
    %c0_105 = arith.constant 0 : index
    %262 = vector.load %arg22[%c0_104, %c0_105] : memref<32x128xf32, #tpu.memory_space<vmem>>, vector<32x128xf32>
    %cst_106 = arith.constant dense<0.000000e+00> : vector<16x128xf32>
    %263 = tpu.matmul %261, %262, %cst_106 {dimension_numbers = #tpu.dot_dimension_numbers<[1], [0], [0], [1], [0, 0, 1, 1], [], []>} : vector<16x32xf32>, vector<32x128xf32>, vector<16x128xf32> -> vector<16x128xf32>
    %c0_107 = arith.constant 0 : index
    %c0_108 = arith.constant 0 : index
    %264 = vector.load %arg23[%c0_107, %c0_108] : memref<1x128xf32, #tpu.memory_space<vmem>>, vector<1x128xf32>
    %265 = vector.broadcast %264 : vector<1x128xf32> to vector<16x128xf32>
    %266 = arith.addf %263, %265 : vector<16x128xf32>
    %cst_109 = arith.constant 5.000000e-01 : f32
    %267 = vector.broadcast %cst_109 : f32 to vector<16x128xf32>
    %268 = arith.mulf %267, %266 : vector<16x128xf32>
    %cst_110 = arith.constant 4.471500e-02 : f32
    %269 = vector.broadcast %cst_110 : f32 to vector<16x128xf32>
    %270 = arith.mulf %269, %266 : vector<16x128xf32>
    %271 = arith.mulf %270, %266 : vector<16x128xf32>
    %272 = arith.mulf %271, %266 : vector<16x128xf32>
    %273 = arith.addf %266, %272 : vector<16x128xf32>
    %cst_111 = arith.constant 0.797884583 : f32
    %274 = vector.broadcast %cst_111 : f32 to vector<16x128xf32>
    %275 = arith.mulf %274, %273 : vector<16x128xf32>
    %276 = math.tanh %275 : vector<16x128xf32>
    %cst_112 = arith.constant 1.000000e+00 : f32
    %277 = vector.broadcast %cst_112 : f32 to vector<16x128xf32>
    %278 = arith.addf %277, %276 : vector<16x128xf32>
    %279 = arith.mulf %268, %278 : vector<16x128xf32>
    %c0_113 = arith.constant 0 : index
    %c0_114 = arith.constant 0 : index
    %280 = vector.load %arg24[%c0_113, %c0_114] : memref<128x32xf32, #tpu.memory_space<vmem>>, vector<128x32xf32>
    %cst_115 = arith.constant dense<0.000000e+00> : vector<16x32xf32>
    %281 = tpu.matmul %279, %280, %cst_115 {dimension_numbers = #tpu.dot_dimension_numbers<[1], [0], [0], [1], [0, 0, 1, 1], [], []>} : vector<16x128xf32>, vector<128x32xf32>, vector<16x32xf32> -> vector<16x32xf32>
    %c0_116 = arith.constant 0 : index
    %c0_117 = arith.constant 0 : index
    %282 = vector.load %arg25[%c0_116, %c0_117] : memref<1x32xf32, #tpu.memory_space<vmem>>, vector<1x32xf32>
    %283 = vector.broadcast %282 : vector<1x32xf32> to vector<16x32xf32>
    %284 = arith.addf %281, %283 : vector<16x32xf32>
    %285 = vector.broadcast %8 : vector<16x1xf32> to vector<16x32xf32>
    %286 = arith.mulf %284, %285 : vector<16x32xf32>
    %287 = arith.addf %239, %286 : vector<16x32xf32>
    %c0_118 = arith.constant 0 : index
    %c0_119 = arith.constant 0 : index
    %c0_120 = arith.constant 0 : index
    %288 = vector.load %arg26[%c0_118, %c0_119, %c0_120] : memref<1x16x32xf32, #tpu.memory_space<vmem>>, vector<1x16x32xf32>
    %289 = vector.shape_cast %288 : vector<1x16x32xf32> to vector<16x32xf32>
    %290 = vector.shape_cast %287 : vector<16x32xf32> to vector<1x16x32xf32>
    tpu.vector_store %arg26[%c0_118, %c0_119, %c0_120], %290 {strides = array<i32>} : memref<1x16x32xf32, #tpu.memory_space<vmem>>, vector<1x16x32xf32>,
    return
  }
  func.func @transform_0(%arg0: i32, %arg1: memref<2xi32, #tpu.memory_space<smem>>, %arg2: memref<2xi32, #tpu.memory_space<smem>>) -> (i32, i32, i32) {
    %c0_i32 = arith.constant 0 : i32
    %c0_i32_0 = arith.constant 0 : i32
    %c0_i32_1 = arith.constant 0 : i32
    return %arg0, %c0_i32, %c0_i32_0 : i32, i32, i32
  }
  func.func @transform_1(%arg0: i32, %arg1: memref<2xi32, #tpu.memory_space<smem>>, %arg2: memref<2xi32, #tpu.memory_space<smem>>) -> (i32, i32, i32) {
    %c0_i32 = arith.constant 0 : i32
    %c0_i32_0 = arith.constant 0 : i32
    %c0_i32_1 = arith.constant 0 : i32
    return %arg0, %c0_i32, %c0_i32_0 : i32, i32, i32
  }
  func.func @transform_2(%arg0: i32, %arg1: memref<2xi32, #tpu.memory_space<smem>>, %arg2: memref<2xi32, #tpu.memory_space<smem>>) -> (i32, i32) {
    %c0_i32 = arith.constant 0 : i32
    %c0_i32_0 = arith.constant 0 : i32
    %c0_i32_1 = arith.constant 0 : i32
    return %c0_i32, %c0_i32_0 : i32, i32
  }
  func.func @transform_3(%arg0: i32, %arg1: memref<2xi32, #tpu.memory_space<smem>>, %arg2: memref<2xi32, #tpu.memory_space<smem>>) -> (i32, i32) {
    %c0_i32 = arith.constant 0 : i32
    %c0_i32_0 = arith.constant 0 : i32
    %c0_i32_1 = arith.constant 0 : i32
    return %c0_i32, %c0_i32_0 : i32, i32
  }
  func.func @transform_4(%arg0: i32, %arg1: memref<2xi32, #tpu.memory_space<smem>>, %arg2: memref<2xi32, #tpu.memory_space<smem>>) -> (i32, i32) {
    %c0_i32 = arith.constant 0 : i32
    %c0_i32_0 = arith.constant 0 : i32
    %c0_i32_1 = arith.constant 0 : i32
    return %c0_i32, %c0_i32_0 : i32, i32
  }
  func.func @transform_5(%arg0: i32, %arg1: memref<2xi32, #tpu.memory_space<smem>>, %arg2: memref<2xi32, #tpu.memory_space<smem>>) -> (i32, i32) {
    %c0_i32 = arith.constant 0 : i32
    %c0_i32_0 = arith.constant 0 : i32
    %c0_i32_1 = arith.constant 0 : i32
    return %c0_i32, %c0_i32_0 : i32, i32
  }
  func.func @transform_6(%arg0: i32, %arg1: memref<2xi32, #tpu.memory_space<smem>>, %arg2: memref<2xi32, #tpu.memory_space<smem>>) -> (i32, i32) {
    %c0_i32 = arith.constant 0 : i32
    %c0_i32_0 = arith.constant 0 : i32
    %c0_i32_1 = arith.constant 0 : i32
    return %c0_i32, %c0_i32_0 : i32, i32
  }
  func.func @transform_7(%arg0: i32, %arg1: memref<2xi32, #tpu.memory_space<smem>>, %arg2: memref<2xi32, #tpu.memory_space<smem>>) -> (i32, i32) {
    %c0_i32 = arith.constant 0 : i32
    %c0_i32_0 = arith.constant 0 : i32
    %c0_i32_1 = arith.constant 0 : i32
    return %c0_i32, %c0_i32_0 : i32, i32
  }
  func.func @transform_8(%arg0: i32, %arg1: memref<2xi32, #tpu.memory_space<smem>>, %arg2: memref<2xi32, #tpu.memory_space<smem>>) -> (i32, i32) {
    %c0_i32 = arith.constant 0 : i32
    %c0_i32_0 = arith.constant 0 : i32
    %c0_i32_1 = arith.constant 0 : i32
    return %c0_i32, %c0_i32_0 : i32, i32
  }
  func.func @transform_9(%arg0: i32, %arg1: memref<2xi32, #tpu.memory_space<smem>>, %arg2: memref<2xi32, #tpu.memory_space<smem>>) -> (i32, i32) {
    %c0_i32 = arith.constant 0 : i32
    %c0_i32_0 = arith.constant 0 : i32
    %c0_i32_1 = arith.constant 0 : i32
    return %c0_i32, %c0_i32_0 : i32, i32
  }
  func.func @transform_10(%arg0: i32, %arg1: memref<2xi32, #tpu.memory_space<smem>>, %arg2: memref<2xi32, #tpu.memory_space<smem>>) -> (i32, i32) {
    %c0_i32 = arith.constant 0 : i32
    %c0_i32_0 = arith.constant 0 : i32
    %c0_i32_1 = arith.constant 0 : i32
    return %c0_i32, %c0_i32_0 : i32, i32
  }
  func.func @transform_11(%arg0: i32, %arg1: memref<2xi32, #tpu.memory_space<smem>>, %arg2: memref<2xi32, #tpu.memory_space<smem>>) -> (i32, i32) {
    %c0_i32 = arith.constant 0 : i32
    %c0_i32_0 = arith.constant 0 : i32
    %c0_i32_1 = arith.constant 0 : i32
    return %c0_i32, %c0_i32_0 : i32, i32
  }
  func.func @transform_12(%arg0: i32, %arg1: memref<2xi32, #tpu.memory_space<smem>>, %arg2: memref<2xi32, #tpu.memory_space<smem>>) -> (i32, i32) {
    %c0_i32 = arith.constant 0 : i32
    %c0_i32_0 = arith.constant 0 : i32
    %c0_i32_1 = arith.constant 0 : i32
    return %c0_i32, %c0_i32_0 : i32, i32
  }
  func.func @transform_13(%arg0: i32, %arg1: memref<2xi32, #tpu.memory_space<smem>>, %arg2: memref<2xi32, #tpu.memory_space<smem>>) -> (i32, i32) {
    %c0_i32 = arith.constant 0 : i32
    %c0_i32_0 = arith.constant 0 : i32
    %c0_i32_1 = arith.constant 0 : i32
    return %c0_i32, %c0_i32_0 : i32, i32
  }
  func.func @transform_14(%arg0: i32, %arg1: memref<2xi32, #tpu.memory_space<smem>>, %arg2: memref<2xi32, #tpu.memory_space<smem>>) -> (i32, i32) {
    %c0_i32 = arith.constant 0 : i32
    %c0_i32_0 = arith.constant 0 : i32
    %c0_i32_1 = arith.constant 0 : i32
    return %c0_i32, %c0_i32_0 : i32, i32
  }
  func.func @transform_15(%arg0: i32, %arg1: memref<2xi32, #tpu.memory_space<smem>>, %arg2: memref<2xi32, #tpu.memory_space<smem>>) -> (i32, i32) {
    %c0_i32 = arith.constant 0 : i32
    %c0_i32_0 = arith.constant 0 : i32
    %c0_i32_1 = arith.constant 0 : i32
    return %c0_i32, %c0_i32_0 : i32, i32
  }
  func.func @transform_16(%arg0: i32, %arg1: memref<2xi32, #tpu.memory_space<smem>>, %arg2: memref<2xi32, #tpu.memory_space<smem>>) -> (i32, i32) {
    %c0_i32 = arith.constant 0 : i32
    %c0_i32_0 = arith.constant 0 : i32
    %c0_i32_1 = arith.constant 0 : i32
    return %c0_i32, %c0_i32_0 : i32, i32
  }
  func.func @transform_17(%arg0: i32, %arg1: memref<2xi32, #tpu.memory_space<smem>>, %arg2: memref<2xi32, #tpu.memory_space<smem>>) -> (i32, i32) {
    %c0_i32 = arith.constant 0 : i32
    %c0_i32_0 = arith.constant 0 : i32
    %c0_i32_1 = arith.constant 0 : i32
    return %c0_i32, %c0_i32_0 : i32, i32
  }
  func.func @transform_18(%arg0: i32, %arg1: memref<2xi32, #tpu.memory_space<smem>>, %arg2: memref<2xi32, #tpu.memory_space<smem>>) -> (i32, i32) {
    %c0_i32 = arith.constant 0 : i32
    %c0_i32_0 = arith.constant 0 : i32
    %c0_i32_1 = arith.constant 0 : i32
    return %c0_i32, %c0_i32_0 : i32, i32
  }
  func.func @transform_19(%arg0: i32, %arg1: memref<2xi32, #tpu.memory_space<smem>>, %arg2: memref<2xi32, #tpu.memory_space<smem>>) -> (i32, i32) {
    %c0_i32 = arith.constant 0 : i32
    %c0_i32_0 = arith.constant 0 : i32
    %c0_i32_1 = arith.constant 0 : i32
    return %c0_i32, %c0_i32_0 : i32, i32
  }
  func.func @transform_20(%arg0: i32, %arg1: memref<2xi32, #tpu.memory_space<smem>>, %arg2: memref<2xi32, #tpu.memory_space<smem>>) -> (i32, i32) {
    %c0_i32 = arith.constant 0 : i32
    %c0_i32_0 = arith.constant 0 : i32
    %c0_i32_1 = arith.constant 0 : i32
    return %c0_i32, %c0_i32_0 : i32, i32
  }
  func.func @transform_21(%arg0: i32, %arg1: memref<2xi32, #tpu.memory_space<smem>>, %arg2: memref<2xi32, #tpu.memory_space<smem>>) -> (i32, i32) {
    %c0_i32 = arith.constant 0 : i32
    %c0_i32_0 = arith.constant 0 : i32
    %c0_i32_1 = arith.constant 0 : i32
    return %c0_i32, %c0_i32_0 : i32, i32
  }
  func.func @transform_22(%arg0: i32, %arg1: memref<2xi32, #tpu.memory_space<smem>>, %arg2: memref<2xi32, #tpu.memory_space<smem>>) -> (i32, i32) {
    %c0_i32 = arith.constant 0 : i32
    %c0_i32_0 = arith.constant 0 : i32
    %c0_i32_1 = arith.constant 0 : i32
    return %c0_i32, %c0_i32_0 : i32, i32
  }
  func.func @transform_23(%arg0: i32, %arg1: memref<2xi32, #tpu.memory_space<smem>>, %arg2: memref<2xi32, #tpu.memory_space<smem>>) -> (i32, i32, i32) {
    %c0_i32 = arith.constant 0 : i32
    %c0_i32_0 = arith.constant 0 : i32
    %c0_i32_1 = arith.constant 0 : i32
    return %arg0, %c0_i32, %c0_i32_0 : i32, i32, i32
  }
  func.func @transform_24(%arg0: i32, %arg1: memref<2xi32, #tpu.memory_space<smem>>, %arg2: memref<2xi32, #tpu.memory_space<smem>>) -> (i32, i32, i32, i32) {
    %c0_i32 = arith.constant 0 : i32
    %c0_i32_0 = arith.constant 0 : i32
    %c0_i32_1 = arith.constant 0 : i32
    %c0_i32_2 = arith.constant 0 : i32
    return %arg0, %c0_i32, %c0_i32_0, %c0_i32_1 : i32, i32, i32, i32
  }
}

</mosaic_0001>

<bundles_post_ra>
// kernel: transformer_decoder_forward.1
= control target key start
LH: loop header
LB: loop body
LE: loop exit
PB: predicated region body
PF: predicated region fallthrough
CT: control target
= control target key end

     0   :  { %s6083_s0 = inlined_call_operand.hbm [shape: s32[2], index: 0, kind: input, shape index: {}]   ;;  %s6084_s2 = inlined_call_operand.hbm [shape: f32[2,16,32], index: 2, kind: input, shape index: {}]   ;;  %s6085_s3 = inlined_call_operand.hbm [shape: f32[2,24,48], index: 3, kind: input, shape index: {}]   ;;  %s6086_s4 = inlined_call_operand.hbm [shape: f32[1,32], index: 4, kind: input, shape index: {}]   ;;  %s6087_s5 = inlined_call_operand.hbm [shape: f32[1,32], index: 5, kind: input, shape index: {}]   ;;  %s6088_s6 = inlined_call_operand.hbm [shape: f32[1,48], index: 6, kind: input, shape index: {}]   ;;  %s6089_s7 = inlined_call_operand.hbm [shape: f32[1,48], index: 7, kind: input, shape index: {}]   ;;  %s6090_s8 = inlined_call_operand.hbm [shape: f32[3,32], index: 8, kind: input, shape index: {}]   ;;  %s6091_s9 = inlined_call_operand.hbm [shape: f32[1,32], index: 9, kind: input, shape index: {}]   ;;  %s6092_s10 = inlined_call_operand.hbm [shape: f32[1,32], index: 10, kind: input, shape index: {}]   ;;  %s6093_s11 = inlined_call_operand.hbm [shape: f32[32,32], index: 11, kind: input, shape index: {}]   ;;  %s6094_s12 = inlined_call_operand.hbm [shape: f32[1,32], index: 12, kind: input, shape index: {}]   ;;  %s6095_s13 = inlined_call_operand.hbm [shape: f32[48,32], index: 13, kind: input, shape index: {}]   ;;  %s6096_s14 = inlined_call_operand.hbm [shape: f32[1,32], index: 14, kind: input, shape index: {}]   ;;  %s6097_s15 = inlined_call_operand.hbm [shape: f32[48,32], index: 15, kind: input, shape index: {}]   ;;  %s6098_s16 = inlined_call_operand.hbm [shape: f32[1,32], index: 16, kind: input, shape index: {}]   ;;  %s6099_s17 = inlined_call_operand.hbm [shape: f32[32,64], index: 17, kind: input, shape index: {}]   ;;  %s6100_s18 = inlined_call_operand.hbm [shape: f32[1,64], index: 18, kind: input, shape index: {}]   ;;  %s6101_s19 = inlined_call_operand.hbm [shape: f32[1,32], index: 19, kind: input, shape index: {}]   ;;  %s6102_s20 = inlined_call_operand.hbm [shape: f32[1,32], index: 20, kind: input, shape index: {}]   ;;  %s6103_s21 = inlined_call_operand.hbm [shape: f32[32,128], index: 21, kind: input, shape index: {}]   ;;  %s6104_s22 = inlined_call_operand.hbm [shape: f32[1,128], index: 22, kind: input, shape index: {}]   ;;  %s6105_s23 = inlined_call_operand.hbm [shape: f32[128,32], index: 23, kind: input, shape index: {}]   ;;  %s6106_s24 = inlined_call_operand.hbm [shape: f32[1,32], index: 24, kind: input, shape index: {}]   ;;  %s6107_s25 = inlined_call_operand.hbm [shape: f32[2,16,32], index: 25, kind: output, shape index: {0}]   ;;  %s6108_s26 = inlined_call_operand.hbm [shape: f32[2,4,16,24], index: 26, kind: output, shape index: {1}]   ;;  %s6109_s1 = inlined_call_operand.hbm [shape: s32[2], index: 1, kind: input, shape index: {}]  }
   0x1   :  { %6146 = sst [smem:[#allocation66_spill]] %s6083_s0 }
   0x2   :  { %6147 = sst [smem:[#allocation67_spill]] %s6084_s2 }
   0x3   :  { %6148 = sst [smem:[#allocation68_spill]] %s6085_s3 }
   0x4   :  { %6149 = sst [smem:[#allocation69_spill]] %s6086_s4 }
   0x5   :  { %6150 = sst [smem:[#allocation70_spill]] %s6087_s5 }
   0x6   :  { %6151 = sst [smem:[#allocation71_spill]] %s6088_s6 }
   0x7   :  { %6152 = sst [smem:[#allocation72_spill]] %s6089_s7 }
   0x8   :  { %6153 = sst [smem:[#allocation73_spill]] %s6090_s8  ;;  %s6168_s8 = sld [smem:[#allocation66_spill]] }
   0x9   :  { %6154 = sst [smem:[#allocation74_spill]] %s6091_s9 }
   0xa   :  { %6155 = sst [smem:[#allocation75_spill]] %s6092_s10 }
   0xb   :  { %6156 = sst [smem:[#allocation76_spill]] %s6093_s11 }
   0xc   :  { %6157 = sst [smem:[#allocation77_spill]] %s6094_s12 }
   0xd   :  { %6158 = sst [smem:[#allocation78_spill]] %s6095_s13 }
   0xe   :  { %6159 = sst [smem:[#allocation79_spill]] %s6096_s14 }
   0xf   :  { %6160 = sst [smem:[#allocation80_spill]] %s6097_s15 }
  0x10   :  { %6161 = sst [smem:[#allocation81_spill]] %s6098_s16 }
  0x11   :  { %6162 = sst [smem:[#allocation82_spill]] %s6099_s17 }
  0x12   :  { %6163 = sst [smem:[#allocation83_spill]] %s6100_s18 }
  0x13   :  { %6164 = sst [smem:[#allocation84_spill]] %s6101_s19 }
  0x14   :  { %6165 = sst [smem:[#allocation85_spill]] %s6102_s20  ;;  %s4043_s20 = scalar_lea.hbm %s6168_s8, 16 }
  0x15   :  { %6166 = sst [smem:[#allocation86_spill]] %s6107_s25  ;;  %p4044_p0 = scmp.ne.s32.totalorder %s6168_s8, %s4043_s20 }
  0x16   :  { %6167 = sst [smem:[#allocation87_spill]] %s6108_s26  ;;  %p4047_p1 = scmp.lt.u32.totalorder %s4043_s20, %s6168_s8 }
  0x18   :  { %p4049_p2 = pnand %p4047_p1, %p4044_p0 }
  0x1a   :  { %4052 = shalt.err (!%p4049_p2)  }
  0x1b   :  { %s4861_s0 = smov [#allocation3]   ;;  %s4053_s11 = scalar_lea.hbm %s6109_s1, 16 }
  0x1c   :  { %33 = dma.hbm_to_smem %s6168_s8, 16, %s4861_s0, [#allocation2] }
  0x1d   :  { %p4054_p3 = scmp.ne.s32.totalorder %s6109_s1, %s4053_s11  ;;  %p4057_p4 = scmp.lt.u32.totalorder %s4053_s11, %s6109_s1 }
  0x1f   :  { %p4059_p5 = pnand %p4057_p4, %p4054_p3 }
  0x21   :  { %4062 = shalt.err (!%p4059_p5)  }
  0x22   :  { %s4862_s20 = smov [#allocation4]  }
  0x23   :  { %35 = dma.hbm_to_smem %s6109_s1, 16, %s4862_s20, [#allocation2] }
  0x24   :  { %4783 = dma.done.wait [#allocation2], 32 }
  0x25   :  { %4784 = vsyncadd [#allocation2], 4294967264 }
  0x26   :  { %37 = sfence }
  0x27   :  { %38 = vsyncpa [#allocation6], 0 }
  0x28   :  { %40 = vsyncpa [#allocation6 + $0x1], 0 }
  0x29   :  { %41 = vsyncpa [#allocation9], 0 }
  0x2a   :  { %43 = vsyncpa [#allocation9 + $0x1], 0 }
  0x2b   :  { %44 = vsyncpa [#allocation12], 0 }
  0x2c   :  { %45 = vsyncpa [#allocation15], 0 }
  0x2d   :  { %46 = vsyncpa [#allocation18], 0 }
  0x2e   :  { %47 = vsyncpa [#allocation21], 0 }
  0x2f   :  { %48 = vsyncpa [#allocation24], 0 }
  0x30   :  { %49 = vsyncpa [#allocation27], 0 }
  0x31   :  { %50 = vsyncpa [#allocation30], 0 }
  0x32   :  { %51 = vsyncpa [#allocation33], 0 }
  0x33   :  { %52 = vsyncpa [#allocation36], 0 }
  0x34   :  { %53 = vsyncpa [#allocation39], 0 }
  0x35   :  { %54 = vsyncpa [#allocation7], 0 }
  0x36   :  { %56 = vsyncpa [#allocation7 + $0x1], 0 }
  0x37   :  { %57 = vsyncpa [#allocation43], 0  ;;  %s5060_s1 = smov 0   ;;  %s5062_s8 = smov 0  }
  0x38   :  { %s5064_s5 = smov 0   ;;  %s5066_s29 = smov 0  }
  0x39 LB: > { %6169 = sst [smem:[#allocation60_spill]] %s4847_s1  ;;  %s4863_s0 = smov [#allocation10]   ;;  %s4859_s29 = sphi %s5066_s29, %s5530_s29   ;;  %s4855_s5 = sphi %s5064_s5, %s6251_s5   ;;  %s4851_s8 = sphi %s5062_s8, %s6250_s8   ;;  %s4847_s1 = sphi %s5060_s1, %s6247_s1  }
  0x3a   : > { %6170 = sst [smem:[#allocation61_spill]] %s4851_s8  ;;  %s626_s10 = sshll.u32 %s4863_s0, 4  ;;  %s5086_s10 = int_to_ptr.vmem [resolvable:$true] %s626_s10 }
  0x3b   : > { %6171 = sst [smem:[#allocation62_spill]] %s4855_s5  ;;  %s5081_s30 = sadd.s32 4294967295, %s4859_s29  }
  0x3c   : > { %6172 = sst [smem:[#allocation63_spill]] %s4859_s29  ;;  %p3169_p6 = scmp.ge.s32.totalorder %s4859_s29, 1 }
  0x3d   : > { %6173 = sst [smem:[#allocation64_spill]] %s5081_s30  ;;  %p6131_p7 = scmp.eq.s32.totalorder %s5081_s30, 0 }
  0x3e   : > { %p613_p8 = scmp.lt.s32.totalorder %s4859_s29, 3  ;;  %s4864_s6 = smov [#allocation11]  }
  0x3f   : > { %s637_s11 = sshll.u32 %s4864_s6, 4  ;;  %s4865_s7 = smov [#allocation14]   ;;  %s5095_s11 = int_to_ptr.vmem [resolvable:$true] %s637_s11 }
  0x40   : > { %p5088_p9 = pnand %p3169_p6, %p613_p8  ;;  %s659_s2 = sshll.u32 %s4865_s7, 4  ;;  %s5103_s2 = int_to_ptr.vmem [resolvable:$true] %s659_s2 }
  0x41   : > { %s4866_s4 = smov [#allocation17]   ;;  %s6177_s0 = sld [smem:[#allocation69_spill]] }
  0x42   : > { %s6174_s3 = scalar_select %p5088_p9, 1, 0 }
  0x43   : > { %p3771_p11 = pneg %p5088_p9  ;;  %s5105_s20 = sshll.u32 %s4866_s4, 4  ;;  %s682_s20 = int_to_ptr.vmem [resolvable:$true] %s5105_s20 }
  0x44   : > { %6175 = sst [smem:[#allocation65_spill]] %s6174_s3 }
  0x45   : > { %p5099_p12 = pnand %p3771_p11, %p6131_p7 }
  0x47   : > { %s4063_s25 = scalar_lea.hbm %s6177_s0, 16  ;;  %p5115_p0 = pneg %p5099_p12 }
  0x48   : > { %p4064_p13 = scmp.ne.s32.totalorder %s6177_s0, %s4063_s25  ;;  %p4070_p3 = scmp.lt.u32.totalorder %s4063_s25, %s6177_s0 }
  0x4a   : > { %p4066_p1 = pnand %p5115_p0, %p4064_p13 }
  0x4c   : > { %p4067_p2 = pneg %p4066_p1 }
  0x4e   : > { %p4072_p4 = pnand %p4070_p3, %p4067_p2 }
  0x50   : > { %4075 = shalt.err (!%p4072_p4)
}
  0x51   : > { %s4076_s26 = scalar_lea.vmem %s5086_s10, 16  ;;  %s4083_s28 = scalar_lea.vmem %s5086_s10, 32 }
  0x52   : > { %p4077_p5 = scmp.ne.s32.totalorder %s5086_s10, %s4076_s26  ;;  %p4084_p11 = scmp.lt.s32.totalorder %s5086_s10, %s5086_s10 }
  0x53   : > { %p4085_p13 = scmp.lt.s32.totalorder %s4083_s28, %s4076_s26 }
  0x54   : > { %p4079_p6 = pnand %p4077_p5, %p5115_p0 }
  0x55   : > { %p4086_p1 = por %p4085_p13, %p4084_p11 }
  0x56   : > { %p4080_p8 = pneg %p4079_p6 }
  0x58   : > { %p4087_p10 = pnand %p4086_p1, %p4080_p8 }
  0x5a   : > { %4090 = shalt.err (!%p4087_p10)
}
  0x5b   : > { %3774 = dma.hbm_to_vmem [thread:$0]  (!%p5099_p12), %s6177_s0, 16, %s5086_s10, [#allocation9]  }
  0x5c   : > { %s6179_s4 = sld [smem:[#allocation70_spill]] }
  0x62   : > { %s4091_s30 = scalar_lea.hbm %s6179_s4, 16 }
  0x63   : > { %p4092_p2 = scmp.ne.s32.totalorder %s6179_s4, %s4091_s30  ;;  %p4098_p10 = scmp.lt.u32.totalorder %s4091_s30, %s6179_s4 }
  0x65   : > { %p4094_p3 = pnand %p4092_p2, %p5115_p0 }
  0x67   : > { %p4095_p4 = pneg %p4094_p3 }
  0x69   : > { %p4100_p5 = pnand %p4098_p10, %p4095_p4 }
  0x6b   : > { %4103 = shalt.err (!%p4100_p5)
}
  0x6c   : > { %s4104_s10 = scalar_lea.vmem %s5095_s11, 16  ;;  %s4111_s1 = scalar_lea.vmem %s5095_s11, 32 }
  0x6d   : > { %p4105_p6 = scmp.ne.s32.totalorder %s5095_s11, %s4104_s10  ;;  %p4112_p13 = scmp.lt.s32.totalorder %s5095_s11, %s5095_s11 }
  0x6e   : > { %p4113_p1 = scmp.lt.s32.totalorder %s4111_s1, %s4104_s10 }
  0x6f   : > { %p4107_p8 = pnand %p4105_p6, %p5115_p0 }
  0x70   : > { %p4114_p2 = por %p4113_p1, %p4112_p13 }
  0x71   : > { %p4108_p11 = pneg %p4107_p8 }
  0x73   : > { %p4115_p3 = pnand %p4114_p2, %p4108_p11 }
  0x75   : > { %4118 = shalt.err (!%p4115_p3)
}
  0x76   : > { %3777 = dma.hbm_to_vmem [thread:$0]  (!%p5099_p12), %s6179_s4, 16, %s5095_s11, [#allocation12]  }
  0x77   : > { %s6180_s9 = sld [smem:[#allocation72_spill]] }
  0x7d   : > { %s4119_s6 = scalar_lea.hbm %s6180_s9, 16 }
  0x7e   : > { %p4120_p4 = scmp.ne.s32.totalorder %s6180_s9, %s4119_s6  ;;  %p4126_p6 = scmp.lt.u32.totalorder %s4119_s6, %s6180_s9 }
  0x80   : > { %p4122_p10 = pnand %p4120_p4, %p5115_p0 }
  0x82   : > { %p4123_p5 = pneg %p4122_p10 }
  0x84   : > { %p4128_p8 = pnand %p4126_p6, %p4123_p5 }
  0x86   : > { %4131 = shalt.err (!%p4128_p8)
}
  0x87   : > { %s4132_s11 = scalar_lea.vmem %s5103_s2, 16  ;;  %s4139_s8 = scalar_lea.vmem %s5103_s2, 32 }
  0x88   : > { %p4133_p11 = scmp.ne.s32.totalorder %s5103_s2, %s4132_s11  ;;  %p4140_p2 = scmp.lt.s32.totalorder %s5103_s2, %s5103_s2 }
  0x89   : > { %p4141_p3 = scmp.lt.s32.totalorder %s4139_s8, %s4132_s11 }
  0x8a   : > { %p4135_p13 = pnand %p4133_p11, %p5115_p0 }
  0x8b   : > { %p4142_p4 = por %p4141_p3, %p4140_p2 }
  0x8c   : > { %p4136_p1 = pneg %p4135_p13 }
  0x8e   : > { %p4143_p10 = pnand %p4142_p4, %p4136_p1 }
  0x90   : > { %4146 = shalt.err (!%p4143_p10)
}
  0x91   : > { %3783 = dma.hbm_to_vmem [thread:$0]  (!%p5099_p12), %s6180_s9, 16, %s5103_s2, [#allocation15]  }
  0x92   : > { %s4867_s3 = smov [#allocation20]   ;;  %s6181_s10 = sld [smem:[#allocation74_spill]] }
  0x93   : > { %s702_s6 = sshll.u32 %s4867_s3, 4  ;;  %s703_s6 = int_to_ptr.vmem [resolvable:$true] %s702_s6 }
  0x98   : > { %s4147_s1 = scalar_lea.hbm %s6181_s10, 16 }
  0x99   : > { %p4148_p5 = scmp.ne.s32.totalorder %s6181_s10, %s4147_s1  ;;  %p4154_p11 = scmp.lt.u32.totalorder %s4147_s1, %s6181_s10 }
  0x9b   : > { %p4150_p6 = pnand %p4148_p5, %p5115_p0 }
  0x9d   : > { %p4151_p8 = pneg %p4150_p6 }
  0x9f   : > { %p4156_p13 = pnand %p4154_p11, %p4151_p8 }
  0xa1   : > { %4159 = shalt.err (!%p4156_p13)
}
  0xa2   : > { %s4160_s2 = scalar_lea.vmem %s682_s20, 16  ;;  %s4167_s30 = scalar_lea.vmem %s682_s20, 32 }
  0xa3   : > { %p4161_p1 = scmp.ne.s32.totalorder %s682_s20, %s4160_s2  ;;  %p4168_p4 = scmp.lt.s32.totalorder %s682_s20, %s682_s20 }
  0xa4   : > { %p4169_p10 = scmp.lt.s32.totalorder %s4167_s30, %s4160_s2 }
  0xa5   : > { %p4163_p2 = pnand %p4161_p1, %p5115_p0 }
  0xa6   : > { %p4170_p7 = por %p4169_p10, %p4168_p4 }
  0xa7   : > { %p4164_p3 = pneg %p4163_p2 }
  0xa9   : > { %p4171_p9 = pnand %p4170_p7, %p4164_p3 }
  0xab   : > { %4174 = shalt.err (!%p4171_p9)
}
  0xac   : > { %3789 = dma.hbm_to_vmem [thread:$0]  (!%p5099_p12), %s6181_s10, 16, %s682_s20, [#allocation18]  }
  0xad   : > { %s6182_s26 = sld [smem:[#allocation76_spill]] }
  0xb3   : > { %s4175_s28 = scalar_lea.hbm %s6182_s26, 512 }
  0xb4   : > { %p4176_p5 = scmp.ne.s32.totalorder %s6182_s26, %s4175_s28  ;;  %p4182_p9 = scmp.lt.u32.totalorder %s4175_s28, %s6182_s26 }
  0xb6   : > { %p4178_p6 = pnand %p4176_p5, %p5115_p0 }
  0xb8   : > { %p4179_p7 = pneg %p4178_p6 }
  0xba   : > { %p4184_p8 = pnand %p4182_p9, %p4179_p7 }
  0xbc   : > { %4187 = shalt.err (!%p4184_p8)
}
  0xbd   : > { %s4188_s30 = scalar_lea.vmem %s703_s6, 512  ;;  %p4196_p2 = scmp.lt.s32.totalorder %s703_s6, %s703_s6 }
  0xbe   : > { %p4189_p11 = scmp.ne.s32.totalorder %s703_s6, %s4188_s30  ;;  %p4197_p3 = scmp.lt.s32.totalorder %s4188_s30, %s4188_s30 }
  0xc0   : > { %p4191_p13 = pnand %p4189_p11, %p5115_p0  ;;  %p4198_p4 = por %p4197_p3, %p4196_p2 }
  0xc2   : > { %p4192_p1 = pneg %p4191_p13 }
  0xc4   : > { %p4199_p10 = pnand %p4198_p4, %p4192_p1 }
  0xc6   : > { %4202 = shalt.err (!%p4199_p10)
}
  0xc7   : > { %s6138_s20 = smov 128   ;;  %s6140_s25 = smov 8  }
  0xc8   : > { %3795 = dma.hbm_to_vmem [thread:$0]  (!%p5099_p12), %s6182_s26, 512, %s703_s6, [#allocation21], %s6138_s20, %s6138_s20, %s6140_s25  }
  0xc9   : > { %s4870_s4 = smov [#allocation23]   ;;  %s4871_s1 = smov [#allocation26]  }
  0xca   : > { %s726_s28 = sshll.u32 %s4870_s4, 4  ;;  %s750_s11 = sshll.u32 %s4871_s1, 4  ;;  %s727_s28 = int_to_ptr.vmem [resolvable:$true] %s726_s28  ;;  %s751_s11 = int_to_ptr.vmem [resolvable:$true] %s750_s11 }
  0xcb   : > { %s6183_s13 = sld [smem:[#allocation78_spill]] }
  0xd1   : > { %s4203_s30 = scalar_lea.hbm %s6183_s13, 768 }
  0xd2   : > { %p4204_p5 = scmp.ne.s32.totalorder %s6183_s13, %s4203_s30  ;;  %p4210_p9 = scmp.lt.u32.totalorder %s4203_s30, %s6183_s13 }
  0xd4   : > { %p4206_p6 = pnand %p4204_p5, %p5115_p0 }
  0xd6   : > { %p4207_p7 = pneg %p4206_p6 }
  0xd8   : > { %p4212_p8 = pnand %p4210_p9, %p4207_p7 }
  0xda   : > { %4215 = shalt.err (!%p4212_p8)
}
  0xdb   : > { %s4216_s6 = scalar_lea.vmem %s727_s28, 768  ;;  %p4224_p2 = scmp.lt.s32.totalorder %s727_s28, %s727_s28 }
  0xdc   : > { %p4217_p11 = scmp.ne.s32.totalorder %s727_s28, %s4216_s6  ;;  %p4225_p3 = scmp.lt.s32.totalorder %s4216_s6, %s4216_s6 }
  0xde   : > { %p4219_p13 = pnand %p4217_p11, %p5115_p0  ;;  %p4226_p4 = por %p4225_p3, %p4224_p2 }
  0xe0   : > { %p4220_p1 = pneg %p4219_p13 }
  0xe2   : > { %p4227_p10 = pnand %p4226_p4, %p4220_p1 }
  0xe4   : > { %4230 = shalt.err (!%p4227_p10)
}
  0xe5   : > { %3801 = dma.hbm_to_vmem [thread:$0]  (!%p5099_p12), %s6183_s13, 768, %s727_s28, [#allocation24], %s6138_s20, %s6138_s20, %s6140_s25  }
  0xe6   : > { %s6184_s15 = sld [smem:[#allocation80_spill]] }
  0xec   : > { %s4231_s3 = scalar_lea.hbm %s6184_s15, 768 }
  0xed   : > { %p4232_p5 = scmp.ne.s32.totalorder %s6184_s15, %s4231_s3  ;;  %p4238_p9 = scmp.lt.u32.totalorder %s4231_s3, %s6184_s15 }
  0xef   : > { %p4234_p6 = pnand %p4232_p5, %p5115_p0 }
  0xf1   : > { %p4235_p7 = pneg %p4234_p6 }
  0xf3   : > { %p4240_p8 = pnand %p4238_p9, %p4235_p7 }
  0xf5   : > { %4243 = shalt.err (!%p4240_p8)
}
  0xf6   : > { %s4244_s2 = scalar_lea.vmem %s751_s11, 768  ;;  %p4252_p2 = scmp.lt.s32.totalorder %s751_s11, %s751_s11 }
  0xf7   : > { %p4245_p11 = scmp.ne.s32.totalorder %s751_s11, %s4244_s2  ;;  %p4253_p3 = scmp.lt.s32.totalorder %s4244_s2, %s4244_s2 }
  0xf9   : > { %p4247_p13 = pnand %p4245_p11, %p5115_p0  ;;  %p4254_p4 = por %p4253_p3, %p4252_p2 }
  0xfb   : > { %p4248_p1 = pneg %p4247_p13 }
  0xfd   : > { %p4255_p10 = pnand %p4254_p4, %p4248_p1 }
  0xff   : > { %4258 = shalt.err (!%p4255_p10)
}
 0x100   : > { %3807 = dma.hbm_to_vmem [thread:$0]  (!%p5099_p12), %s6184_s15, 768, %s751_s11, [#allocation27], %s6138_s20, %s6138_s20, %s6140_s25  }
 0x101   : > { %s4872_s6 = smov [#allocation29]   ;;  %s4873_s29 = smov [#allocation32]  }
 0x102   : > { %s774_s5 = sshll.u32 %s4872_s6, 4  ;;  %s799_s9 = sshll.u32 %s4873_s29, 4  ;;  %s775_s5 = int_to_ptr.vmem [resolvable:$true] %s774_s5  ;;  %s800_s9 = int_to_ptr.vmem [resolvable:$true] %s799_s9 }
 0x103   : > { %s6185_s17 = sld [smem:[#allocation82_spill]] }
 0x109   : > { %s4259_s0 = scalar_lea.hbm %s6185_s17, 512 }
 0x10a   : > { %p4260_p5 = scmp.ne.s32.totalorder %s6185_s17, %s4259_s0  ;;  %p4266_p9 = scmp.lt.u32.totalorder %s4259_s0, %s6185_s17 }
 0x10c   : > { %p4262_p6 = pnand %p4260_p5, %p5115_p0 }
 0x10e   : > { %p4263_p7 = pneg %p4262_p6 }
 0x110   : > { %p4268_p8 = pnand %p4266_p9, %p4263_p7 }
 0x112   : > { %4271 = shalt.err (!%p4268_p8)
}
 0x113   : > { %s4272_s11 = scalar_lea.vmem %s775_s5, 512  ;;  %p4280_p2 = scmp.lt.s32.totalorder %s775_s5, %s775_s5 }
 0x114   : > { %p4273_p11 = scmp.ne.s32.totalorder %s775_s5, %s4272_s11  ;;  %p4281_p3 = scmp.lt.s32.totalorder %s4272_s11, %s4272_s11 }
 0x116   : > { %p4275_p13 = pnand %p4273_p11, %p5115_p0  ;;  %p4282_p4 = por %p4281_p3, %p4280_p2 }
 0x118   : > { %p4276_p1 = pneg %p4275_p13 }
 0x11a   : > { %p4283_p10 = pnand %p4282_p4, %p4276_p1 }
 0x11c   : > { %4286 = shalt.err (!%p4283_p10)
}
 0x11d   : > { %3813 = dma.hbm_to_vmem [thread:$0]  (!%p5099_p12), %s6185_s17, 512, %s775_s5, [#allocation30], %s6138_s20, %s6138_s20, %s6140_s25  }
 0x11e   : > { %s6186_s19 = sld [smem:[#allocation84_spill]] }
 0x124   : > { %s4287_s10 = scalar_lea.hbm %s6186_s19, 16 }
 0x125   : > { %p4288_p5 = scmp.ne.s32.totalorder %s6186_s19, %s4287_s10  ;;  %p4294_p9 = scmp.lt.u32.totalorder %s4287_s10, %s6186_s19 }
 0x127   : > { %p4290_p6 = pnand %p4288_p5, %p5115_p0 }
 0x129   : > { %p4291_p7 = pneg %p4290_p6 }
 0x12b   : > { %p4296_p8 = pnand %p4294_p9, %p4291_p7 }
 0x12d   : > { %4299 = shalt.err (!%p4296_p8)
}
 0x12e   : > { %s4300_s8 = scalar_lea.vmem %s800_s9, 16  ;;  %s4307_s5 = scalar_lea.vmem %s800_s9, 32 }
 0x12f   : > { %p4301_p11 = scmp.ne.s32.totalorder %s800_s9, %s4300_s8  ;;  %p4308_p2 = scmp.lt.s32.totalorder %s800_s9, %s800_s9 }
 0x130   : > { %p4309_p3 = scmp.lt.s32.totalorder %s4307_s5, %s4300_s8 }
 0x131   : > { %p4303_p13 = pnand %p4301_p11, %p5115_p0 }
 0x132   : > { %p4310_p4 = por %p4309_p3, %p4308_p2 }
 0x133   : > { %p4304_p1 = pneg %p4303_p13 }
 0x135   : > { %p4311_p10 = pnand %p4310_p4, %p4304_p1 }
 0x137   : > { %4314 = shalt.err (!%p4311_p10)
}
 0x138   : > { %3819 = dma.hbm_to_vmem [thread:$0]  (!%p5099_p12), %s6186_s19, 16, %s800_s9, [#allocation33]  }
 0x139   : > { %s4874_s28 = smov [#allocation35]   ;;  %s4875_s6 = smov [#allocation38]  }
 0x13a   : > { %s820_s30 = sshll.u32 %s4874_s28, 4  ;;  %s844_s29 = sshll.u32 %s4875_s6, 4  ;;  %s821_s30 = int_to_ptr.vmem [resolvable:$true] %s820_s30  ;;  %s845_s29 = int_to_ptr.vmem [resolvable:$true] %s844_s29 }
 0x13b   : > { %s4315_s0 = scalar_lea.hbm %s6103_s21, 512 }
 0x13c   : > { %p4316_p5 = scmp.ne.s32.totalorder %s6103_s21, %s4315_s0  ;;  %p4322_p9 = scmp.lt.u32.totalorder %s4315_s0, %s6103_s21 }
 0x13e   : > { %p4318_p6 = pnand %p4316_p5, %p5115_p0 }
 0x140   : > { %p4319_p7 = pneg %p4318_p6 }
 0x142   : > { %p4324_p8 = pnand %p4322_p9, %p4319_p7 }
 0x144   : > { %4327 = shalt.err (!%p4324_p8)
}
 0x145   : > { %s4328_s9 = scalar_lea.vmem %s821_s30, 512  ;;  %p4336_p2 = scmp.lt.s32.totalorder %s821_s30, %s821_s30 }
 0x146   : > { %p4329_p11 = scmp.ne.s32.totalorder %s821_s30, %s4328_s9  ;;  %p4337_p3 = scmp.lt.s32.totalorder %s4328_s9, %s4328_s9 }
 0x148   : > { %p4331_p13 = pnand %p4329_p11, %p5115_p0  ;;  %p4338_p4 = por %p4337_p3, %p4336_p2 }
 0x14a   : > { %p4332_p1 = pneg %p4331_p13 }
 0x14c   : > { %p4339_p10 = pnand %p4338_p4, %p4332_p1 }
 0x14e   : > { %4342 = shalt.err (!%p4339_p10)
}
 0x14f   : > { %3825 = dma.hbm_to_vmem [thread:$0]  (!%p5099_p12), %s6103_s21, 512, %s821_s30, [#allocation36], %s6138_s20, %s6138_s20, %s6140_s25  }
 0x150   : > { %s4343_s10 = scalar_lea.hbm %s6105_s23, 2048 }
 0x151   : > { %p4344_p5 = scmp.ne.s32.totalorder %s6105_s23, %s4343_s10  ;;  %p4350_p9 = scmp.lt.u32.totalorder %s4343_s10, %s6105_s23 }
 0x153   : > { %p4346_p6 = pnand %p4344_p5, %p5115_p0 }
 0x155   : > { %p4347_p7 = pneg %p4346_p6 }
 0x157   : > { %p4352_p8 = pnand %p4350_p9, %p4347_p7 }
 0x159   : > { %4355 = shalt.err (!%p4352_p8)
}
 0x15a   : > { %s4356_s8 = scalar_lea.vmem %s845_s29, 2048  ;;  %p4364_p2 = scmp.lt.s32.totalorder %s845_s29, %s845_s29 }
 0x15b   : > { %p4357_p11 = scmp.ne.s32.totalorder %s845_s29, %s4356_s8  ;;  %p4365_p3 = scmp.lt.s32.totalorder %s4356_s8, %s4356_s8 }
 0x15d   : > { %p4359_p13 = pnand %p4357_p11, %p5115_p0  ;;  %p4366_p4 = por %p4365_p3, %p4364_p2 }
 0x15f   : > { %p4360_p1 = pneg %p4359_p13 }
 0x161   : > { %p4367_p10 = pnand %p4366_p4, %p4360_p1 }
 0x163   : > { %4370 = shalt.err (!%p4367_p10)
}
 0x164   : > { %3831 = dma.hbm_to_vmem [thread:$0]  (!%p5099_p12), %s6105_s23, 2048, %s845_s29, [#allocation39], %s6138_s20, %s6138_s20, %s6140_s25  }
 0x165   : > { %s4876_s9 = smov [#allocation13]   ;;  %s4877_s11 = smov [#allocation16]  }
 0x166   : > { %s648_s2 = sshll.u32 %s4876_s9, 4  ;;  %s670_s28 = sshll.u32 %s4877_s11, 4  ;;  %s649_s2 = int_to_ptr.vmem [resolvable:$true] %s648_s2  ;;  %s671_s28 = int_to_ptr.vmem [resolvable:$true] %s670_s28 }
 0x167   : > { %s6187_s3 = sld [smem:[#allocation71_spill]] }
 0x16d   : > { %s4371_s0 = scalar_lea.hbm %s6187_s3, 16 }
 0x16e   : > { %p4372_p5 = scmp.ne.s32.totalorder %s6187_s3, %s4371_s0  ;;  %p4378_p9 = scmp.lt.u32.totalorder %s4371_s0, %s6187_s3 }
 0x170   : > { %p4374_p6 = pnand %p4372_p5, %p5115_p0 }
 0x172   : > { %p4375_p7 = pneg %p4374_p6 }
 0x174   : > { %p4380_p8 = pnand %p4378_p9, %p4375_p7 }
 0x176   : > { %4383 = shalt.err (!%p4380_p8)
}
 0x177   : > { %s4384_s29 = scalar_lea.vmem %s649_s2, 16  ;;  %s4391_s5 = scalar_lea.vmem %s649_s2, 32 }
 0x178   : > { %p4385_p11 = scmp.ne.s32.totalorder %s649_s2, %s4384_s29  ;;  %p4392_p2 = scmp.lt.s32.totalorder %s649_s2, %s649_s2 }
 0x179   : > { %p4393_p3 = scmp.lt.s32.totalorder %s4391_s5, %s4384_s29 }
 0x17a   : > { %p4387_p13 = pnand %p4385_p11, %p5115_p0 }
 0x17b   : > { %p4394_p4 = por %p4393_p3, %p4392_p2 }
 0x17c   : > { %p4388_p1 = pneg %p4387_p13 }
 0x17e   : > { %p4395_p10 = pnand %p4394_p4, %p4388_p1 }
 0x180   : > { %4398 = shalt.err (!%p4395_p10)
}
 0x181   : > { %3780 = dma.hbm_to_vmem [thread:$0]  (!%p5099_p12), %s6187_s3, 16, %s649_s2, [#allocation12]  }
 0x182   : > { %s6188_s0 = sld [smem:[#allocation73_spill]] }
 0x188   : > { %s4399_s4 = scalar_lea.hbm %s6188_s0, 64 }
 0x189   : > { %p4400_p5 = scmp.ne.s32.totalorder %s6188_s0, %s4399_s4  ;;  %p4406_p9 = scmp.lt.u32.totalorder %s4399_s4, %s6188_s0 }
 0x18b   : > { %p4402_p6 = pnand %p4400_p5, %p5115_p0 }
 0x18d   : > { %p4403_p7 = pneg %p4402_p6 }
 0x18f   : > { %p4408_p8 = pnand %p4406_p9, %p4403_p7 }
 0x191   : > { %4411 = shalt.err (!%p4408_p8)
}
 0x192   : > { %s4412_s5 = scalar_lea.vmem %s671_s28, 64  ;;  %p4420_p2 = scmp.lt.s32.totalorder %s671_s28, %s671_s28 }
 0x193   : > { %p4413_p11 = scmp.ne.s32.totalorder %s671_s28, %s4412_s5  ;;  %p4421_p3 = scmp.lt.s32.totalorder %s4412_s5, %s4412_s5 }
 0x195   : > { %p4415_p13 = pnand %p4413_p11, %p5115_p0  ;;  %p4422_p4 = por %p4421_p3, %p4420_p2 }
 0x197   : > { %p4416_p1 = pneg %p4415_p13 }
 0x199   : > { %p4423_p10 = pnand %p4422_p4, %p4416_p1 }
 0x19b   : > { %4426 = shalt.err (!%p4423_p10)
}
 0x19c   : > { %3786 = dma.hbm_to_vmem [thread:$0]  (!%p5099_p12), %s6188_s0, 64, %s671_s28, [#allocation15]  }
 0x19d   : > { %s4878_s11 = smov [#allocation19]   ;;  %s4879_s10 = smov [#allocation22]  }
 0x19e   : > { %s692_s6 = sshll.u32 %s4878_s11, 4  ;;  %s716_s4 = sshll.u32 %s4879_s10, 4  ;;  %s693_s6 = int_to_ptr.vmem [resolvable:$true] %s692_s6  ;;  %s717_s4 = int_to_ptr.vmem [resolvable:$true] %s716_s4 }
 0x19f   : > { %s6189_s30 = sld [smem:[#allocation75_spill]] }
 0x1a5   : > { %s4427_s29 = scalar_lea.hbm %s6189_s30, 16 }
 0x1a6   : > { %p4428_p5 = scmp.ne.s32.totalorder %s6189_s30, %s4427_s29  ;;  %p4434_p9 = scmp.lt.u32.totalorder %s4427_s29, %s6189_s30 }
 0x1a8   : > { %p4430_p6 = pnand %p4428_p5, %p5115_p0 }
 0x1aa   : > { %p4431_p7 = pneg %p4430_p6 }
 0x1ac   : > { %p4436_p8 = pnand %p4434_p9, %p4431_p7 }
 0x1ae   : > { %4439 = shalt.err (!%p4436_p8)
}
 0x1af   : > { %s4440_s28 = scalar_lea.vmem %s693_s6, 16  ;;  %s4447_s9 = scalar_lea.vmem %s693_s6, 32 }
 0x1b0   : > { %p4441_p11 = scmp.ne.s32.totalorder %s693_s6, %s4440_s28  ;;  %p4448_p2 = scmp.lt.s32.totalorder %s693_s6, %s693_s6 }
 0x1b1   : > { %p4449_p3 = scmp.lt.s32.totalorder %s4447_s9, %s4440_s28 }
 0x1b2   : > { %p4443_p13 = pnand %p4441_p11, %p5115_p0 }
 0x1b3   : > { %p4450_p4 = por %p4449_p3, %p4448_p2 }
 0x1b4   : > { %p4444_p1 = pneg %p4443_p13 }
 0x1b6   : > { %p4451_p10 = pnand %p4450_p4, %p4444_p1 }
 0x1b8   : > { %4454 = shalt.err (!%p4451_p10)
}
 0x1b9   : > { %3792 = dma.hbm_to_vmem [thread:$0]  (!%p5099_p12), %s6189_s30, 16, %s693_s6, [#allocation18]  }
 0x1ba   : > { %s6190_s12 = sld [smem:[#allocation77_spill]] }
 0x1c0   : > { %s4455_s1 = scalar_lea.hbm %s6190_s12, 16 }
 0x1c1   : > { %p4456_p5 = scmp.ne.s32.totalorder %s6190_s12, %s4455_s1  ;;  %p4462_p9 = scmp.lt.u32.totalorder %s4455_s1, %s6190_s12 }
 0x1c3   : > { %p4458_p6 = pnand %p4456_p5, %p5115_p0 }
 0x1c5   : > { %p4459_p7 = pneg %p4458_p6 }
 0x1c7   : > { %p4464_p8 = pnand %p4462_p9, %p4459_p7 }
 0x1c9   : > { %4467 = shalt.err (!%p4464_p8)
}
 0x1ca   : > { %s4468_s28 = scalar_lea.vmem %s717_s4, 16  ;;  %s4475_s6 = scalar_lea.vmem %s717_s4, 32 }
 0x1cb   : > { %p4469_p11 = scmp.ne.s32.totalorder %s717_s4, %s4468_s28  ;;  %p4476_p2 = scmp.lt.s32.totalorder %s717_s4, %s717_s4 }
 0x1cc   : > { %p4477_p3 = scmp.lt.s32.totalorder %s4475_s6, %s4468_s28 }
 0x1cd   : > { %p4471_p13 = pnand %p4469_p11, %p5115_p0 }
 0x1ce   : > { %p4478_p4 = por %p4477_p3, %p4476_p2 }
 0x1cf   : > { %p4472_p1 = pneg %p4471_p13 }
 0x1d1   : > { %p4479_p10 = pnand %p4478_p4, %p4472_p1 }
 0x1d3   : > { %4482 = shalt.err (!%p4479_p10)
}
 0x1d4   : > { %3798 = dma.hbm_to_vmem [thread:$0]  (!%p5099_p12), %s6190_s12, 16, %s717_s4, [#allocation21]  }
 0x1d5   : > { %s4880_s11 = smov [#allocation25]   ;;  %s4881_s10 = smov [#allocation28]  }
 0x1d6   : > { %s740_s25 = sshll.u32 %s4880_s11, 4  ;;  %s764_s1 = sshll.u32 %s4881_s10, 4  ;;  %s741_s25 = int_to_ptr.vmem [resolvable:$true] %s740_s25  ;;  %s765_s1 = int_to_ptr.vmem [resolvable:$true] %s764_s1 }
 0x1d7   : > { %s6191_s14 = sld [smem:[#allocation79_spill]] }
 0x1dd   : > { %s4483_s5 = scalar_lea.hbm %s6191_s14, 16 }
 0x1de   : > { %p4484_p5 = scmp.ne.s32.totalorder %s6191_s14, %s4483_s5  ;;  %p4490_p9 = scmp.lt.u32.totalorder %s4483_s5, %s6191_s14 }
 0x1e0   : > { %p4486_p6 = pnand %p4484_p5, %p5115_p0 }
 0x1e2   : > { %p4487_p7 = pneg %p4486_p6 }
 0x1e4   : > { %p4492_p8 = pnand %p4490_p9, %p4487_p7 }
 0x1e6   : > { %4495 = shalt.err (!%p4492_p8)
}
 0x1e7   : > { %s4496_s4 = scalar_lea.vmem %s741_s25, 16  ;;  %s4503_s20 = scalar_lea.vmem %s741_s25, 32 }
 0x1e8   : > { %p4497_p11 = scmp.ne.s32.totalorder %s741_s25, %s4496_s4  ;;  %p4504_p2 = scmp.lt.s32.totalorder %s741_s25, %s741_s25 }
 0x1e9   : > { %p4505_p3 = scmp.lt.s32.totalorder %s4503_s20, %s4496_s4 }
 0x1ea   : > { %p4499_p13 = pnand %p4497_p11, %p5115_p0 }
 0x1eb   : > { %p4506_p4 = por %p4505_p3, %p4504_p2 }
 0x1ec   : > { %p4500_p1 = pneg %p4499_p13 }
 0x1ee   : > { %p4507_p10 = pnand %p4506_p4, %p4500_p1 }
 0x1f0   : > { %4510 = shalt.err (!%p4507_p10)
}
 0x1f1   : > { %3804 = dma.hbm_to_vmem [thread:$0]  (!%p5099_p12), %s6191_s14, 16, %s741_s25, [#allocation24]  }
 0x1f2   : > { %s6192_s16 = sld [smem:[#allocation81_spill]] }
 0x1f8   : > { %s4511_s5 = scalar_lea.hbm %s6192_s16, 16 }
 0x1f9   : > { %p4512_p5 = scmp.ne.s32.totalorder %s6192_s16, %s4511_s5  ;;  %p4518_p9 = scmp.lt.u32.totalorder %s4511_s5, %s6192_s16 }
 0x1fb   : > { %p4514_p6 = pnand %p4512_p5, %p5115_p0 }
 0x1fd   : > { %p4515_p7 = pneg %p4514_p6 }
 0x1ff   : > { %p4520_p8 = pnand %p4518_p9, %p4515_p7 }
 0x201   : > { %4523 = shalt.err (!%p4520_p8)
}
 0x202   : > { %s4524_s4 = scalar_lea.vmem %s765_s1, 16  ;;  %s4531_s25 = scalar_lea.vmem %s765_s1, 32 }
 0x203   : > { %p4525_p11 = scmp.ne.s32.totalorder %s765_s1, %s4524_s4  ;;  %p4532_p2 = scmp.lt.s32.totalorder %s765_s1, %s765_s1 }
 0x204   : > { %p4533_p3 = scmp.lt.s32.totalorder %s4531_s25, %s4524_s4 }
 0x205   : > { %p4527_p13 = pnand %p4525_p11, %p5115_p0 }
 0x206   : > { %p4534_p4 = por %p4533_p3, %p4532_p2 }
 0x207   : > { %p4528_p1 = pneg %p4527_p13 }
 0x209   : > { %p4535_p10 = pnand %p4534_p4, %p4528_p1 }
 0x20b   : > { %4538 = shalt.err (!%p4535_p10)
}
 0x20c   : > { %3810 = dma.hbm_to_vmem [thread:$0]  (!%p5099_p12), %s6192_s16, 16, %s765_s1, [#allocation27]  }
 0x20d   : > { %s4882_s10 = smov [#allocation31]   ;;  %s4883_s29 = smov [#allocation34]  }
 0x20e   : > { %s788_s8 = sshll.u32 %s4882_s10, 4  ;;  %s810_s5 = sshll.u32 %s4883_s29, 4  ;;  %s789_s8 = int_to_ptr.vmem [resolvable:$true] %s788_s8  ;;  %s811_s5 = int_to_ptr.vmem [resolvable:$true] %s810_s5 }
 0x20f   : > { %s6193_s18 = sld [smem:[#allocation83_spill]] }
 0x215   : > { %s4539_s6 = scalar_lea.hbm %s6193_s18, 16 }
 0x216   : > { %p4540_p5 = scmp.ne.s32.totalorder %s6193_s18, %s4539_s6  ;;  %p4546_p9 = scmp.lt.u32.totalorder %s4539_s6, %s6193_s18 }
 0x218   : > { %p4542_p6 = pnand %p4540_p5, %p5115_p0 }
 0x21a   : > { %p4543_p7 = pneg %p4542_p6 }
 0x21c   : > { %p4548_p8 = pnand %p4546_p9, %p4543_p7 }
 0x21e   : > { %4551 = shalt.err (!%p4548_p8)
}
 0x21f   : > { %s4552_s1 = scalar_lea.vmem %s789_s8, 16  ;;  %s4559_s11 = scalar_lea.vmem %s789_s8, 32 }
 0x220   : > { %p4553_p11 = scmp.ne.s32.totalorder %s789_s8, %s4552_s1  ;;  %p4560_p2 = scmp.lt.s32.totalorder %s789_s8, %s789_s8 }
 0x221   : > { %p4561_p3 = scmp.lt.s32.totalorder %s4559_s11, %s4552_s1 }
 0x222   : > { %p4555_p13 = pnand %p4553_p11, %p5115_p0 }
 0x223   : > { %p4562_p4 = por %p4561_p3, %p4560_p2 }
 0x224   : > { %p4556_p1 = pneg %p4555_p13 }
 0x226   : > { %p4563_p10 = pnand %p4562_p4, %p4556_p1 }
 0x228   : > { %4566 = shalt.err (!%p4563_p10)
}
 0x229   : > { %3816 = dma.hbm_to_vmem [thread:$0]  (!%p5099_p12), %s6193_s18, 16, %s789_s8, [#allocation30]  }
 0x22a   : > { %s6194_s6 = sld [smem:[#allocation85_spill]] }
 0x230   : > { %s4567_s9 = scalar_lea.hbm %s6194_s6, 16 }
 0x231   : > { %p4568_p5 = scmp.ne.s32.totalorder %s6194_s6, %s4567_s9  ;;  %p4574_p9 = scmp.lt.u32.totalorder %s4567_s9, %s6194_s6 }
 0x233   : > { %p4570_p6 = pnand %p4568_p5, %p5115_p0 }
 0x235   : > { %p4571_p7 = pneg %p4570_p6 }
 0x237   : > { %p4576_p8 = pnand %p4574_p9, %p4571_p7 }
 0x239   : > { %4579 = shalt.err (!%p4576_p8)
}
 0x23a   : > { %s4580_s11 = scalar_lea.vmem %s811_s5, 16  ;;  %s4587_s8 = scalar_lea.vmem %s811_s5, 32 }
 0x23b   : > { %p4581_p11 = scmp.ne.s32.totalorder %s811_s5, %s4580_s11  ;;  %p4588_p2 = scmp.lt.s32.totalorder %s811_s5, %s811_s5 }
 0x23c   : > { %p4589_p3 = scmp.lt.s32.totalorder %s4587_s8, %s4580_s11 }
 0x23d   : > { %p4583_p13 = pnand %p4581_p11, %p5115_p0 }
 0x23e   : > { %p4590_p4 = por %p4589_p3, %p4588_p2 }
 0x23f   : > { %p4584_p1 = pneg %p4583_p13 }
 0x241   : > { %p4591_p10 = pnand %p4590_p4, %p4584_p1 }
 0x243   : > { %4594 = shalt.err (!%p4591_p10)
}
 0x244   : > { %3822 = dma.hbm_to_vmem [thread:$0]  (!%p5099_p12), %s6194_s6, 16, %s811_s5, [#allocation33]  }
 0x245   : > { %s4884_s2 = smov [#allocation37]   ;;  %s4885_s9 = smov [#allocation40]  }
 0x246   : > { %s834_s28 = sshll.u32 %s4884_s2, 4  ;;  %s858_s4 = sshll.u32 %s4885_s9, 4  ;;  %s835_s28 = int_to_ptr.vmem [resolvable:$true] %s834_s28  ;;  %s859_s4 = int_to_ptr.vmem [resolvable:$true] %s858_s4 }
 0x247   : > { %s4595_s1 = scalar_lea.hbm %s6104_s22, 16 }
 0x248   : > { %p4596_p5 = scmp.ne.s32.totalorder %s6104_s22, %s4595_s1  ;;  %p4602_p9 = scmp.lt.u32.totalorder %s4595_s1, %s6104_s22 }
 0x24a   : > { %p4598_p6 = pnand %p4596_p5, %p5115_p0 }
 0x24c   : > { %p4599_p7 = pneg %p4598_p6 }
 0x24e   : > { %p4604_p8 = pnand %p4602_p9, %p4599_p7 }
 0x250   : > { %4607 = shalt.err (!%p4604_p8)
}
 0x251   : > { %s4608_s5 = scalar_lea.vmem %s835_s28, 16  ;;  %s4615_s29 = scalar_lea.vmem %s835_s28, 32 }
 0x252   : > { %p4609_p11 = scmp.ne.s32.totalorder %s835_s28, %s4608_s5  ;;  %p4616_p2 = scmp.lt.s32.totalorder %s835_s28, %s835_s28 }
 0x253   : > { %p4617_p3 = scmp.lt.s32.totalorder %s4615_s29, %s4608_s5 }
 0x254   : > { %p4611_p13 = pnand %p4609_p11, %p5115_p0 }
 0x255   : > { %p4618_p4 = por %p4617_p3, %p4616_p2 }
 0x256   : > { %p4612_p1 = pneg %p4611_p13 }
 0x258   : > { %p4619_p10 = pnand %p4618_p4, %p4612_p1 }
 0x25a   : > { %4622 = shalt.err (!%p4619_p10)
}
 0x25b   : > { %3828 = dma.hbm_to_vmem [thread:$0]  (!%p5099_p12), %s6104_s22, 16, %s835_s28, [#allocation36]  }
 0x25c   : > { %s4623_s20 = scalar_lea.hbm %s6106_s24, 16 }
 0x25d   : > { %p4624_p5 = scmp.ne.s32.totalorder %s6106_s24, %s4623_s20  ;;  %p4630_p9 = scmp.lt.u32.totalorder %s4623_s20, %s6106_s24 }
 0x25f   : > { %p4626_p6 = pnand %p4624_p5, %p5115_p0 }
 0x261   : > { %p4627_p7 = pneg %p4626_p6 }
 0x263   : > { %p4632_p8 = pnand %p4630_p9, %p4627_p7 }
 0x265   : > { %4635 = shalt.err (!%p4632_p8)
}
 0x266   : > { %s4636_s5 = scalar_lea.vmem %s859_s4, 16  ;;  %s4643_s28 = scalar_lea.vmem %s859_s4, 32 }
 0x267   : > { %p4637_p11 = scmp.ne.s32.totalorder %s859_s4, %s4636_s5  ;;  %p4644_p2 = scmp.lt.s32.totalorder %s859_s4, %s859_s4 }
 0x268   : > { %p4645_p3 = scmp.lt.s32.totalorder %s4643_s28, %s4636_s5 }
 0x269   : > { %p4639_p13 = pnand %p4637_p11, %p5115_p0 }
 0x26a   : > { %p4646_p4 = por %p4645_p3, %p4644_p2 }
 0x26b   : > { %p4640_p1 = pneg %p4639_p13 }
 0x26d   : > { %p4647_p10 = pnand %p4646_p4, %p4640_p1 }
 0x26f   : > { %4650 = shalt.err (!%p4647_p10)
}
 0x270   : > { %s6195_s9 = sld [smem:[#allocation63_spill]]  ;;  %s6196_s0 = sld [smem:[#allocation62_spill]] }
 0x271   : > { %s6197_s25 = sld [smem:[#allocation61_spill]]  ;;  %s6198_s7 = sld [smem:[#allocation60_spill]] }
 0x272   : > { %s6199_s20 = sld [smem:[#allocation64_spill]] }
 0x273   : > { %3834 = dma.hbm_to_vmem [thread:$0]  (!%p5099_p12), %s6106_s24, 16, %s859_s4, [#allocation39]  }
 0x276   : > { %s3168_s1 = sadd.s32 4294967294, %s6195_s9   ;;  %s5530_s29 = sadd.s32 1, %s6195_s9  }
 0x277   : > { %s70_s27 = sadd.s32 1, %s6196_s0  ;;  %s67_s11 = ssub.s32 %s6195_s9, %s5530_s29 }
 0x278   : > { %p77_p0 = scmp.ne.s32.totalorder %s6196_s0, %s6197_s25  ;;  %p68_p5 = scmp.eq.s32.totalorder %s67_s11, 0 }
 0x279   : > { %p78_p6 = scmp.eq.s32.totalorder %s6195_s9, 0  ;;  %p83_p7 = scmp.ne.s32.totalorder %s6197_s25, %s6198_s7 }
 0x27a   : > { %p574_p9 = scmp.eq.s32.totalorder %s6199_s20, 1  ;;  %p6200_p11 = scmp.eq.s32.totalorder %s6199_s20, 0 }
 0x27b   : > { %s5542_s8 = scalar_select %p68_p5, %s6196_s0, %s70_s27  }
 0x27c   : > { %p79_p8 = por %p78_p6, %p77_p0  ;;  %p5546_p13 = por %p6200_p11, %p83_p7 }
 0x27d   : > { %p5550_p12 = por %p574_p9, %p77_p0  ;;  %p580_p1 = scmp.eq.s32.totalorder %s3168_s1, 1 }
 0x27e   : > { %p3867_p2 = scmp.lt.s32.totalorder %s6195_s9, 2  ;;  %s5556_s5 = sand.u32 1, %s6196_s0  }
 0x27f   : > { %s6202_s10 = scalar_select %p5550_p12, 1, 0 }
 0x280   : > { %p5558_p3 = por %p580_p1, %p83_p7  ;;  %s3192_s2 = sshll.u32 %s5556_s5, 4 }
 0x281   : > { %s3283_s25 = sshll.u32 %s6195_s9, 8  ;;  %s6204_s27 = sld [smem:[#allocation67_spill]] }
 0x282   : > { %s6203_s28 = scalar_select %p5558_p3, 1, 0 }
 0x283   : > { %s873_s1 = scalar_lea.vmem [#allocation5], %s3192_s2  ;;  %p5569_p4 = pnand %p3867_p2, %p79_p8 }
 0x284   : > { %s880_s0 = sshll.u32 %s873_s1, 4  ;;  %s870_s12 = scalar_lea.sflag [#allocation6], %s5556_s5  ;;  %s5573_s0 = int_to_ptr.vmem [resolvable:$true] %s880_s0 }
 0x285   : > { %p4653_p0 = pneg %p5569_p4 }
 0x287   : > { %s5567_s11 = scalar_lea.hbm %s6204_s27, %s3283_s25  ;;  %s4656_s7 = scalar_lea.hbm %s6204_s27, 512 }
 0x288   : > { %s4651_s13 = scalar_lea.hbm %s5567_s11, 256  ;;  %p4657_p7 = scmp.lt.u32.totalorder %s5567_s11, %s6204_s27 }
 0x289   : > { %p4652_p10 = scmp.ne.s32.totalorder %s5567_s11, %s4651_s13  ;;  %p4658_p9 = scmp.lt.u32.totalorder %s4656_s7, %s4651_s13 }
 0x28a   : > { %p4660_p11 = scmp.lt.u32.totalorder %s4651_s13, %s5567_s11 }
 0x28b   : > { %p4654_p5 = pnand %p4653_p0, %p4652_p10  ;;  %p4659_p8 = por %p4658_p9, %p4657_p7 }
 0x28d   : > { %p4655_p6 = pneg %p4654_p5  ;;  %p4661_p1 = por %p4660_p11, %p4659_p8 }
 0x28f   : > { %p4662_p2 = pnand %p4661_p1, %p4655_p6 }
 0x291   : > { %4665 = shalt.err (!%p4662_p2)
}
 0x292   : > { %s4666_s6 = scalar_lea.vmem %s5573_s0, 256  ;;  %s4886_s2 = smov [#allocation5]  }
 0x293   : > { %p4667_p10 = scmp.ne.s32.totalorder %s5573_s0, %s4666_s6  ;;  %s4671_s25 = sshll.u32 %s4886_s2, 4  ;;  %s4672_s25 = int_to_ptr.vmem [resolvable:$false] %s4671_s25 }
 0x294   : > { %s4673_s20 = scalar_lea.vmem %s4672_s25, 512  ;;  %p4674_p12 = scmp.lt.s32.totalorder %s5573_s0, %s4672_s25 }
 0x295   : > { %p4669_p5 = pnand %p4667_p10, %p4653_p0  ;;  %p4675_p7 = scmp.lt.s32.totalorder %s4673_s20, %s4666_s6 }
 0x297   : > { %p4670_p3 = pneg %p4669_p5  ;;  %p4676_p9 = por %p4675_p7, %p4674_p12 }
 0x299   : > { %p4677_p8 = pnand %p4676_p9, %p4670_p3 }
 0x29b   : > { %4680 = shalt.err (!%p4677_p8)
}
 0x29c   : > { %s6206_s13 = smov 8   ;;  %s6207_s7 = smov 128  }
 0x29d   : > { %3838 = dma.hbm_to_vmem [thread:$0]  (!%p5569_p4), %s5567_s11, 256, %s5573_s0, %s870_s12, %s6207_s7, %s6207_s7, %s6206_s13  }
 0x29e   : > { %s3676_s1 = smul.u32 24, %s5556_s5  ;;  %s6208_s20 = sld [smem:[#allocation68_spill]] }
 0x29f   : > { %s3677_s2 = smul.u32 384, %s6195_s9  ;;  %s6209_s17 = sand.u32 1, %s6195_s9  }
 0x2a0   : > { %s894_s15 = scalar_lea.vmem [#allocation8], %s3676_s1  ;;  %s5618_s18 = scalar_lea.sflag [#allocation9], %s6209_s17 }
 0x2a1   : > { %s901_s16 = sshll.u32 %s894_s15, 4  ;;  %s5614_s16 = int_to_ptr.vmem [resolvable:$true] %s901_s16 }
 0x2a4   : > { %s5612_s14 = scalar_lea.hbm %s6208_s20, %s3677_s2  ;;  %s4686_s11 = scalar_lea.hbm %s6208_s20, 768 }
 0x2a5   : > { %s4681_s19 = scalar_lea.hbm %s5612_s14, 384  ;;  %p4687_p11 = scmp.lt.u32.totalorder %s5612_s14, %s6208_s20 }
 0x2a6   : > { %p4682_p12 = scmp.ne.s32.totalorder %s5612_s14, %s4681_s19  ;;  %p4688_p1 = scmp.lt.u32.totalorder %s4686_s11, %s4681_s19 }
 0x2a7   : > { %p4690_p10 = scmp.lt.u32.totalorder %s4681_s19, %s5612_s14 }
 0x2a8   : > { %p4684_p3 = pnand %p4682_p12, %p4653_p0  ;;  %p4689_p2 = por %p4688_p1, %p4687_p11 }
 0x2aa   : > { %p4685_p6 = pneg %p4684_p3  ;;  %p4691_p5 = por %p4690_p10, %p4689_p2 }
 0x2ac   : > { %p4692_p7 = pnand %p4691_p5, %p4685_p6 }
 0x2ae   : > { %4695 = shalt.err (!%p4692_p7)
}
 0x2af   : > { %s4696_s15 = scalar_lea.vmem %s5614_s16, 384  ;;  %s4887_s17 = smov [#allocation8]  }
 0x2b0   : > { %p4697_p9 = scmp.ne.s32.totalorder %s5614_s16, %s4696_s15  ;;  %s4701_s9 = sshll.u32 %s4887_s17, 4  ;;  %s4702_s9 = int_to_ptr.vmem [resolvable:$false] %s4701_s9 }
 0x2b1   : > { %s4703_s1 = scalar_lea.vmem %s4702_s9, 768  ;;  %p4704_p3 = scmp.lt.s32.totalorder %s5614_s16, %s4702_s9 }
 0x2b2   : > { %p4699_p8 = pnand %p4697_p9, %p4653_p0  ;;  %p4705_p11 = scmp.lt.s32.totalorder %s4703_s1, %s4696_s15 }
 0x2b4   : > { %p4700_p12 = pneg %p4699_p8  ;;  %p4706_p1 = por %p4705_p11, %p4704_p3 }
 0x2b6   : > { %p4707_p2 = pnand %p4706_p1, %p4700_p12 }
 0x2b8   : > { %4710 = shalt.err (!%p4707_p2)
}
 0x2b9   : > { %3841 = dma.hbm_to_vmem [thread:$0]  (!%p5569_p4), %s5612_s14, 384, %s5614_s16, %s5618_s18, %s6207_s7, %s6207_s7, %s6206_s13  }
 0x2ba   : > { %s6210_s19 = sld [smem:[#allocation65_spill]] }
 0x2c0   : > { %p6211_p0 = scmp.ne.s32.totalorder %s6210_s19, 0 }
 0x2c1   : > { %s6212_s6 = sld [smem:[#allocation61_spill]] (!%p6211_p0) }
 0x2c2   : > { %913 = sbr.rel (%p6211_p0) target bundleno = 4335 (0x10ef), region = 112 }
 0x2c7   : > { %s5650_s25 = sand.u32 (!%p6211_p0), 1, %s6212_s6  }
 0x2c8   : > { %s3197_s12 = sshll.u32 (!%p6211_p0), %s5650_s25, 4  ;;  %s916_s5 = scalar_lea.sflag (!%p6211_p0), [#allocation6], %s5650_s25 }
 0x2c9   : > { %s5656_s3 = scalar_lea.vmem [#allocation5], %s3197_s12 }
 0x2ca   : > { %4786 = dma.done.wait (%p5546_p13), %s916_s5, 256  }
 0x2cb   : > { %4788 = vsyncadd (%p5546_p13), %s916_s5, 4294967040  ;;  %s6213_s14 = sld [smem:[#allocation64_spill]]  ;;  %s3678_s18 = smul.u32 24, %s5650_s25 }
 0x2cd   : > { %s5664_s7 = scalar_lea.vmem [#allocation8], %s3678_s18 }
 0x2d1   : > { %s924_s16 = sand.u32 1, %s6213_s14  }
 0x2d2   : > { %s925_s13 = scalar_lea.sflag [#allocation9], %s924_s16 }
 0x2d3   : > { %4790 = dma.done.wait (%p5546_p13), %s925_s13, 384  }
 0x2d4   : > { %4792 = vsyncadd (%p5546_p13), %s925_s13, 4294966912  ;;  %p6214_p4 = scmp.eq.s32.totalorder %s6213_s14, 0 }
 0x2d6   : > { %4794 = dma.done.wait (%p6214_p4), [#allocation9], 16   ;;  %p6215_p6 = pmov %p6214_p4 }
 0x2d7   : > { %p6216_p10 = pmov %p6214_p4 }
 0x2d8   : > { %4796 = vsyncadd (%p6215_p6), [#allocation9], 4294967280 }
 0x2d9   : > { %4798 = dma.done.wait (%p6216_p10), [#allocation12], 32   ;;  %p6217_p5 = pmov %p6214_p4 }
 0x2da   : > { %p6218_p7 = pmov %p6214_p4 }
 0x2db   : > { %4800 = vsyncadd (%p6217_p5), [#allocation12], 4294967264 }
 0x2dc   : > { %4802 = dma.done.wait (%p6218_p7), [#allocation15], 80   ;;  %p6219_p9 = pmov %p6214_p4 }
 0x2dd   : > { %p6220_p13 = pmov %p6214_p4 }
 0x2de   : > { %4804 = vsyncadd (%p6219_p9), [#allocation15], 4294967216 }
 0x2df   : > { %4806 = dma.done.wait (%p6220_p13), [#allocation18], 32   ;;  %p6221_p8 = pmov %p6214_p4 }
 0x2e0   : > { %p6222_p12 = pmov %p6214_p4 }
 0x2e1   : > { %4808 = vsyncadd (%p6221_p8), [#allocation18], 4294967264 }
 0x2e2   : > { %4810 = dma.done.wait (%p6222_p12), [#allocation21], 528   ;;  %p6223_p3 = pmov %p6214_p4 }
 0x2e4   : > { %4812 = vsyncadd (%p6223_p3), [#allocation21], 4294966768  ;;  %p6224_p11 = pmov %p6223_p3 }
 0x2e5   : > { %p6225_p1 = pmov %p6223_p3 }
 0x2e6   : > { %4814 = dma.done.wait (%p6224_p11), [#allocation24], 784  }
 0x2e7   : > { %4816 = vsyncadd (%p6225_p1), [#allocation24], 4294966512  ;;  %p6226_p2 = pmov %p6225_p1 }
 0x2e8   : > { %p6227_p0 = pmov %p6225_p1 }
 0x2e9   : > { %4818 = dma.done.wait (%p6226_p2), [#allocation27], 784  }
 0x2ea   : > { %4820 = vsyncadd (%p6227_p0), [#allocation27], 4294966512  ;;  %p6228_p4 = pmov %p6227_p0 }
 0x2eb   : > { %p6229_p6 = pmov %p6227_p0 }
 0x2ec   : > { %4822 = dma.done.wait (%p6228_p4), [#allocation30], 528  }
 0x2ed   : > { %4824 = vsyncadd (%p6229_p6), [#allocation30], 4294966768  ;;  %p6230_p10 = pmov %p6227_p0 }
 0x2ee   : > { %p6231_p5 = pmov %p6227_p0 }
 0x2ef   : > { %4826 = dma.done.wait (%p6230_p10), [#allocation33], 32  }
 0x2f0   : > { %4828 = vsyncadd (%p6231_p5), [#allocation33], 4294967264  ;;  %p6232_p7 = pmov %p6227_p0 }
 0x2f1   : > { %p6233_p9 = pmov %p6227_p0 }
 0x2f2   : > { %4830 = dma.done.wait (%p6232_p7), [#allocation36], 528  }
 0x2f3   : > { %4832 = vsyncadd (%p6233_p9), [#allocation36], 4294966768  ;;  %p6234_p13 = pmov %p6227_p0 }
 0x2f4   : > { %p6235_p8 = pmov %p6227_p0 }
 0x2f5   : > { %4834 = dma.done.wait (%p6234_p13), [#allocation39], 2064  }
 0x2f6   : > { %4836 = vsyncadd (%p6235_p8), [#allocation39], 4294965232  ;;  %v1084_v0 = vlaneseq  ;;  %s1082_s4 = sld [smem:[#allocation3 + %s6213_s14]]  ;;  %v1098_v4 = vld [vmem:[%s5656_s3] sm:$0xff]  ;;  %v1099_v5 = vld [vmem:[%s5656_s3 + $0x8] sm:$0xff]  ;;  %v4888_v6 = vmov 0.0  }
 0x2f7   : > { %vm1105_vm2 = vcmask 261120   ;;  %v1102_v13 = vld [vmem:[%s5664_s7] sm:$0xff]  ;;  %vm1236_vm3 = vcmask 392192   ;;  %v5735_v15 = vld [vmem:[%s5664_s7 + $0x10] sm:$0xff]  ;;  %v1103_v26 = vld [vmem:[%s5664_s7 + $0x8] sm:$0xff]  ;;  %vm1154_vm4 = vcmask 1040384  }
 0x2f8   : > { %v5716_v1 = vshrl.u32 %v1084_v0, 7  ;;  %v1237_v14 = vsel %vm1236_vm3, %v1102_v13, 0.0  ;;  %v1243_v16 = vsel %vm1236_vm3, %v5735_v15, 0.0  ;;  %v1240_v28 = vsel %vm1236_vm3, %v1103_v26, 0.0  ;;  %v3222_v36 = vld [vmem:[#allocation10] ss:$0 sm:$0xff] }
 0x2f9   : > { %v3223_v38 = vld [vmem:[#allocation11] ss:$0 sm:$0xff]  ;;  %v1151_v46 = vld [vmem:[#allocation16] sm:$0x7]  ;;  %vm1161_vm5 = vcmask 1046528   ;;  %vm4890_vm6 = vmmov 0  }
 0x2fa   : > { %v1086_v2 = vadd.s32 8, %v5716_v1  ;;  %v1170_v39 = vsub.s32 0, %v5716_v1  ;;  %v1176_v43 = vsub.s32 1, %v5716_v1  ;;  %v1184_v48 = vsub.s32 2, %v5716_v1  ;;  %3403 = vmatprep.mubr.msk.f32.mxu1 %vm4890_vm6, %v4888_v6  ;;  %s4891_s11 = smov 112   ;;  %s4892_s0 = smov 120  }
 0x2fb   : > { %vm1589_vm7 = vcmask 64512   ;;  %s1083_s2 = sld [smem:[#allocation4 + %s6213_s14]]  ;;  %vm1684_vm10 = vcmask 195584   ;;  %s4893_s15 = smov 104   ;;  %vm2463_vm11 = vcmask 130048  }
 0x2fc   : > { %v1087_v3 = vstv %s1082_s4  ;;  %v1171_v47 = vrot.slane %v1151_v46, %v1170_v39  ;;  %v1177_v52 = vrot.slane %v1151_v46, %v1176_v43  ;;  %v1185_v57 = vrot.slane %v1151_v46, %v1184_v48  ;;  %vm5819_vm8 = vmpackc.low %vm1589_vm7, %vm1589_vm7  ;;  %s4894_s17 = smov 8   ;;  %s4895_s9 = smov 16  }
 0x2fd   : > { %vm1088_vm0 = vcmp.lt.s32.totalorder %v5716_v1, %v1087_v3  ;;  %vm1089_vm1 = vcmp.lt.s32.totalorder %v1086_v2, %v1087_v3  ;;  %s4896_s1 = smov 24   ;;  %s4897_s19 = smov 96  }
 0x2fe   : > { %v5723_v7 = vsel %vm1088_vm0, 1.0, %v4888_v6  ;;  %v5726_v8 = vsel %vm1089_vm1, 1.0, %v4888_v6  ;;  %s3285_s6 = sshll.u32 %s6213_s14, 10  ;;  %s4898_s5 = smov [#allocation42]  }
 0x2ff   : > { %v1100_v9 = vmul.f32 %v5723_v7, %v1098_v4  ;;  %v1101_v10 = vmul.f32 %v5726_v8, %v1099_v5  ;;  %s2860_s3 = sshll.u32 %s4898_s5, 4  ;;  %s6240_s13 = sld [smem:[#allocation87_spill]]  ;;  %s2861_s3 = int_to_ptr.vmem [resolvable:$true] %s2860_s3 }
 0x300   : > { %s4711_s4 = scalar_lea.vmem %s2861_s3, 1024  ;;  %p6241_p3 = scmp.ne.s32.totalorder %s6202_s10, 0 }
 0x301   : > { %v1106_v11 = vsel %vm1105_vm2, %v1100_v9, 0.0  ;;  %v1109_v12 = vsel %vm1105_vm2, %v1101_v10, 0.0  ;;  %p4712_p12 = scmp.ne.s32.totalorder %s2861_s3, %s4711_s4  ;;  %p4718_p2 = scmp.lt.s32.totalorder %s2861_s3, %s2861_s3 }
 0x302   : > { %1107 = vadd.xlane.f32.xlu0 %v1106_v11  ;;  %p4719_p0 = scmp.lt.s32.totalorder %s4711_s4, %s4711_s4 }
 0x303   : > { %p4713_p11 = pnand %p4712_p12, %p6241_p3 }
 0x304   : > { %p4720_p4 = por %p4719_p0, %p4718_p2 }
 0x305   : > { %s2859_s7 = scalar_lea.hbm %s6240_s13, %s3285_s6  ;;  %p4714_p1 = pneg %p4713_p11 }
 0x306   : > { %1110 = vadd.xlane.f32.xlu0 %v1109_v12 }
 0x307   : > { %p4721_p6 = pnand %p4720_p4, %p4714_p1 }
 0x30a   : > { %1238 = vadd.xlane.f32.xlu0 %v1237_v14 }
 0x30e   : > { %1244 = vadd.xlane.f32.xlu0 %v1243_v16 }
 0x38f   : > { %v1108_v17 = vpop.xlane.xlu0 %1107 }
 0x390   : > { %v1113_v18 = vmul.f32 0.03125, %v1108_v17 }
 0x392   : > { %v1115_v19 = vsub.f32 %v1100_v9, %v1113_v18 }
 0x393   : > { %v1111_v20 = vpop.xlane.xlu0 %1110 }
 0x394   : > { %v1114_v21 = vmul.f32 0.03125, %v1111_v20  ;;  %v1117_v22 = vmul.f32 %v1115_v19, %v1115_v19 }
 0x396   : > { %v1116_v23 = vsub.f32 %v1101_v10, %v1114_v21  ;;  %v1119_v24 = vsel %vm1105_vm2, %v1117_v22, 0.0 }
 0x397   : > { %1120 = vadd.xlane.f32.xlu1 %v1119_v24  ;;  %v1239_v42 = vpop.xlane.xlu0 %1238 }
 0x398   : > { %v1118_v25 = vmul.f32 %v1116_v23, %v1116_v23  ;;  %v1247_v51 = vmul.f32 0.020833334, %v1239_v42 }
 0x39a   : > { %v1122_v27 = vsel %vm1105_vm2, %v1118_v25, 0.0  ;;  %v5753_v62 = vsub.f32 %v1102_v13, %v1247_v51 }
 0x39b   : > { %1123 = vadd.xlane.f32.xlu1 %v1122_v27  ;;  %v1245_v58 = vpop.xlane.xlu0 %1244 }
 0x39c   : > { %v1249_v3 = vmul.f32 0.020833334, %v1245_v58  ;;  %v1253_v21 = vmul.f32 %v5753_v62, %v5753_v62 }
 0x39e   : > { %v5760_v13 = vsub.f32 %v5735_v15, %v1249_v3 }
 0x39f   : > { %1241 = vadd.xlane.f32.xlu1 %v1240_v28 }
 0x3a0   : > { %v1255_v15 = vmul.f32 %v5760_v13, %v5760_v13 }
 0x3a2   : > { %v1262_v28 = vsel %vm1236_vm3, %v1255_v15, 0.0  ;;  %v1300_v15 = vld [vmem:[#allocation20 + $0x18] sm:$0xff] }
 0x424   : > { %v1121_v29 = vpop.xlane.xlu1 %1120 }
 0x425   : > { %v1125_v30 = vmul.f32 0.03125, %v1121_v29  ;;  %v1389_v29 = vld [vmem:[#allocation23] sm:$0xff] }
 0x427   : > { %v1127_v31 = vadd.f32 1e-05, %v1125_v30  ;;  %v1390_v30 = vld [vmem:[#allocation23 + $0x8] sm:$0xff] }
 0x428   : > { %v1124_v32 = vpop.xlane.xlu1 %1123 }
 0x429   : > { %3989 = vrsqrt.f32 %v1127_v31  ;;  %v1126_v33 = vmul.f32 0.03125, %v1124_v32  ;;  %v3571_v31 = vpack.c.bf16 %v1390_v30, %v1389_v29  ;;  %v1391_v32 = vld [vmem:[#allocation23 + $0x10] sm:$0xff] }
 0x42b   : > { %v1128_v34 = vadd.f32 1e-05, %v1126_v33  ;;  %v1392_v33 = vld [vmem:[#allocation23 + $0x18] sm:$0xff] }
 0x42c   : > { %v1242_v53 = vpop.xlane.xlu1 %1241 }
 0x42d   : > { %3991 = vrsqrt.f32 %v1128_v34  ;;  %v1248_v63 = vmul.f32 0.020833334, %v1242_v53  ;;  %v4889_v34 = vmov 0.0|0.0  }
 0x42e   : > { %3570 = vmatprep.subr.bf16.mxu1 %v4889_v34 }
 0x42f   : > { %v5756_v14 = vsub.f32 %v1103_v26, %v1248_v63  ;;  %v1256_v26 = vsel %vm1236_vm3, %v1253_v21, 0.0  ;;  %3572 = vmatpush3.bf16.msra.mxu1 %v3571_v31  ;;  %v1496_v21 = vld [vmem:[#allocation26 + $0x28] sm:$0xff] }
 0x430   : > { %3573 = vmatprep.subr.bf16.mxu1 %v4889_v34 }
 0x431   : > { %v1254_v24 = vmul.f32 %v5756_v14, %v5756_v14 }
 0x433   : > { %v3990_v35 = vpop.eup %3989  ;;  %v1259_v27 = vsel %vm1236_vm3, %v1254_v24, 0.0  ;;  %v1298_v24 = vld [vmem:[#allocation20 + $0x8] sm:$0xff] }
 0x434   : > { %v5743_v37 = vmul.f32 %v3990_v35, %v1115_v19  ;;  %v3574_v35 = vpack.c.bf16 %v1392_v33, %v1391_v32 }
 0x436   : > { %v1140_v40 = vmul.f32 %v3222_v36, %v5743_v37  ;;  %3575 = vmatpush3.bf16.msra.mxu1 %v3574_v35 }
 0x437   : > { %v3992_v41 = vpop.eup %3991  ;;  %3576 = vmatprep.subr.bf16.mxu1 %v4889_v34 }
 0x438   : > { %v5748_v44 = vmul.f32 %v3992_v41, %v1116_v23  ;;  %v1149_v45 = vadd.f32 %v3223_v38, %v1140_v40 }
 0x43a   : > { %v1141_v49 = vmul.f32 %v3222_v36, %v5748_v44  ;;  %v1155_v50 = vrot.slane %v1149_v45, 7  ;;  %v1162_v59 = vrot.slane %v1149_v45, 1  ;;  %v1178_v1 = vmul.f32 %v1177_v52, %v1149_v45  ;;  %v1393_v36 = vld [vmem:[#allocation23 + $0x20] sm:$0xff] }
 0x43c   : > { %v1150_v54 = vadd.f32 %v3223_v38, %v1141_v49  ;;  %v1160_v55 = vsel %vm1154_vm4, 0.0, %v1155_v50  ;;  %v1394_v38 = vld [vmem:[#allocation23 + $0x28] sm:$0xff] }
 0x43d   : > { %v1172_v56 = vmul.f32 %v1171_v47, %v1160_v55  ;;  %v3577_v39 = vpack.c.bf16 %v1394_v38, %v1393_v36  ;;  %v3224_v36 = vld [vmem:[#allocation17] ss:$0 sm:$0xff] }
 0x43e   : > { %v1163_v60 = vrot.slane %v1150_v54, 1  ;;  %v1156_v61 = vrot.slane %v1150_v54, 7  ;;  %v1179_v12 = vmul.f32 %v1177_v52, %v1150_v54 }
 0x43f   : > { %v1180_v9 = vadd.f32 %v1178_v1, %v1172_v56  ;;  %3578 = vmatpush3.bf16.msra.mxu1 %v3577_v39  ;;  %v1491_v1 = vld [vmem:[#allocation26] sm:$0xff] }
 0x440   : > { %v1164_v2 = vsel %vm1161_vm5, %v1162_v59, %v1163_v60  ;;  %v1157_v4 = vsel %vm1154_vm4, %v1155_v50, %v1156_v61  ;;  %v1167_v5 = vsel %vm1161_vm5, %v1163_v60, 0.0  ;;  %3579 = vmatprep.subr.bf16.mxu1 %v4889_v34  ;;  %v3226_v61 = vld [vmem:[#allocation13] ss:$0 sm:$0xff] }
 0x441   : > { %v1186_v10 = vmul.f32 %v1185_v57, %v1164_v2  ;;  %v1173_v11 = vmul.f32 %v1171_v47, %v1157_v4  ;;  %v1187_v18 = vmul.f32 %v1185_v57, %v1167_v5  ;;  %v1492_v2 = vld [vmem:[#allocation26 + $0x8] sm:$0xff]  ;;  %v3227_v4 = vld [vmem:[#allocation14] ss:$0 sm:$0xff] }
 0x443   : > { %v1188_v16 = vadd.f32 %v1186_v10, %v1180_v9  ;;  %v1181_v17 = vadd.f32 %v1179_v12, %v1173_v11  ;;  %v3580_v11 = vpack.c.bf16 %v1492_v2, %v1491_v1  ;;  %v3235_v2 = vld [vmem:[#allocation28] ss:$0 sm:$0xff] }
 0x445   : > { %v1190_v19 = vmul.f32 %v5723_v7, %v1188_v16  ;;  %v1189_v20 = vadd.f32 %v1187_v18, %v1181_v17  ;;  %v1493_v17 = vld [vmem:[#allocation26 + $0x10] sm:$0xff]  ;;  %v1494_v18 = vld [vmem:[#allocation26 + $0x18] sm:$0xff] }
 0x447   : > { %v1192_v22 = vsel %vm1105_vm2, %v1190_v19, 0.0  ;;  %v1191_v23 = vmul.f32 %v5726_v8, %v1189_v20  ;;  %v1495_v20 = vld [vmem:[#allocation26 + $0x20] sm:$0xff] }
 0x448   : > { %1193 = vadd.xlane.f32.xlu1 %v1192_v22 }
 0x449   : > { %v1195_v25 = vsel %vm1105_vm2, %v1191_v23, 0.0 }
 0x44a   : > { %1196 = vadd.xlane.f32.xlu0 %v1195_v25  ;;  %v1299_v25 = vld [vmem:[#allocation20 + $0x10] sm:$0xff] }
 0x44c   : > { %1257 = vadd.xlane.f32.xlu1 %v1256_v26 }
 0x44e   : > { %1260 = vadd.xlane.f32.xlu0 %v1259_v27  ;;  %v3586_v27 = vpack.c.bf16 %v1496_v21, %v1495_v20 }
 0x450   : > { %1263 = vadd.xlane.f32.xlu1 %v1262_v28 }
 0x4d5   : > { %v1194_v40 = vpop.xlane.xlu1 %1193 }
 0x4d6   : > { %v1198_v41 = vmul.f32 0.03125, %v1194_v40  ;;  %v3225_v40 = vld [vmem:[#allocation19] ss:$0 sm:$0xff] }
 0x4d7   : > { %v1197_v42 = vpop.xlane.xlu0 %1196 }
 0x4d8   : > { %v5780_v43 = vsub.f32 %v1190_v19, %v1198_v41  ;;  %v1199_v45 = vmul.f32 0.03125, %v1197_v42 }
 0x4d9   : > { %v1258_v46 = vpop.xlane.xlu1 %1257 }
 0x4da   : > { %v5782_v47 = vsub.f32 %v1191_v23, %v1199_v45  ;;  %v1265_v48 = vmul.f32 0.020833334, %v1258_v46  ;;  %v1202_v49 = vmul.f32 %v5780_v43, %v5780_v43  ;;  %v1297_v23 = vld [vmem:[#allocation20] sm:$0xff] }
 0x4db   : > { %v1261_v50 = vpop.xlane.xlu0 %1260  ;;  %v3562_v26 = vpack.c.bf16 %v1298_v24, %v1297_v23 }
 0x4dc   : > { %v1268_v51 = vadd.f32 1e-05, %v1265_v48  ;;  %v1266_v52 = vmul.f32 0.020833334, %v1261_v50  ;;  %v1204_v53 = vsel %vm1105_vm2, %v1202_v49, 0.0  ;;  %v1203_v54 = vmul.f32 %v5782_v47, %v5782_v47 }
 0x4dd   : > { %1205 = vadd.xlane.f32.xlu0 %v1204_v53  ;;  %v1264_v55 = vpop.xlane.xlu1 %1263  ;;  %3563 = vmatprep.subr.bf16.mxu0 %v3562_v26  ;;  %v3231_v48 = vld [vmem:[#allocation25] ss:$0 sm:$0xff] }
 0x4de   : > { %3993 = vrsqrt.f32 %v1268_v51  ;;  %v1269_v56 = vadd.f32 1e-05, %v1266_v52  ;;  %v1267_v57 = vmul.f32 0.020833334, %v1264_v55  ;;  %v1207_v58 = vsel %vm1105_vm2, %v1203_v54, 0.0  ;;  %3565 = vmatpush3.bf16.msra.mxu0 %v3562_v26 }
 0x4df   : > { %1208 = vadd.xlane.f32.xlu1 %v1207_v58 }
 0x4e0   : > { %3995 = vrsqrt.f32 %v1269_v56  ;;  %v1270_v59 = vadd.f32 1e-05, %v1267_v57 }
 0x4e2   : > { %3997 = vrsqrt.f32 %v1270_v59 }
 0x4e8   : > { %v3994_v60 = vpop.eup %3993 }
 0x4e9   : > { %v1274_v63 = vmul.f32 %v3994_v60, %v5753_v62  ;;  %v3583_v62 = vpack.c.bf16 %v1494_v18, %v1493_v17 }
 0x4ea   : > { %v3996_v3 = vpop.eup %3995 }
 0x4eb   : > { %v1284_v5 = vmul.f32 %v3226_v61, %v1274_v63  ;;  %v1275_v9 = vmul.f32 %v3996_v3, %v5756_v14 }
 0x4ec   : > { %v3998_v10 = vpop.eup %3997 }
 0x4ed   : > { %v1294_v12 = vadd.f32 %v3227_v4, %v1284_v5  ;;  %v1285_v16 = vmul.f32 %v3226_v61, %v1275_v9  ;;  %v1276_v19 = vmul.f32 %v3998_v10, %v5760_v13  ;;  %v3566_v13 = vpack.c.bf16 %v1300_v15, %v1299_v25  ;;  %v3228_v25 = vld [vmem:[#allocation22] ss:$0 sm:$0xff] }
 0x4ef   : > { %3404 = vmatmul.mubr.msk.f32.vlgmr.msra.gmra.mrb[0].mxu1 %vm1236_vm3, %v1294_v12  ;;  %v1295_v22 = vadd.f32 %v3227_v4, %v1285_v16  ;;  %v1286_v14 = vmul.f32 %v3226_v61, %v1276_v19  ;;  %3567 = vmatprep.subr.bf16.mxu0 %v3566_v13 }
 0x4f0   : > { %3581 = vmatpush3.bf16.msra.mxu1 %v3580_v11  ;;  %3406 = vmatprep.mubr.msk.f32.mxu1 %vm4890_vm6, %v4888_v6 }
 0x4f1   : > { %3582 = vmatprep.subr.bf16.mxu1 %v4889_v34  ;;  %v1296_v28 = vadd.f32 %v3227_v4, %v1286_v14  ;;  %3569 = vmatpush3.bf16.msra.mxu0 %v3566_v13 }
 0x4f3   : > { %3407 = vmatmul.mubr.msk.f32.gmra.mrb[2].mxu1 %vm1236_vm3, %v1295_v22 }
 0x4f4   : > { %3584 = vmatpush3.bf16.msra.mxu1 %v3583_v62  ;;  %3409 = vmatprep.mubr.msk.f32.mxu1 %vm4890_vm6, %v4888_v6 }
 0x4f5   : > { %3585 = vmatprep.subr.bf16.mxu1 %v4889_v34 }
 0x4f7   : > { %3410 = vmatmul.mubr.msk.f32.gmra.mrb[4].mxu1 %vm1236_vm3, %v1296_v28 }
 0x4f8   : > { %3587 = vmatpush3.bf16.msra.mxu1 %v3586_v27  ;;  %3424 = vmatprep.mubr.msk.f32.mxu1 %vm4890_vm6, %v4888_v6 }
 0x4fb   : > { %3425 = vmatmul.mubr.msk.f32.vlgmr.msra.gmra.mrb[6].mxu1 %vm1236_vm3, %v1294_v12 }
 0x4fc   : > { %3427 = vmatprep.mubr.msk.f32.mxu1 %vm4890_vm6, %v4888_v6 }
 0x4ff   : > { %3428 = vmatmul.mubr.msk.f32.gmra.mrb[8].mxu1 %vm1236_vm3, %v1295_v22 }
 0x500   : > { %3430 = vmatprep.mubr.msk.f32.mxu1 %vm4890_vm6, %v4888_v6 }
 0x503   : > { %3431 = vmatmul.mubr.msk.f32.gmra.mrb[10].mxu1 %vm1236_vm3, %v1296_v28 }
 0x56a   : > { %v1206_v29 = vpop.xlane.xlu0 %1205 }
 0x56b   : > { %v1210_v30 = vmul.f32 0.03125, %v1206_v29 }
 0x56c   : > { %v1209_v31 = vpop.xlane.xlu1 %1208 }
 0x56d   : > { %v1212_v32 = vadd.f32 1e-05, %v1210_v30  ;;  %v1211_v33 = vmul.f32 0.03125, %v1209_v31 }
 0x56f   : > { %3999 = vrsqrt.f32 %v1212_v32  ;;  %v1213_v34 = vadd.f32 1e-05, %v1211_v33 }
 0x571   : > { %4001 = vrsqrt.f32 %v1213_v34 }
 0x579   : > { %v4000_v35 = vpop.eup %3999 }
 0x57a   : > { %v1216_v38 = vmul.f32 %v4000_v35, %v5780_v43  ;;  %v1095_v35 = vand.u32 127, %v1084_v0 }
 0x57b   : > { %v4002_v39 = vpop.eup %4001 }
 0x57c   : > { %v1217_v41 = vmul.f32 %v4002_v39, %v5782_v47  ;;  %v1225_v42 = vmul.f32 %v3224_v36, %v1216_v38 }
 0x57e   : > { %v1226_v6 = vmul.f32 %v3224_v36, %v1217_v41  ;;  %v1234_v45 = vadd.f32 %v3225_v40, %v1225_v42  ;;  %v1096_v36 = vstv %s1083_s2 }
 0x57f   : > { %vm5881_vm9 = vcmp.lt.s32.totalorder %v1095_v35, %v1096_v36 }
 0x580   : > { %v1235_v46 = vadd.f32 %v3225_v40, %v1226_v6  ;;  %3388 = vmatprep.mubr.msk.f32.mxu0 %vm1105_vm2, %v1234_v45 }
 0x582   : > { %3389 = vmatmul.mubr.msk.f32.vlgmr.msra.gmra.mrb[0].mxu0 %vm1105_vm2, %v1235_v46 }
 0x5c2   : > { %v1477_v49 = vpop.f32.mrb[0].mxu1 }
 0x5c3   : > { %v3405_v50 = vpop.f32.mrb[1].mxu1  ;;  %v1478_v51 = vadd.f32 %v3231_v48, %v1477_v49 }
 0x5c5   : > { %v1586_v43 = vmul.f32 0.59460354, %v1478_v51 }
 0x5c6   : > { %v1482_v52 = vpop.f32.mrb[2].mxu1 }
 0x5c7   : > { %v1483_v53 = vadd.f32 %v3231_v48, %v1482_v52  ;;  %v3408_v54 = vpop.f32.mrb[3].mxu1 }
 0x5c9   : > { %v1587_v55 = vmul.f32 0.59460354, %v1483_v53 }
 0x5ca   : > { %v1487_v56 = vpop.f32.mrb[4].mxu1 }
 0x5cb   : > { %v1488_v47 = vadd.f32 %v3231_v48, %v1487_v56  ;;  %v3411_v57 = vpop.f32.mrb[5].mxu1  ;;  %v5815_v58 = vpack.i.bf16 %v1587_v55, %v1586_v43  ;;  %v3588_v59 = vpack.c.bf16 %v1587_v55, %v1586_v43 }
 0x5cd   : > { %v5823_v61 = vmul.f32 0.59460354, %v1488_v47  ;;  %3965 = vrot.lane.b32.xlu1 %v5815_v58, %s4891_s11  ;;  %3960 = vrot.lane.b32.xlu0 %v5815_v58, %s4892_s0 }
 0x5ce   : > { %3590 = vmatprep.subr.msk.bf16.mxu1 %vm5819_vm8, %v3588_v59  ;;  %v1570_v63 = vpop.f32.mrb[6].mxu1 }
 0x5cf   : > { %3593 = vmatpush3.bf16.xpose.msk.msra.mxu1 %vm5819_vm8, %v3588_v59  ;;  %v3426_v1 = vpop.f32.mrb[7].mxu1  ;;  %v1571_v4 = vadd.f32 %v3235_v2, %v1570_v63 }
 0x5d0   : > { %3437 = vmatprep.subr.msk.mxu1 %vm1589_vm7, %v5823_v61 }
 0x5d1   : > { %1800 = vrot.lane.b32.xlu1 %v5823_v61, %s4892_s0 }
 0x5d2   : > { %v1575_v3 = vpop.f32.mrb[8].mxu1 }
 0x5d3   : > { %v1576_v5 = vadd.f32 %v3235_v2, %v1575_v3  ;;  %v3429_v9 = vpop.f32.mrb[9].mxu1 }
 0x5d5   : > { %v3594_v10 = vpack.c.bf16 %v1576_v5, %v1571_v4  ;;  %v5837_v11 = vpack.i.bf16 %v1576_v5, %v1571_v4 }
 0x5d6   : > { %v1580_v12 = vpop.f32.mrb[10].mxu1 }
 0x5d7   : > { %v5839_v16 = vadd.f32 %v3235_v2, %v1580_v12  ;;  %3438 = vmatpush3.xpose.msk.msra.mxu1 %vm1589_vm7, %v5823_v61  ;;  %v3432_v17 = vpop.f32.mrb[11].mxu1 }
 0x5d8   : > { %3595 = vmatprep.subr.bf16.mxu1 %v3594_v10 }
 0x63f   : > { %v3966_v18 = vpop.permute.xlu1 %3965  ;;  %v3961_v19 = vpop.permute.xlu0 %3960 }
 0x640   : > { %v3963_v62 = vunpack.i.h.bf16 %v3961_v19  ;;  %v3962_v20 = vunpack.i.l.bf16 %v3961_v19  ;;  %v3968_v14 = vunpack.i.h.bf16 %v3966_v18  ;;  %v3967_v23 = vunpack.i.l.bf16 %v3966_v18 }
 0x642   : > { %v3598_v21 = vpack.c.bf16 %v3963_v62, %v3962_v20  ;;  %v3608_v24 = vpack.c.bf16 %v3968_v14, %v3967_v23 }
 0x643   : > { %v1801_v22 = vpop.permute.xlu1 %1800 }
 0x644   : > { %3600 = vmatprep.subr.msk.bf16.mxu0 %vm5819_vm8, %v3598_v21 }
 0x645   : > { %3603 = vmatpush3.bf16.xpose.msk.msra.mxu0 %vm5819_vm8, %v3598_v21 }
 0x646   : > { %3455 = vmatprep.subr.msk.mxu0 %vm1589_vm7, %v1801_v22 }
 0x64d   : > { %3456 = vmatpush3.xpose.msk.msra.mxu0 %vm1589_vm7, %v1801_v22 }
 0x64e   : > { %3610 = vmatprep.subr.msk.bf16.mxu0 %vm5819_vm8, %v3608_v24 }
 0x655   : > { %v3390_v26 = vpop.f32.mrb[0].mxu0 }
 0x656   : > { %v1386_v15 = vadd.f32 %v3390_v26, %v3228_v25  ;;  %v1380_v13 = vpop.f32.mrb[1].mxu0 }
 0x657   : > { %v1381_v27 = vadd.f32 %v3228_v25, %v1380_v13 }
 0x658   : > { %v5851_v28 = vmul.f32 0.59460354, %v1386_v15 }
 0x659   : > { %v5853_v29 = vmul.f32 0.59460354, %v1381_v27 }
 0x65a   : > { %1794 = vrot.lane.b32.xlu0 %v5851_v28, %s4892_s0 }
 0x65b   : > { %1792 = vrot.lane.b32.xlu1 %v5853_v29, %s4892_s0  ;;  %3439 = vmatprep.mubr.msk.f32.mxu1 %vm1589_vm7, %v5853_v29 }
 0x65c   : > { %3440 = vmatmul.mubr.msk.f32.vlgmr.msra.gmra.mrb[12].mxu1 %vm1589_vm7, %v5851_v28 }
 0x65d   : > { %3597 = vmatpush3.bf16.msra.mxu1 %v3594_v10 }
 0x65e   : > { %3446 = vmatprep.subr.mxu1 %v5839_v16  ;;  %2009 = vrot.lane.b32.xlu0 %v5853_v29, %s4891_s11 }
 0x65f   : > { %2017 = vrot.lane.b32.xlu1 %v5823_v61, %s4891_s11 }
 0x661   : > { %3447 = vmatpush3.msra.mxu1 %v5839_v16 }
 0x663   : > { %2011 = vrot.lane.b32.xlu1 %v5851_v28, %s4891_s11 }
 0x6cc   : > { %v1795_v30 = vpop.permute.xlu0 %1794 }
 0x6cd   : > { %v1793_v31 = vpop.permute.xlu1 %1792 }
 0x6ce   : > { %3457 = vmatprep.mubr.msk.f32.mxu0 %vm1589_vm7, %v1793_v31 }
 0x6cf   : > { %3458 = vmatmul.mubr.msk.f32.vlgmr.msra.gmra.mrb[2].mxu0 %vm1589_vm7, %v1795_v30 }
 0x6d0   : > { %3613 = vmatpush3.bf16.xpose.msk.msra.mxu0 %vm5819_vm8, %v3608_v24  ;;  %v2010_v32 = vpop.permute.xlu0 %2009 }
 0x6d1   : > { %v2018_v33 = vpop.permute.xlu1 %2017  ;;  %3475 = vmatprep.mubr.msk.f32.mxu0 %vm1589_vm7, %v2010_v32 }
 0x6d2   : > { %3473 = vmatprep.subr.msk.mxu0 %vm1589_vm7, %v2018_v33 }
 0x6d5   : > { %v2012_v34 = vpop.permute.xlu1 %2011 }
 0x6d8   : > { %3474 = vmatpush3.xpose.msk.msra.mxu0 %vm1589_vm7, %v2018_v33 }
 0x6db   : > { %3476 = vmatmul.mubr.msk.f32.vlgmr.msra.gmra.mrb[4].mxu0 %vm1589_vm7, %v2012_v34 }
 0x72f   : > { %v3441_v39 = vpop.f32.mrb[12].mxu1 }
 0x730   : > { %v1683_v40 = vsel %vm5881_vm9, %v3441_v39, -1e+30  ;;  %v1671_v41 = vpop.f32.mrb[13].mxu1 }
 0x731   : > { %v1682_v42 = vsel %vm5881_vm9, %v1671_v41, -1e+30  ;;  %v1688_v6 = vsel %vm1684_vm10, %v1683_v40, -inf }
 0x732   : > { %1689 = vmax.xlane.f32.xlu1 %v1688_v6  ;;  %v1685_v45 = vsel %vm1684_vm10, %v1682_v42, -inf }
 0x733   : > { %1686 = vmax.xlane.f32.xlu0 %v1685_v45 }
 0x7a2   : > { %v3459_v0 = vpop.f32.mrb[2].mxu0 }
 0x7a3   : > { %v1878_v46 = vpop.f32.mrb[3].mxu0  ;;  %v1888_v50 = vsel %vm5881_vm9, %v3459_v0, -1e+30 }
 0x7a4   : > { %v1887_v48 = vsel %vm5881_vm9, %v1878_v46, -1e+30  ;;  %v1892_v51 = vsel %vm1684_vm10, %v1888_v50, -inf }
 0x7a5   : > { %v1889_v49 = vsel %vm1684_vm10, %v1887_v48, -inf }
 0x7a6   : > { %1890 = vmax.xlane.f32.xlu0 %v1889_v49 }
 0x7aa   : > { %1893 = vmax.xlane.f32.xlu0 %v1892_v51 }
 0x7ae   : > { %v3477_v52 = vpop.f32.mrb[4].mxu0 }
 0x7af   : > { %v2105_v53 = vsel %vm5881_vm9, %v3477_v52, -1e+30  ;;  %v2095_v54 = vpop.f32.mrb[5].mxu0 }
 0x7b0   : > { %v2104_v43 = vsel %vm5881_vm9, %v2095_v54, -1e+30  ;;  %v2109_v55 = vsel %vm1684_vm10, %v2105_v53, -inf }
 0x7b1   : > { %2110 = vmax.xlane.f32.xlu1 %v2109_v55  ;;  %v2106_v56 = vsel %vm1684_vm10, %v2104_v43, -inf }
 0x7b2   : > { %2107 = vmax.xlane.f32.xlu0 %v2106_v56 }
 0x7bf   : > { %v1690_v47 = vpop.xlane.xlu1 %1689 }
 0x7c0   : > { %v1692_v57 = vsub.f32 %v1683_v40, %v1690_v47  ;;  %v1687_v59 = vpop.xlane.xlu0 %1686 }
 0x7c1   : > { %v1691_v63 = vsub.f32 %v1682_v42, %v1687_v59 }
 0x7c2   : > { %v1695_v1 = vmul.f32 1.442695, %v1692_v57 }
 0x7c3   : > { %v1693_v2 = vmul.f32 1.442695, %v1691_v63 }
 0x7c4   : > { %4003 = vpow2.f32 %v1695_v1 }
 0x7c5   : > { %4005 = vpow2.f32 %v1693_v2 }
 0x7ce   : > { %v4004_v3 = vpop.eup %4003 }
 0x7cf   : > { %v4006_v4 = vpop.eup %4005  ;;  %v1700_v5 = vsel %vm1684_vm10, %v4004_v3, 0.0 }
 0x7d0   : > { %1701 = vadd.xlane.f32.xlu1 %v1700_v5  ;;  %v1697_v9 = vsel %vm1684_vm10, %v4006_v4, 0.0 }
 0x7d1   : > { %1698 = vadd.xlane.f32.xlu0 %v1697_v9 }
 0x833   : > { %v1891_v10 = vpop.xlane.xlu0 %1890 }
 0x834   : > { %v1895_v12 = vsub.f32 %v1887_v48, %v1891_v10 }
 0x836   : > { %v1897_v17 = vmul.f32 1.442695, %v1895_v12 }
 0x837   : > { %v1894_v18 = vpop.xlane.xlu0 %1893 }
 0x838   : > { %4007 = vpow2.f32 %v1897_v17  ;;  %v1896_v19 = vsub.f32 %v1888_v50, %v1894_v18 }
 0x83a   : > { %v1899_v62 = vmul.f32 1.442695, %v1896_v19 }
 0x83c   : > { %4009 = vpow2.f32 %v1899_v62 }
 0x83e   : > { %v2111_v23 = vpop.xlane.xlu1 %2110 }
 0x83f   : > { %v2108_v24 = vpop.xlane.xlu0 %2107  ;;  %v2113_v35 = vsub.f32 %v2105_v53, %v2111_v23 }
 0x840   : > { %v2112_v15 = vsub.f32 %v2104_v43, %v2108_v24 }
 0x841   : > { %v2116_v36 = vmul.f32 1.442695, %v2113_v35 }
 0x842   : > { %v4008_v20 = vpop.eup %4007  ;;  %v2114_v13 = vmul.f32 1.442695, %v2112_v15 }
 0x843   : > { %v1901_v21 = vsel %vm1684_vm10, %v4008_v20, 0.0 }
 0x844   : > { %1902 = vadd.xlane.f32.xlu0 %v1901_v21 }
 0x846   : > { %v4010_v22 = vpop.eup %4009 }
 0x847   : > { %v1904_v14 = vsel %vm1684_vm10, %v4010_v22, 0.0 }
 0x848   : > { %1905 = vadd.xlane.f32.xlu1 %v1904_v14 }
 0x859   : > { %1923 = vrot.lane.b32.xlu1 %v5839_v16, %s4892_s0 }
 0x85a   : > { %3970 = vrot.lane.b32.xlu0 %v5837_v11, %s4892_s0 }
 0x85d   : > { %v1702_v25 = vpop.xlane.xlu1 %1701  ;;  %3975 = vrot.lane.b32.xlu1 %v5837_v11, %s4891_s11 }
 0x85e   : > { %4011 = vrcp.f32 %v1702_v25  ;;  %v1699_v26 = vpop.xlane.xlu0 %1698 }
 0x85f   : > { %4013 = vrcp.f32 %v1699_v26 }
 0x860   : > { %4015 = vpow2.f32 %v2114_v13 }
 0x861   : > { %2137 = vrot.lane.b32.xlu1 %v5839_v16, %s4891_s11  ;;  %4017 = vpow2.f32 %v2116_v36 }
 0x868   : > { %v4012_v27 = vpop.eup %4011 }
 0x869   : > { %v4014_v30 = vpop.eup %4013  ;;  %v1706_v31 = vmul.f32 %v4012_v27, %v4004_v3 }
 0x86a   : > { %v1705_v32 = vmul.f32 %v4014_v30, %v4006_v4  ;;  %v4016_v39 = vpop.eup %4015 }
 0x86b   : > { %v1708_v33 = vmul.f32 %v5726_v8, %v1706_v31  ;;  %v2118_v40 = vsel %vm1684_vm10, %v4016_v39, 0.0  ;;  %v4018_v41 = vpop.eup %4017 }
 0x86c   : > { %v1707_v34 = vmul.f32 %v5723_v7, %v1705_v32  ;;  %3448 = vmatprep.mubr.msk.f32.mxu1 %vm1684_vm10, %v1705_v32  ;;  %v2121_v42 = vsel %vm1684_vm10, %v4018_v41, 0.0 }
 0x86d   : > { %1710 = vst.msk [vmem:[#allocation42 + $0x8] sm:$0xff] %vm1684_vm10, %v1708_v33  ;;  %3449 = vmatmul.mubr.msk.f32.vlgmr.msra.gmra.mrb[14].mxu1 %vm1684_vm10, %v1706_v31 }
 0x86e   : > { %1709 = vst.msk [vmem:[#allocation42] sm:$0xff] %vm1684_vm10, %v1707_v34 }
 0x879   : > { %2119 = vadd.xlane.f32.xlu0 %v2118_v40 }
 0x885   : > { %2122 = vadd.xlane.f32.xlu1 %v2121_v42 }
 0x88f   : > { %3980 = vrot.lane.b32.xlu0 %v5815_v58, %s4893_s15 }
 0x893   : > { %2223 = vrot.lane.b32.xlu0 %v5853_v29, %s4893_s15 }
 0x896   : > { %2231 = vrot.lane.b32.xlu1 %v5823_v61, %s4893_s15 }
 0x89a   : > { %2225 = vrot.lane.b32.xlu1 %v5851_v28, %s4893_s15 }
 0x8d1   : > { %v1903_v6 = vpop.xlane.xlu0 %1902 }
 0x8d2   : > { %4019 = vrcp.f32 %v1903_v6 }
 0x8d5   : > { %v1906_v45 = vpop.xlane.xlu1 %1905  ;;  %v3971_v0 = vpop.permute.xlu0 %3970 }
 0x8d6   : > { %4021 = vrcp.f32 %v1906_v45  ;;  %v3973_v46 = vunpack.i.h.bf16 %v3971_v0  ;;  %v3972_v48 = vunpack.i.l.bf16 %v3971_v0 }
 0x8d8   : > { %v3604_v49 = vpack.c.bf16 %v3973_v46, %v3972_v48 }
 0x8d9   : > { %v1924_v50 = vpop.permute.xlu1 %1923 }
 0x8da   : > { %3605 = vmatprep.subr.bf16.mxu1 %v3604_v49 }
 0x8db   : > { %3607 = vmatpush3.bf16.msra.mxu1 %v3604_v49 }
 0x8dc   : > { %v4020_v58 = vpop.eup %4019  ;;  %3464 = vmatprep.subr.mxu1 %v1924_v50 }
 0x8dd   : > { %v3976_v29 = vpop.permute.xlu1 %3975  ;;  %v1909_v51 = vmul.f32 %v4020_v58, %v4008_v20 }
 0x8de   : > { %v3978_v52 = vunpack.i.h.bf16 %v3976_v29  ;;  %v3977_v61 = vunpack.i.l.bf16 %v3976_v29  ;;  %v2468_v29 = vld [vmem:[#allocation29] sm:$0xff] }
 0x8df   : > { %3465 = vmatpush3.msra.mxu1 %v1924_v50  ;;  %v1911_v28 = vmul.f32 %v5723_v7, %v1909_v51  ;;  %3466 = vmatprep.mubr.msk.f32.mxu1 %vm1684_vm10, %v1909_v51  ;;  %v2469_v51 = vld [vmem:[#allocation29 + $0x8] sm:$0xff] }
 0x8e0   : > { %v4022_v53 = vpop.eup %4021  ;;  %v3614_v54 = vpack.c.bf16 %v3978_v52, %v3977_v61  ;;  %v2470_v52 = vld [vmem:[#allocation29 + $0x10] sm:$0xff]  ;;  %v3628_v61 = vpack.c.bf16 %v2469_v51, %v2468_v29 }
 0x8e1   : > { %v1910_v43 = vmul.f32 %v4022_v53, %v4010_v22  ;;  %1914 = vst.msk [vmem:[#allocation42 + $0x10] sm:$0xff] %vm1684_vm10, %v1911_v28  ;;  %v2138_v56 = vpop.permute.xlu1 %2137  ;;  %v2471_v28 = vld [vmem:[#allocation29 + $0x18] sm:$0xff] }
 0x8e2   : > { %3615 = vmatprep.subr.bf16.mxu1 %v3614_v54  ;;  %v3632_v53 = vpack.c.bf16 %v2471_v28, %v2470_v52 }
 0x8e3   : > { %v1912_v55 = vmul.f32 %v5726_v8, %v1910_v43  ;;  %3467 = vmatmul.mubr.msk.f32.vlgmr.msra.gmra.mrb[16].mxu1 %vm1684_vm10, %v1910_v43 }
 0x8e4   : > { %3617 = vmatpush3.bf16.msra.mxu1 %v3614_v54 }
 0x8e5   : > { %1915 = vst.msk [vmem:[#allocation42 + $0x18] sm:$0xff] %vm1684_vm10, %v1912_v55  ;;  %3482 = vmatprep.subr.mxu1 %v2138_v56 }
 0x8e8   : > { %3483 = vmatpush3.msra.mxu1 %v2138_v56 }
 0x906   : > { %v2120_v47 = vpop.xlane.xlu0 %2119 }
 0x907   : > { %4023 = vrcp.f32 %v2120_v47 }
 0x90a   : > { %v3981_v57 = vpop.permute.xlu0 %3980 }
 0x90b   : > { %v3983_v59 = vunpack.i.h.bf16 %v3981_v57  ;;  %v3982_v63 = vunpack.i.l.bf16 %v3981_v57 }
 0x90d   : > { %v3618_v1 = vpack.c.bf16 %v3983_v59, %v3982_v63 }
 0x90e   : > { %v2224_v12 = vpop.permute.xlu0 %2223 }
 0x90f   : > { %3620 = vmatprep.subr.msk.bf16.mxu1 %vm5819_vm8, %v3618_v1 }
 0x911   : > { %v4024_v2 = vpop.eup %4023 }
 0x912   : > { %v2123_v3 = vpop.xlane.xlu1 %2122  ;;  %v2126_v4 = vmul.f32 %v4024_v2, %v4016_v39 }
 0x913   : > { %4025 = vrcp.f32 %v2123_v3 }
 0x914   : > { %v2128_v5 = vmul.f32 %v5723_v7, %v2126_v4  ;;  %3484 = vmatprep.mubr.msk.f32.mxu1 %vm1684_vm10, %v2126_v4 }
 0x916   : > { %2131 = vst.msk [vmem:[#allocation42 + $0x20] sm:$0xff] %vm1684_vm10, %v2128_v5  ;;  %v2232_v18 = vpop.permute.xlu1 %2231 }
 0x91a   : > { %v2226_v19 = vpop.permute.xlu1 %2225 }
 0x91d   : > { %v4026_v9 = vpop.eup %4025 }
 0x91e   : > { %v2127_v10 = vmul.f32 %v4026_v9, %v4018_v41 }
 0x920   : > { %v2129_v17 = vmul.f32 %v5726_v8, %v2127_v10  ;;  %3485 = vmatmul.mubr.msk.f32.vlgmr.msra.gmra.mrb[18].mxu1 %vm1684_vm10, %v2127_v10  ;;  %v3267_v10 = vld [vmem:[#allocation31] ss:$0 sm:$0xff] }
 0x921   : > { %3623 = vmatpush3.bf16.xpose.msk.msra.mxu1 %vm5819_vm8, %v3618_v1  ;;  %3493 = vmatprep.mubr.msk.f32.mxu1 %vm1589_vm7, %v2224_v12 }
 0x922   : > { %2132 = vst.msk [vmem:[#allocation42 + $0x28] sm:$0xff] %vm1684_vm10, %v2129_v17  ;;  %3491 = vmatprep.subr.msk.mxu1 %vm1589_vm7, %v2232_v18 }
 0x929   : > { %3492 = vmatpush3.xpose.msk.msra.mxu1 %vm1589_vm7, %v2232_v18 }
 0x92c   : > { %3494 = vmatmul.mubr.msk.f32.vlgmr.msra.gmra.mrb[20].mxu1 %vm1589_vm7, %v2226_v19 }
 0x940   : > { %v5951_v62 = vpop.f32.mrb[14].mxu1 }
 0x941   : > { %v5953_v20 = vpop.f32.mrb[15].mxu1 }
 0x9b6   : > { %v3468_v21 = vpop.f32.mrb[16].mxu1 }
 0x9b7   : > { %v2000_v22 = vpop.f32.mrb[17].mxu1 }
 0x9f3   : > { %v3486_v14 = vpop.f32.mrb[18].mxu1 }
 0x9f4   : > { %v2214_v60 = vpop.f32.mrb[19].mxu1 }
 0x9ff   : > { %v3495_v23 = vpop.f32.mrb[20].mxu1 }
 0xa00   : > { %v2319_v24 = vsel %vm5881_vm9, %v3495_v23, -1e+30  ;;  %v2309_v25 = vpop.f32.mrb[21].mxu1 }
 0xa01   : > { %v2318_v26 = vsel %vm5881_vm9, %v2309_v25, -1e+30  ;;  %v2323_v15 = vsel %vm1684_vm10, %v2319_v24, -inf }
 0xa02   : > { %2324 = vmax.xlane.f32.xlu1 %v2323_v15  ;;  %v2320_v13 = vsel %vm1684_vm10, %v2318_v26, -inf }
 0xa03   : > { %2321 = vmax.xlane.f32.xlu0 %v2320_v13 }
 0xa13   : > { %2351 = vrot.lane.b32.xlu1 %v5839_v16, %s4893_s15 }
 0xa17   : > { %2439 = vrot.lane.b32.xlu1 %v2000_v22, %s4894_s17 }
 0xa1b   : > { %2441 = vrot.lane.b32.xlu1 %v3468_v21, %s4894_s17 }
 0xa1f   : > { %2449 = vrot.lane.b32.xlu1 %v3486_v14, %s4895_s9 }
 0xa8f   : > { %v2325_v27 = vpop.xlane.xlu1 %2324 }
 0xa90   : > { %v2327_v30 = vsub.f32 %v2319_v24, %v2325_v27  ;;  %v2322_v38 = vpop.xlane.xlu0 %2321 }
 0xa91   : > { %v2326_v31 = vsub.f32 %v2318_v26, %v2322_v38 }
 0xa92   : > { %v2330_v32 = vmul.f32 1.442695, %v2327_v30 }
 0xa93   : > { %v2328_v33 = vmul.f32 1.442695, %v2326_v31  ;;  %v2352_v48 = vpop.permute.xlu1 %2351 }
 0xa94   : > { %4027 = vpow2.f32 %v2330_v32  ;;  %v2616_v32 = vld [vmem:[#allocation35] sm:$0xff] }
 0xa95   : > { %4029 = vpow2.f32 %v2328_v33  ;;  %v2617_v33 = vld [vmem:[#allocation35 + $0x8] sm:$0xff] }
 0xa97   : > { %v2440_v55 = vpop.permute.xlu1 %2439 }
 0xa98   : > { %v2461_v59 = vsel %vm1589_vm7, %v5953_v20, %v2440_v55 }
 0xa9b   : > { %v2442_v56 = vpop.permute.xlu1 %2441 }
 0xa9c   : > { %v2462_v1 = vsel %vm1589_vm7, %v5951_v62, %v2442_v56  ;;  %v2730_v56 = vld [vmem:[#allocation38 + $0x20] sm:$0xff] }
 0xa9e   : > { %v4028_v34 = vpop.eup %4027 }
 0xa9f   : > { %v2335_v35 = vsel %vm1684_vm10, %v4028_v34, 0.0  ;;  %v4030_v36 = vpop.eup %4029  ;;  %v2450_v47 = vpop.permute.xlu1 %2449 }
 0xaa0   : > { %2336 = vadd.xlane.f32.xlu0 %v2335_v35  ;;  %v2332_v16 = vsel %vm1684_vm10, %v4030_v36, 0.0  ;;  %v2465_v4 = vsel %vm2463_vm11, %v2462_v1, %v2450_v47  ;;  %v2618_v35 = vld [vmem:[#allocation35 + $0x10] sm:$0xff] }
 0xaa1   : > { %v2731_v47 = vld [vmem:[#allocation38 + $0x28] sm:$0xff] }
 0xaa4   : > { %2333 = vadd.xlane.f32.xlu0 %v2332_v16 }
 0xaba   : > { %3985 = vrot.lane.b32.xlu0 %v5837_v11, %s4893_s15 }
 0xabe   : > { %2447 = vrot.lane.b32.xlu0 %v2214_v60, %s4895_s9 }
 0xb2d   : > { %v2337_v39 = vpop.xlane.xlu0 %2336 }
 0xb2e   : > { %4031 = vrcp.f32 %v2337_v39  ;;  %v2726_v39 = vld [vmem:[#allocation38] sm:$0xff] }
 0xb31   : > { %v2334_v40 = vpop.xlane.xlu0 %2333 }
 0xb32   : > { %4033 = vrcp.f32 %v2334_v40  ;;  %v2727_v40 = vld [vmem:[#allocation38 + $0x8] sm:$0xff] }
 0xb35   : > { %v3986_v41 = vpop.permute.xlu0 %3985 }
 0xb36   : > { %v3988_v42 = vunpack.i.h.bf16 %v3986_v41  ;;  %v3987_v6 = vunpack.i.l.bf16 %v3986_v41  ;;  %v3644_v41 = vpack.c.bf16 %v2727_v40, %v2726_v39 }
 0xb38   : > { %v4032_v45 = vpop.eup %4031  ;;  %v3624_v0 = vpack.c.bf16 %v3988_v42, %v3987_v6 }
 0xb39   : > { %v2341_v46 = vmul.f32 %v4032_v45, %v4028_v34  ;;  %v2448_v57 = vpop.permute.xlu0 %2447  ;;  %v3636_v34 = vpack.c.bf16 %v2617_v33, %v2616_v32 }
 0xb3a   : > { %3625 = vmatprep.subr.bf16.mxu0 %v3624_v0  ;;  %v2464_v2 = vsel %vm2463_vm11, %v2461_v59, %v2448_v57  ;;  %v3652_v57 = vpack.c.bf16 %v2731_v47, %v2730_v56  ;;  %v2732_v59 = vld [vmem:[#allocation38 + $0x30] sm:$0xff] }
 0xb3b   : > { %v2343_v49 = vmul.f32 %v5726_v8, %v2341_v46  ;;  %3627 = vmatpush3.bf16.msra.mxu0 %v3624_v0  ;;  %3637 = vmatprep.subr.bf16.mxu1 %v3636_v34 }
 0xb3c   : > { %v4034_v50 = vpop.eup %4033  ;;  %3500 = vmatprep.subr.mxu0 %v2352_v48  ;;  %3639 = vmatpush3.bf16.msra.mxu1 %v3636_v34 }
 0xb3d   : > { %2346 = vst.msk [vmem:[#allocation42 + $0x38] sm:$0xff] %vm1684_vm10, %v2343_v49  ;;  %v2340_v11 = vmul.f32 %v4034_v50, %v4030_v36  ;;  %v2619_v36 = vld [vmem:[#allocation35 + $0x18] sm:$0xff] }
 0xb3e   : > { %v3640_v16 = vpack.c.bf16 %v2619_v36, %v2618_v35  ;;  %v3270_v50 = vld [vmem:[#allocation32] ss:$0 sm:$0xff] }
 0xb3f   : > { %3501 = vmatpush3.msra.mxu0 %v2352_v48  ;;  %v2342_v58 = vmul.f32 %v5723_v7, %v2340_v11  ;;  %3502 = vmatprep.mubr.msk.f32.mxu0 %vm1684_vm10, %v2340_v11 }
 0xb40   : > { %3503 = vmatmul.mubr.msk.f32.vlgmr.msra.gmra.mrb[6].mxu0 %vm1684_vm10, %v2341_v46  ;;  %3629 = vmatprep.subr.bf16.mxu0 %v3628_v61 }
 0xb41   : > { %2345 = vst.msk [vmem:[#allocation42 + $0x30] sm:$0xff] %vm1684_vm10, %v2342_v58  ;;  %3631 = vmatpush3.bf16.msra.mxu0 %v3628_v61  ;;  %3641 = vmatprep.subr.bf16.mxu1 %v3640_v16  ;;  %v3271_v58 = vld [vmem:[#allocation34] ss:$0 sm:$0xff] }
 0xb42   : > { %3633 = vmatprep.subr.bf16.mxu0 %v3632_v53  ;;  %3643 = vmatpush3.bf16.msra.mxu1 %v3640_v16 }
 0xb45   : > { %3635 = vmatpush3.bf16.msra.mxu0 %v3632_v53 }
 0xb46   : > { %3645 = vmatprep.subr.bf16.mxu0 %v3644_v41 }
 0xc13   : > { %v3504_v54 = vpop.f32.mrb[6].mxu0 }
 0xc14   : > { %2457 = vrot.lane.b32.xlu1 %v3504_v54, %s4896_s1  ;;  %v2428_v43 = vpop.f32.mrb[7].mxu0  ;;  %v2728_v54 = vld [vmem:[#allocation38 + $0x10] sm:$0xff] }
 0xc15   : > { %2455 = vrot.lane.b32.xlu0 %v2428_v43, %s4896_s1  ;;  %v2729_v43 = vld [vmem:[#allocation38 + $0x18] sm:$0xff] }
 0xc16   : > { %v3648_v55 = vpack.c.bf16 %v2729_v43, %v2728_v54 }
 0xc86   : > { %v2458_v63 = vpop.permute.xlu1 %2457 }
 0xc87   : > { %v2456_v3 = vpop.permute.xlu0 %2455  ;;  %v2467_v9 = vsel %vm1684_vm10, %v2465_v4, %v2458_v63  ;;  %v2733_v63 = vld [vmem:[#allocation38 + $0x38] sm:$0xff]  ;;  %v2736_v4 = vld [vmem:[#allocation38 + $0x50] sm:$0xff] }
 0xc88   : > { %v2466_v5 = vsel %vm1684_vm10, %v2464_v2, %v2456_v3  ;;  %v3656_v1 = vpack.c.bf16 %v2733_v63, %v2732_v59  ;;  %v2734_v2 = vld [vmem:[#allocation38 + $0x40] sm:$0xff]  ;;  %v2735_v3 = vld [vmem:[#allocation38 + $0x48] sm:$0xff] }
 0xc89   : > { %3513 = vmatprep.mubr.msk.f32.mxu0 %vm1105_vm2, %v2466_v5  ;;  %v3660_v5 = vpack.c.bf16 %v2735_v3, %v2734_v2 }
 0xc8a   : > { %3514 = vmatmul.mubr.msk.f32.vlgmr.msra.gmra.mrb[8].mxu0 %vm1105_vm2, %v2467_v9  ;;  %v2737_v9 = vld [vmem:[#allocation38 + $0x58] sm:$0xff] }
 0xc8b   : > { %3647 = vmatpush3.bf16.msra.mxu0 %v3644_v41 }
 0xc8c   : > { %3649 = vmatprep.subr.bf16.mxu0 %v3648_v55 }
 0xc8f   : > { %3651 = vmatpush3.bf16.msra.mxu0 %v3648_v55 }
 0xc90   : > { %3653 = vmatprep.subr.bf16.mxu0 %v3652_v57 }
 0xc93   : > { %3655 = vmatpush3.bf16.msra.mxu0 %v3652_v57 }
 0xc94   : > { %3657 = vmatprep.subr.bf16.mxu0 %v3656_v1 }
 0xc97   : > { %3659 = vmatpush3.bf16.msra.mxu0 %v3656_v1 }
 0xc98   : > { %3661 = vmatprep.subr.bf16.mxu0 %v3660_v5 }
 0xc9b   : > { %3663 = vmatpush3.bf16.msra.mxu0 %v3660_v5 }
 0xd5d   : > { %v3515_v12 = vpop.f32.mrb[8].mxu0 }
 0xd5e   : > { %v2557_v17 = vadd.f32 %v3515_v12, %v3267_v10  ;;  %v2551_v18 = vpop.f32.mrb[9].mxu0  ;;  %v2738_v12 = vld [vmem:[#allocation38 + $0x60] sm:$0xff] }
 0xd5f   : > { %v2552_v19 = vadd.f32 %v3267_v10, %v2551_v18  ;;  %v3664_v10 = vpack.c.bf16 %v2737_v9, %v2736_v4 }
 0xd60   : > { %2566 = vrot.lane.b32.xlu1 %v2557_v17, %s4897_s19  ;;  %v2561_v62 = vmul.f32 %v2557_v17, %v5748_v44  ;;  %v2739_v17 = vld [vmem:[#allocation38 + $0x68] sm:$0xff] }
 0xd61   : > { %2564 = vrot.lane.b32.xlu0 %v2552_v19, %s4897_s19  ;;  %v2560_v21 = vmul.f32 %v2552_v19, %v5743_v37  ;;  %3665 = vmatprep.subr.bf16.mxu0 %v3664_v10  ;;  %v3668_v18 = vpack.c.bf16 %v2739_v17, %v2738_v12  ;;  %v2740_v19 = vld [vmem:[#allocation38 + $0x70] sm:$0xff] }
 0xd62   : > { %3667 = vmatpush3.bf16.msra.mxu0 %v3664_v10 }
 0xd63   : > { %3669 = vmatprep.subr.bf16.mxu0 %v3668_v18 }
 0xd66   : > { %3671 = vmatpush3.bf16.msra.mxu0 %v3668_v18 }
 0xdd2   : > { %v2567_v20 = vpop.permute.xlu1 %2566 }
 0xdd3   : > { %v5985_v22 = vadd.f32 %v2567_v20, %v2561_v62  ;;  %v2565_v14 = vpop.permute.xlu0 %2564  ;;  %v2741_v62 = vld [vmem:[#allocation38 + $0x78] sm:$0xff] }
 0xdd4   : > { %v5987_v60 = vadd.f32 %v2565_v14, %v2560_v21  ;;  %v3672_v20 = vpack.c.bf16 %v2741_v62, %v2740_v19  ;;  %v3272_v21 = vld [vmem:[#allocation37] ss:$0 sm:$0xff] }
 0xdd5   : > { %v2575_v23 = vsel %vm1105_vm2, %v5985_v22, 0.0 }
 0xdd6   : > { %2576 = vadd.xlane.f32.xlu1 %v2575_v23  ;;  %v2572_v24 = vsel %vm1105_vm2, %v5987_v60, 0.0  ;;  %3673 = vmatprep.subr.bf16.mxu0 %v3672_v20 }
 0xdd7   : > { %2573 = vadd.xlane.f32.xlu0 %v2572_v24  ;;  %3675 = vmatpush3.bf16.msra.mxu0 %v3672_v20 }
 0xe63   : > { %v2577_v25 = vpop.xlane.xlu1 %2576 }
 0xe64   : > { %v2579_v26 = vmul.f32 0.03125, %v2577_v25  ;;  %v2574_v15 = vpop.xlane.xlu0 %2573 }
 0xe65   : > { %v2578_v44 = vmul.f32 0.03125, %v2574_v15 }
 0xe66   : > { %v2581_v13 = vsub.f32 %v5985_v22, %v2579_v26 }
 0xe67   : > { %v2580_v37 = vsub.f32 %v5987_v60, %v2578_v44 }
 0xe68   : > { %v2583_v38 = vmul.f32 %v2581_v13, %v2581_v13 }
 0xe69   : > { %v2582_v27 = vmul.f32 %v2580_v37, %v2580_v37 }
 0xe6a   : > { %v2587_v31 = vsel %vm1105_vm2, %v2583_v38, 0.0 }
 0xe6b   : > { %v2584_v30 = vsel %vm1105_vm2, %v2582_v27, 0.0 }
 0xe6c   : > { %2585 = vadd.xlane.f32.xlu0 %v2584_v30 }
 0xe70   : > { %2588 = vadd.xlane.f32.xlu0 %v2587_v31 }
 0xef9   : > { %v2586_v42 = vpop.xlane.xlu0 %2585 }
 0xefa   : > { %v2590_v6 = vmul.f32 0.03125, %v2586_v42 }
 0xefc   : > { %v2592_v45 = vadd.f32 1e-05, %v2590_v6 }
 0xefd   : > { %v2589_v0 = vpop.xlane.xlu0 %2588 }
 0xefe   : > { %4035 = vrsqrt.f32 %v2592_v45  ;;  %v2591_v46 = vmul.f32 0.03125, %v2589_v0 }
 0xf00   : > { %v2593_v48 = vadd.f32 1e-05, %v2591_v46 }
 0xf02   : > { %4037 = vrsqrt.f32 %v2593_v48 }
 0xf08   : > { %v4036_v49 = vpop.eup %4035 }
 0xf09   : > { %v2596_v11 = vmul.f32 %v4036_v49, %v2580_v37 }
 0xf0b   : > { %v2605_v29 = vmul.f32 %v3270_v50, %v2596_v11 }
 0xf0c   : > { %v4038_v51 = vpop.eup %4037 }
 0xf0d   : > { %v2597_v52 = vmul.f32 %v4038_v51, %v2581_v13  ;;  %v2614_v61 = vadd.f32 %v3271_v58, %v2605_v29 }
 0xf0f   : > { %v2606_v28 = vmul.f32 %v3270_v50, %v2597_v52  ;;  %3524 = vmatprep.mubr.msk.f32.mxu1 %vm1105_vm2, %v2614_v61 }
 0xf11   : > { %v2615_v53 = vadd.f32 %v3271_v58, %v2606_v28 }
 0xf13   : > { %3525 = vmatmul.mubr.msk.f32.vlgmr.msra.gmra.mrb[22].mxu1 %vm1105_vm2, %v2615_v53 }
 0xfe6   : > { %v3526_v14 = vpop.f32.mrb[22].mxu1 }
 0xfe7   : > { %v2705_v23 = vadd.f32 %v3526_v14, %v3272_v21  ;;  %v2699_v24 = vpop.f32.mrb[23].mxu1 }
 0xfe8   : > { %v2700_v25 = vadd.f32 %v3272_v21, %v2699_v24 }
 0xfe9   : > { %v2711_v26 = vmul.f32 0.044715, %v2705_v23  ;;  %v2709_v39 = vmul.f32 0.5, %v2705_v23 }
 0xfea   : > { %v2710_v15 = vmul.f32 0.044715, %v2700_v25  ;;  %v2708_v36 = vmul.f32 0.5, %v2700_v25 }
 0xfeb   : > { %v2713_v44 = vmul.f32 %v2711_v26, %v2705_v23 }
 0xfec   : > { %v2712_v13 = vmul.f32 %v2710_v15, %v2700_v25 }
 0xfed   : > { %v2715_v37 = vmul.f32 %v2713_v44, %v2705_v23 }
 0xfee   : > { %v2714_v27 = vmul.f32 %v2712_v13, %v2700_v25 }
 0xfef   : > { %v2717_v30 = vadd.f32 %v2715_v37, %v2705_v23 }
 0xff0   : > { %v2716_v38 = vadd.f32 %v2714_v27, %v2700_v25 }
 0xff1   : > { %v2719_v31 = vmul.f32 0.7978846, %v2717_v30 }
 0xff2   : > { %v2718_v32 = vmul.f32 0.7978846, %v2716_v38 }
 0xff3   : > { %4039 = vtanh.f32 %v2719_v31 }
 0xff4   : > { %4041 = vtanh.f32 %v2718_v32 }
 0xffd   : > { %v4040_v33 = vpop.eup %4039 }
 0xffe   : > { %v4042_v34 = vpop.eup %4041  ;;  %v2723_v35 = vadd.f32 1.0, %v4040_v33 }
 0xfff   : > { %v2722_v16 = vadd.f32 1.0, %v4042_v34 }
0x1000   : > { %v2725_v41 = vmul.f32 %v2723_v35, %v2709_v39 }
0x1001   : > { %v2724_v40 = vmul.f32 %v2722_v16, %v2708_v36 }
0x1003   : > { %3559 = vmatprep.mubr.f32.mxu0 %v2724_v40 }
0x1004   : > { %3560 = vmatmul.mubr.f32.vlgmr.msra.gmra.mrb[10].mxu0 %v2725_v41 }
0x1005   : > { %4724 = shalt.err (!%p4721_p6)
}
0x1006   : > { %s4725_s11 = scalar_lea.hbm %s2859_s7, 1024  ;;  %s4729_s15 = scalar_lea.hbm %s6240_s13, 2048 }
0x1007   : > { %p4726_p10 = scmp.ne.s32.totalorder %s2859_s7, %s4725_s11  ;;  %p4730_p9 = scmp.lt.u32.totalorder %s2859_s7, %s6240_s13 }
0x1008   : > { %p4731_p13 = scmp.lt.u32.totalorder %s4729_s15, %s4725_s11  ;;  %p4733_p12 = scmp.lt.u32.totalorder %s4725_s11, %s2859_s7 }
0x1009   : > { %p4727_p5 = pnand %p4726_p10, %p6241_p3 }
0x100a   : > { %p4732_p8 = por %p4731_p13, %p4730_p9 }
0x100b   : > { %p4728_p7 = pneg %p4727_p5 }
0x100c   : > { %p4734_p11 = por %p4733_p12, %p4732_p8 }
0x100e   : > { %p4735_p1 = pnand %p4734_p11, %p4728_p7 }
0x1010   : > { %4738 = shalt.err (!%p4735_p1)
}
0x1011   : > { %s4899_s19 = smov 128   ;;  %v3275_v42 = vld [vmem:[#allocation40] ss:$0 sm:$0xff]  ;;  %s3284_s6 = sshll.u32 %s6213_s14, 8 }
0x1012   : > { %3768 = dma.vmem_to_hbm [thread:$0]  (%p6241_p3), %s2861_s3, 1024, %s2859_s7, [#allocation43], %s4899_s19, %s4899_s19, %s4894_s17  }
0x1013   : > { %s1079_s5 = scalar_lea.vmem [#allocation41], %s3197_s12  ;;  %s6242_s7 = sld [smem:[#allocation86_spill]] }
0x1014   : > { %s2844_s16 = sshll.u32 %s1079_s5, 4  ;;  %s2831_s12 = scalar_lea.sflag [#allocation7], %s5650_s25  ;;  %s6030_s16 = int_to_ptr.vmem [resolvable:$true] %s2844_s16 }
0x1015   : > { %s4739_s14 = scalar_lea.vmem %s6030_s16, 256  ;;  %s4900_s11 = smov [#allocation41]  }
0x1016   : > { %p4740_p2 = scmp.ne.s32.totalorder %s6030_s16, %s4739_s14  ;;  %s4743_s0 = sshll.u32 %s4900_s11, 4  ;;  %s4744_s0 = int_to_ptr.vmem [resolvable:$false] %s4743_s0 }
0x1017   : > { %s4745_s2 = scalar_lea.vmem %s4744_s0, 512  ;;  %p4746_p6 = scmp.lt.s32.totalorder %s6030_s16, %s4744_s0 }
0x1018   : > { %p4741_p0 = pnand %p4740_p2, %p6241_p3  ;;  %p4747_p10 = scmp.lt.s32.totalorder %s4745_s2, %s4739_s14 }
0x1019   : > { %s6028_s4 = scalar_lea.hbm %s6242_s7, %s3284_s6 }
0x101a   : > { %p4742_p4 = pneg %p4741_p0  ;;  %p4748_p5 = por %p4747_p10, %p4746_p6 }
0x101c   : > { %p4749_p7 = pnand %p4748_p5, %p4742_p4 }
0x10d7   : > { %v3561_v6 = vpop.f32.mrb[10].mxu0 }
0x10d8   : > { %v2821_v45 = vadd.f32 %v3561_v6, %v3275_v42  ;;  %v2815_v0 = vpop.f32.mrb[11].mxu0 }
0x10d9   : > { %v2816_v46 = vadd.f32 %v3275_v42, %v2815_v0 }
0x10da   : > { %v2825_v48 = vmul.f32 %v5726_v8, %v2821_v45 }
0x10db   : > { %v2824_v49 = vmul.f32 %v5723_v7, %v2816_v46 }
0x10dc   : > { %v2827_v50 = vadd.f32 %v2825_v48, %v5985_v22 }
0x10dd   : > { %v2826_v11 = vadd.f32 %v2824_v49, %v5987_v60 }
0x10de   : > { %2829 = vst.msk [vmem:[%s1079_s5 + $0x8] sm:$0xff] %vm1105_vm2, %v2827_v50 }
0x10df   : > { %2828 = vst.msk [vmem:[%s1079_s5] sm:$0xff] %vm1105_vm2, %v2826_v11 }
0x10e0   : > { %4752 = shalt.err (!%p4749_p7)
}
0x10e1   : > { %s4753_s15 = scalar_lea.hbm %s6028_s4, 256  ;;  %s4757_s6 = scalar_lea.hbm %s6242_s7, 512 }
0x10e2   : > { %p4754_p9 = scmp.ne.s32.totalorder %s6028_s4, %s4753_s15  ;;  %p4758_p12 = scmp.lt.u32.totalorder %s6028_s4, %s6242_s7 }
0x10e3   : > { %p4759_p11 = scmp.lt.u32.totalorder %s4757_s6, %s4753_s15  ;;  %p4761_p2 = scmp.lt.u32.totalorder %s4753_s15, %s6028_s4 }
0x10e4   : > { %p4755_p13 = pnand %p4754_p9, %p6241_p3 }
0x10e5   : > { %p4760_p1 = por %p4759_p11, %p4758_p12 }
0x10e6   : > { %p4756_p8 = pneg %p4755_p13 }
0x10e7   : > { %p4762_p0 = por %p4761_p2, %p4760_p1 }
0x10e9   : > { %p4763_p4 = pnand %p4762_p0, %p4756_p8 }
0x10eb   : > { %4766 = shalt.err (!%p4763_p4)
}
0x10ec   : > { %3767 = dma.vmem_to_hbm [thread:$0]  (%p6241_p3), %s6030_s16, 256, %s6028_s4, %s2831_s12, %s4899_s19, %s4899_s19, %s4894_s17  }
0x10ed   : > { %4838 = dma.done.wait (%p6241_p3), [#allocation43], 1024  }
0x10ee   : > { %4840 = vsyncadd (%p6241_p3), [#allocation43], 4294966272 }
0x10ef PF: > { %s6243_s18 = sld [smem:[#allocation60_spill]]  ;;  %s6244_s14 = sld [smem:[#allocation63_spill]] }
0x10f0   : > { %p6245_p6 = scmp.ne.s32.totalorder %s6203_s28, 0 }
0x10f5   : > { %s2879_s11 = sand.u32 1, %s6243_s18   ;;  %p6246_p10 = scmp.ge.s32.totalorder %s6244_s14, 2 }
0x10f6   : > { %s2880_s0 = scalar_lea.sflag [#allocation7], %s2879_s11 }
0x10f7   : > { %p3843_p5 = pnand %p6246_p10, %p6245_p6 }
0x10f9   : > { %4842 = dma.done.wait (!%p3843_p5), %s2880_s0, 256  }
0x10fa   : > { %4844 = vsyncadd (!%p3843_p5), %s2880_s0, 4294967040  ;;  %s6247_s1 = sld [smem:[#allocation61_spill]]  ;;  %s6248_s25 = sld [smem:[#allocation62_spill]] }
0x10fb   : > { %s6249_s17 = smov %s5542_s8  ;;  %p60_p7 = scmp.ge.s32.totalorder %s5530_s29, 4  }
0x10fc   : > { %s6251_s5 = smov %s6249_s17 }
0x10fd   :  { %62 = sbr.rel (!%p60_p7) target bundleno = 57 (0x39), region = 266 }
0x1100   : > { %s6250_s8 = smov %s6248_s25 }
0x1104   :  { %2885 = vsyncpa [#allocation6], 1 }
0x1105   :  { %2887 = vsyncpa [#allocation6 + $0x1], 1 }
0x1106   :  { %2888 = vsyncpa [#allocation9], 1 }
0x1107   :  { %2890 = vsyncpa [#allocation9 + $0x1], 1 }
0x1108   :  { %2891 = vsyncpa [#allocation12], 1 }
0x1109   :  { %2892 = vsyncpa [#allocation15], 1 }
0x110a   :  { %2893 = vsyncpa [#allocation18], 1 }
0x110b   :  { %2894 = vsyncpa [#allocation21], 1 }
0x110c   :  { %2895 = vsyncpa [#allocation24], 1 }
0x110d   :  { %2896 = vsyncpa [#allocation27], 1 }
0x110e   :  { %2897 = vsyncpa [#allocation30], 1 }
0x110f   :  { %2898 = vsyncpa [#allocation33], 1 }
0x1110   :  { %2899 = vsyncpa [#allocation36], 1 }
0x1111   :  { %2900 = vsyncpa [#allocation39], 1 }
0x1112   :  { %2901 = vsyncpa [#allocation7], 1 }
0x1113   :  { %2903 = vsyncpa [#allocation7 + $0x1], 1 }
0x1114   :  { %2904 = vsyncpa [#allocation43], 1 }

</bundles_post_ra>
